<compile_context>
chip_gen: v7x
topology: tpu7x:2x2x1
jax: 0.10.0
libtpu: 0.0.40
codegen_flags: <defaults>
</compile_context>

<pallas_src>
import functools
import math

import jax
import jax.numpy as jnp
from jax.experimental import pallas as pl
from jax.experimental.pallas import tpu as pltpu

EPS = 1e-5
LANE = 128
VMEM_LIMIT_BYTES = 48 * 1024 * 1024   # fits v5e/v6e (128 MiB) and v7x (64 MiB)


def _round_up(x, m):
    return (x + m - 1) // m * m


def _largest_divisor_le(n, cap):
    t = min(n, cap)
    while n % t:
        t -= 1
    return t


# ----------------------------------------------------------------------------
# Tiled matmul + fused BatchNorm scale/shift (+ optional residual) (+ optional ReLU)
# ----------------------------------------------------------------------------

def _matmul_bn_act_kernel(a_ref, b_ref, scale_ref, shift_ref, *rest, act, has_res):
    if has_res:
        res_ref, o_ref, acc_ref = rest
    else:
        res_ref = None
        o_ref, acc_ref = rest

    @pl.when(pl.program_id(2) == 0)
    def _init():
        acc_ref[...] = jnp.zeros_like(acc_ref)

    acc_ref[...] += jnp.dot(a_ref[...], b_ref[...],
                            preferred_element_type=jnp.float32)

    @pl.when(pl.program_id(2) == pl.num_programs(2) - 1)
    def _finalize():
        out = acc_ref[...] * scale_ref[...] + shift_ref[...]
        if has_res:
            out = out + res_ref[...]
        if act:
            out = jnp.maximum(out, 0.0)
        o_ref[...] = out.astype(o_ref.dtype)


def matmul_bn_act(a, b, scale, shift, act, residual=None):
    """(M,K) @ (K,N) with fused per-column scale/shift, optional residual add
    and optional ReLU.

    bf16 operands into the MXU, f32 accumulation/epilogue.  N (and K when it is
    tiled) is padded to multiples of 128 for lane-dense, MXU-aligned tiles.
    """
    M, K = a.shape
    N = b.shape[1]

    tm = min(256, _round_up(M, 8))
    m_pad = _round_up(M, tm)
    n_pad = _round_up(N, LANE)
    tn = 256 if n_pad % 256 == 0 else 128
    if K > 1024:                       # tile the contraction dim only when large
        k_pad = _round_up(K, LANE)
        tk = LANE * _largest_divisor_le(k_pad // LANE, 4)   # <= 512, exact divisor
    else:
        k_pad = K
        tk = K
    nk = k_pad // tk

    a_p = jnp.pad(a.astype(jnp.float32),
                  ((0, m_pad - M), (0, k_pad - K))).astype(jnp.bfloat16)
    b_p = jnp.pad(b.astype(jnp.float32),
                  ((0, k_pad - K), (0, n_pad - N))).astype(jnp.bfloat16)
    sc = jnp.pad(scale.astype(jnp.float32), (0, n_pad - N)).reshape(1, n_pad)
    sh = jnp.pad(shift.astype(jnp.float32), (0, n_pad - N)).reshape(1, n_pad)

    in_specs = [
        pl.BlockSpec((tm, tk), lambda i, j, k: (i, k)),
        pl.BlockSpec((tk, tn), lambda i, j, k: (k, j)),
        pl.BlockSpec((1, tn), lambda i, j, k: (0, j)),
        pl.BlockSpec((1, tn), lambda i, j, k: (0, j)),
    ]
    args = [a_p, b_p, sc, sh]
    has_res = residual is not None
    if has_res:
        r_p = jnp.pad(residual.astype(jnp.float32),
                      ((0, m_pad - M), (0, n_pad - N)))
        # index_map is independent of k -> the tile is NOT re-fetched while the
        # K axis accumulates (Pallas only re-DMAs on block-index change).
        in_specs.append(pl.BlockSpec((tm, tn), lambda i, j, k: (i, j)))
        args.append(r_p)

    out = pl.pallas_call(
        functools.partial(_matmul_bn_act_kernel, act=act, has_res=has_res),
        grid=(m_pad // tm, n_pad // tn, nk),
        in_specs=in_specs,
        out_specs=pl.BlockSpec((tm, tn), lambda i, j, k: (i, j)),
        out_shape=jax.ShapeDtypeStruct((m_pad, n_pad), jnp.float32),
        scratch_shapes=[pltpu.VMEM((tm, tn), jnp.float32)],
        compiler_params=pltpu.CompilerParams(
            dimension_semantics=("parallel", "parallel", "arbitrary"),
            vmem_limit_bytes=VMEM_LIMIT_BYTES),
    )(*args)
    return out[:M, :N]


# ----------------------------------------------------------------------------
# TD attention: two standard softmax(QK^T)V attentions on NHWC slabs
# ----------------------------------------------------------------------------

def _seq_attn_kernel(q_ref, k_ref, v_ref, o_ref, *, scale):
    q = q_ref[...]
    k = k_ref[...]
    v = v_ref[...]
    s = jnp.einsum('nqc,nkc->nqk', q, k,
                   preferred_element_type=jnp.float32) * scale
    p = jax.nn.softmax(s, axis=-1)
    o = jnp.einsum('nqk,nkc->nqc', p, v, preferred_element_type=jnp.float32)
    o_ref[...] = o.astype(o_ref.dtype)


def _seq_attention(q, k, v, scale):
    """Batched attention over (N, S, C) slabs, softmax over the key axis."""
    n, s, c = q.shape
    tile = _largest_divisor_le(n, 64)
    spec = pl.BlockSpec((tile, s, c), lambda i: (i, 0, 0))
    # TODO(synk): the stored slab's minor dim is C (<128 at small widths); a
    #             lane-dense (tile, S*C) repack is left for future work.
    return pl.pallas_call(
        functools.partial(_seq_attn_kernel, scale=scale),
        grid=(n // tile,),
        in_specs=[spec, spec, spec],
        out_specs=spec,
        out_shape=jax.ShapeDtypeStruct((n, s, c), jnp.float32),
        compiler_params=pltpu.CompilerParams(
            dimension_semantics=("parallel",),
            vmem_limit_bytes=VMEM_LIMIT_BYTES),
    )(q.astype(jnp.float32), k.astype(jnp.float32), v.astype(jnp.float32))


def td_attention(q, k, v):
    """TDAttention forward, NHWC.  q, k, v: (B, H, W, C) -> (B, H, W, 2C).

    h-branch == attention along W within each (b,h); w-branch == attention
    along H within each (b,w); both have softmax over the key axis (verified
    against the PyTorch dim=-2 / dim=-1 reference in NCHW).
    """
    B, H, W, C = q.shape
    scale = 1.0 / math.sqrt(C)

    out_h = _seq_attention(q.reshape(B * H, W, C),
                           k.reshape(B * H, W, C),
                           v.reshape(B * H, W, C), scale).reshape(B, H, W, C)

    # TODO(synk): the w-branch input/output transposes still round-trip HBM; an
    #             in-kernel relayout (column-attention) variant is future work.
    qt = jnp.transpose(q, (0, 2, 1, 3)).reshape(B * W, H, C)
    kt = jnp.transpose(k, (0, 2, 1, 3)).reshape(B * W, H, C)
    vt = jnp.transpose(v, (0, 2, 1, 3)).reshape(B * W, H, C)
    out_w = _seq_attention(qt, kt, vt, scale).reshape(B, W, H, C)
    out_w = jnp.transpose(out_w, (0, 2, 1, 3))

    return jnp.concatenate([out_h, out_w], axis=-1)


# ----------------------------------------------------------------------------
# Max-pool (+ fused pos_embed add), global average pool
# ----------------------------------------------------------------------------

def _max9_pos_kernel(*refs):
    taps = refs[:9]
    pos_ref = refs[9]
    o_ref = refs[10]
    m = taps[0][...]
    for r in taps[1:]:
        m = jnp.maximum(m, r[...])
    o_ref[...] = m + pos_ref[...]


def max_pool_3x3_s2_p1_add_pos(x, pos):
    """3x3 / stride 2 / pad 1 max pool + pos_embed add, NHWC, gridded per batch."""
    B, H, W, C = x.shape
    OH = (H + 2 - 3) // 2 + 1
    OW = (W + 2 - 3) // 2 + 1
    xp = jnp.pad(x, ((0, 0), (1, 1), (1, 1), (0, 0)),
                 constant_values=-jnp.inf)
    taps = [xp[:, i:i + 2 * OH:2, j:j + 2 * OW:2, :].astype(jnp.float32)
            for i in range(3) for j in range(3)]
    spec = pl.BlockSpec((1, OH, OW, C), lambda b: (b, 0, 0, 0))
    pos_spec = pl.BlockSpec((1, OH, OW, C), lambda b: (0, 0, 0, 0))
    return pl.pallas_call(
        _max9_pos_kernel,
        grid=(B,),
        in_specs=[spec] * 9 + [pos_spec],
        out_specs=spec,
        out_shape=jax.ShapeDtypeStruct((B, OH, OW, C), jnp.float32),
        compiler_params=pltpu.CompilerParams(
            dimension_semantics=("parallel",),
            vmem_limit_bytes=VMEM_LIMIT_BYTES),
    )(*taps, pos.astype(jnp.float32))


def _avgpool_kernel(x_ref, o_ref):
    o_ref[...] = jnp.mean(x_ref[...], axis=1, keepdims=True)


def global_avg_pool(x):
    B, H, W, C = x.shape
    xf = x.reshape(B, H * W, C).astype(jnp.float32)
    out = pl.pallas_call(
        _avgpool_kernel,
        grid=(B,),
        in_specs=[pl.BlockSpec((1, H * W, C), lambda b: (b, 0, 0))],
        out_specs=pl.BlockSpec((1, 1, C), lambda b: (b, 0, 0)),
        out_shape=jax.ShapeDtypeStruct((B, 1, C), jnp.float32),
        compiler_params=pltpu.CompilerParams(dimension_semantics=("parallel",)),
    )(xf)
    return out.reshape(B, C)


# ----------------------------------------------------------------------------
# Conv (NHWC im2col + tiled Pallas matmul) and module forwards
# ----------------------------------------------------------------------------

def conv2d_bn_act(x, w, scale, shift, stride, padding, act, residual=None):
    """NHWC conv (no bias) + per-channel scale/shift + optional residual + ReLU.

    w stays in the PyTorch (O, Cin, KH, KW) layout and is repacked to match the
    (kh, kw, cin)-ordered im2col columns.
    """
    B, H, W, Cin = x.shape
    O, _, KH, KW = w.shape
    OH = (H + 2 * padding - KH) // stride + 1
    OW = (W + 2 * padding - KW) // stride + 1
    if KH == 1 and KW == 1 and stride == 1 and padding == 0:
        a = x.reshape(B * H * W, Cin)
        wmat = w.reshape(O, Cin).T
    else:
        # TODO(synk): im2col still materializes KH*KW shifted copies in HBM (XLA
        #             glue); a fully fused tap-loop conv kernel is future work.
        xp = jnp.pad(x, ((0, 0), (padding, padding), (padding, padding), (0, 0)))
        cols = [xp[:, kh:kh + stride * OH:stride, kw:kw + stride * OW:stride, :]
                for kh in range(KH) for kw in range(KW)]
        a = jnp.concatenate(cols, axis=-1).reshape(B * OH * OW, KH * KW * Cin)
        wmat = jnp.transpose(w, (2, 3, 1, 0)).reshape(KH * KW * Cin, O)
    res2d = None if residual is None else residual.reshape(-1, O)
    out = matmul_bn_act(a, wmat, scale, shift, act, residual=res2d)  # (B*OH*OW, O)
    return out.reshape(B, OH, OW, O)


def bn_scale_shift(bn):
    scale = bn['gamma'] / jnp.sqrt(bn['var'] + EPS)
    shift = bn['beta'] - bn['mean'] * scale
    return scale, shift


def base_conv_fwd(p, x, stride, padding, act, residual=None):
    scale, shift = bn_scale_shift(p['bn'])
    return conv2d_bn_act(x, p['w'], scale, shift, stride, padding, act,
                         residual=residual)


def block_fwd(p, cfg, x):
    cin, cout, s = cfg['cin'], cfg['cout'], cfg['stride']
    if 'res_w' in p:
        ones = jnp.ones((cout,), jnp.float32)
        zeros = jnp.zeros((cout,), jnp.float32)
        res = conv2d_bn_act(x, p['res_w'], ones, zeros, stride=s, padding=0,
                            act=False)
    else:
        res = x
    # TDTransformer(cin, cin, stride=1)
    qkv = base_conv_fwd(p['tdt']['conv'], x, stride=1, padding=0, act=False)
    q = qkv[..., :cin]
    k = qkv[..., cin:2 * cin]
    v = qkv[..., 2 * cin:]
    a = td_attention(q, k, v)
    h = base_conv_fwd(p['tdt']['proj'], a, stride=1, padding=0, act=True)
    # Block.conv: BaseConv(cin, cout, k=3, stride=s, pad=1, act=False), then
    # x + res and ReLU -- residual add and ReLU fused in the matmul epilogue.
    return base_conv_fwd(p['conv'], h, stride=s, padding=1, act=True,
                         residual=res)


def tdtnet_forward(params, cfgs, x_nchw):
    # Single NCHW -> NHWC transpose at the input; NHWC everywhere after that.
    x = jnp.transpose(x_nchw, (0, 2, 3, 1))
    # stem conv (act=False): TDTNet5.act is defined but never used in
    # _forward_impl, so no ReLU here (matching the reference exactly).
    x = base_conv_fwd(params['stem'], x, stride=2, padding=3, act=False)
    # max-pool with pos_embed add fused (broadcast via index_map).
    x = max_pool_3x3_s2_p1_add_pos(x, params['pos_embed'])
    for blocks, bcfgs in zip(params['layers'], cfgs):
        for blk, cfg in zip(blocks, bcfgs):
            x = block_fwd(blk, cfg, x)
    pooled = global_avg_pool(x)                       # (B, C)
    num_classes = params['fc_w'].shape[0]
    logits = matmul_bn_act(pooled, params['fc_w'].T,
                           jnp.ones((num_classes,), jnp.float32),
                           params['fc_b'], act=False)
    return logits


# ----------------------------------------------------------------------------
# Parameter init (deterministic, matching the module's __init__ shapes)
# ----------------------------------------------------------------------------

def trunc_normal(key, shape, std=0.02):
    return std * jax.random.truncated_normal(key, -2.0, 2.0, shape, jnp.float32)


def init_bn(c):
    return dict(gamma=jnp.ones((c,), jnp.float32),
                beta=jnp.zeros((c,), jnp.float32),
                mean=jnp.zeros((c,), jnp.float32),
                var=jnp.ones((c,), jnp.float32))


def init_baseconv(key, cin, cout, k):
    return dict(w=trunc_normal(key, (cout, cin, k, k)), bn=init_bn(cout))


def init_params(key, num_classes, num_block, channels, pos_hw):
    keys = list(jax.random.split(key, 128))
    ki = iter(keys)

    params = {}
    # pos_embed stored NHWC (it is zeros, layout choice only).
    params['pos_embed'] = jnp.zeros((1, pos_hw, pos_hw, channels), jnp.float32)
    params['stem'] = init_baseconv(next(ki), 3, channels, 7)

    in_ch = channels
    layers, cfgs = [], []
    for mult, stride0, nb in zip([1, 2, 4, 8], [1, 2, 2, 2], num_block):
        out_ch = mult * channels
        blocks, bcfg = [], []
        for i in range(nb):
            cin = in_ch if i == 0 else out_ch
            s = stride0 if i == 0 else 1
            blk = {
                'tdt': {
                    'conv': init_baseconv(next(ki), cin, 3 * cin, 1),
                    'proj': init_baseconv(next(ki), 2 * cin, cin, 1),
                },
                'conv': init_baseconv(next(ki), cin, out_ch, 3),
            }
            if s != 1 or cin != out_ch:
                blk['res_w'] = trunc_normal(next(ki), (out_ch, cin, 1, 1))
            blocks.append(blk)
            bcfg.append(dict(cin=cin, cout=out_ch, stride=s))
        layers.append(blocks)
        cfgs.append(bcfg)
        in_ch = out_ch
    params['layers'] = layers
    params['fc_w'] = trunc_normal(next(ki), (num_classes, in_ch))
    params['fc_b'] = jnp.zeros((num_classes,), jnp.float32)
    return params, cfgs


# ----------------------------------------------------------------------------

if __name__ == "__main__":
    # Small config consistent with TDTNet5(num_classes, num_block, channels):
    #   channels=8, num_block=[1,1,1,1], input 2x3x32x32
    #   -> stem conv /2 -> 16x16 -> maxpool /2 -> 8x8 (pos_embed spatial = 8)
    num_classes = 10
    num_block = [1, 1, 1, 1]
    channels = 8
    B, H, W = 2, 32, 32

    key = jax.random.PRNGKey(0)
    pkey, xkey = jax.random.split(key)
    params, cfgs = init_params(pkey, num_classes, num_block, channels,
                               pos_hw=H // 4)
    x = jax.random.normal(xkey, (B, 3, H, W), jnp.float32)

    fwd = jax.jit(lambda inp: tdtnet_forward(params, cfgs, inp))
    out = fwd(x)
    out = jax.block_until_ready(out)
    assert out.shape == (B, num_classes), out.shape
    print("KERNEL_OK")
</pallas_src>

<mosaic_0001>
module attributes {stable_mosaic.version = 11 : i64} {
  func.func @_matmul_bn_act_kernel(%arg0: i32, %arg1: i32, %arg2: i32, %arg3: memref<256x147xbf16, #tpu.memory_space<vmem>>, %arg4: memref<147x128xbf16, #tpu.memory_space<vmem>>, %arg5: memref<1x128xf32, #tpu.memory_space<vmem>>, %arg6: memref<1x128xf32, #tpu.memory_space<vmem>>, %arg7: memref<256x128xf32, #tpu.memory_space<vmem>>, %arg8: memref<256x128xf32, #tpu.memory_space<vmem>>) attributes {dimension_semantics = [#tpu.dimension_semantics<parallel>, #tpu.dimension_semantics<parallel>, #tpu.dimension_semantics<arbitrary>], iteration_bounds = array<i64: 2, 1, 1>, scalar_prefetch = 0 : i64, scratch_operands = 1 : i64, tpu.core_type = #tpu.core_type<tc>, window_params = [{transform_indices = @transform_0, window_bounds = array<i64: 256, 147>}, {transform_indices = @transform_1, window_bounds = array<i64: 147, 128>}, {transform_indices = @transform_2, window_bounds = array<i64: 1, 128>}, {transform_indices = @transform_3, window_bounds = array<i64: 1, 128>}, {transform_indices = @transform_4, window_bounds = array<i64: 256, 128>}]} {
    %c0_i32 = arith.constant 0 : i32
    %0 = arith.cmpi eq, %arg2, %c0_i32 : i32
    %1 = arith.extui %0 : i1 to i32
    %c0_i32_0 = arith.constant 0 : i32
    %2 = arith.cmpi ne, %1, %c0_i32_0 : i32
    scf.if %2 {
      %cst_10 = arith.constant 0.000000e+00 : f32
      %12 = vector.broadcast %cst_10 : f32 to vector<256x128xf32>
      %c0_11 = arith.constant 0 : index
      %c0_12 = arith.constant 0 : index
      %13 = vector.load %arg8[%c0_11, %c0_12] : memref<256x128xf32, #tpu.memory_space<vmem>>, vector<256x128xf32>
      tpu.vector_store %arg8[%c0_11, %c0_12], %12 {strides = array<i32>} : memref<256x128xf32, #tpu.memory_space<vmem>>, vector<256x128xf32>,
    } else {
    }
    %c0 = arith.constant 0 : index
    %c0_1 = arith.constant 0 : index
    %3 = vector.load %arg8[%c0, %c0_1] : memref<256x128xf32, #tpu.memory_space<vmem>>, vector<256x128xf32>
    %c0_2 = arith.constant 0 : index
    %c0_3 = arith.constant 0 : index
    %4 = vector.load %arg3[%c0_2, %c0_3] : memref<256x147xbf16, #tpu.memory_space<vmem>>, vector<256x147xbf16>
    %c0_4 = arith.constant 0 : index
    %c0_5 = arith.constant 0 : index
    %5 = vector.load %arg4[%c0_4, %c0_5] : memref<147x128xbf16, #tpu.memory_space<vmem>>, vector<147x128xbf16>
    %cst = arith.constant dense<0.000000e+00> : vector<256x128xf32>
    %6 = tpu.matmul %4, %5, %cst {dimension_numbers = #tpu.dot_dimension_numbers<[1], [0], [0], [1], [0, 0, 1, 1], [], []>} : vector<256x147xbf16>, vector<147x128xbf16>, vector<256x128xf32> -> vector<256x128xf32>
    %7 = arith.addf %3, %6 : vector<256x128xf32>
    %c0_6 = arith.constant 0 : index
    %c0_7 = arith.constant 0 : index
    %8 = vector.load %arg8[%c0_6, %c0_7] : memref<256x128xf32, #tpu.memory_space<vmem>>, vector<256x128xf32>
    tpu.vector_store %arg8[%c0_6, %c0_7], %7 {strides = array<i32>} : memref<256x128xf32, #tpu.memory_space<vmem>>, vector<256x128xf32>,
    %c0_i32_8 = arith.constant 0 : i32
    %9 = arith.cmpi eq, %arg2, %c0_i32_8 : i32
    %10 = arith.extui %9 : i1 to i32
    %c0_i32_9 = arith.constant 0 : i32
    %11 = arith.cmpi ne, %10, %c0_i32_9 : i32
    scf.if %11 {
      %c0_10 = arith.constant 0 : index
      %c0_11 = arith.constant 0 : index
      %12 = vector.load %arg8[%c0_10, %c0_11] : memref<256x128xf32, #tpu.memory_space<vmem>>, vector<256x128xf32>
      %c0_12 = arith.constant 0 : index
      %c0_13 = arith.constant 0 : index
      %13 = vector.load %arg5[%c0_12, %c0_13] : memref<1x128xf32, #tpu.memory_space<vmem>>, vector<1x128xf32>
      %14 = vector.broadcast %13 : vector<1x128xf32> to vector<256x128xf32>
      %15 = arith.mulf %12, %14 : vector<256x128xf32>
      %c0_14 = arith.constant 0 : index
      %c0_15 = arith.constant 0 : index
      %16 = vector.load %arg6[%c0_14, %c0_15] : memref<1x128xf32, #tpu.memory_space<vmem>>, vector<1x128xf32>
      %17 = vector.broadcast %16 : vector<1x128xf32> to vector<256x128xf32>
      %18 = arith.addf %15, %17 : vector<256x128xf32>
      %c0_16 = arith.constant 0 : index
      %c0_17 = arith.constant 0 : index
      %19 = vector.load %arg7[%c0_16, %c0_17] : memref<256x128xf32, #tpu.memory_space<vmem>>, vector<256x128xf32>
      tpu.vector_store %arg7[%c0_16, %c0_17], %18 {strides = array<i32>} : memref<256x128xf32, #tpu.memory_space<vmem>>, vector<256x128xf32>,
    } else {
    }
    return
  }
  func.func @transform_0(%arg0: i32, %arg1: i32, %arg2: i32) -> (i32, i32) {
    %c0_i32 = arith.constant 0 : i32
    return %arg0, %arg2 : i32, i32
  }
  func.func @transform_1(%arg0: i32, %arg1: i32, %arg2: i32) -> (i32, i32) {
    %c0_i32 = arith.constant 0 : i32
    return %arg2, %arg1 : i32, i32
  }
  func.func @transform_2(%arg0: i32, %arg1: i32, %arg2: i32) -> (i32, i32) {
    %c0_i32 = arith.constant 0 : i32
    %c0_i32_0 = arith.constant 0 : i32
    return %c0_i32, %arg1 : i32, i32
  }
  func.func @transform_3(%arg0: i32, %arg1: i32, %arg2: i32) -> (i32, i32) {
    %c0_i32 = arith.constant 0 : i32
    %c0_i32_0 = arith.constant 0 : i32
    return %c0_i32, %arg1 : i32, i32
  }
  func.func @transform_4(%arg0: i32, %arg1: i32, %arg2: i32) -> (i32, i32) {
    %c0_i32 = arith.constant 0 : i32
    return %arg0, %arg1 : i32, i32
  }
}

module attributes {stable_mosaic.version = 11 : i64} {
  func.func @_max9_pos_kernel(%arg0: i32, %arg1: memref<1x8x8x8xf32, #tpu.memory_space<vmem>>, %arg2: memref<1x8x8x8xf32, #tpu.memory_space<vmem>>, %arg3: memref<1x8x8x8xf32, #tpu.memory_space<vmem>>, %arg4: memref<1x8x8x8xf32, #tpu.memory_space<vmem>>, %arg5: memref<1x8x8x8xf32, #tpu.memory_space<vmem>>, %arg6: memref<1x8x8x8xf32, #tpu.memory_space<vmem>>, %arg7: memref<1x8x8x8xf32, #tpu.memory_space<vmem>>, %arg8: memref<1x8x8x8xf32, #tpu.memory_space<vmem>>, %arg9: memref<1x8x8x8xf32, #tpu.memory_space<vmem>>, %arg10: memref<1x8x8x8xf32, #tpu.memory_space<vmem>>, %arg11: memref<1x8x8x8xf32, #tpu.memory_space<vmem>>) attributes {dimension_semantics = [#tpu.dimension_semantics<parallel>], iteration_bounds = array<i64: 2>, scalar_prefetch = 0 : i64, scratch_operands = 0 : i64, tpu.core_type = #tpu.core_type<tc>, window_params = [{transform_indices = @transform_0, window_bounds = array<i64: 1, 8, 8, 8>}, {transform_indices = @transform_1, window_bounds = array<i64: 1, 8, 8, 8>}, {transform_indices = @transform_2, window_bounds = array<i64: 1, 8, 8, 8>}, {transform_indices = @transform_3, window_bounds = array<i64: 1, 8, 8, 8>}, {transform_indices = @transform_4, window_bounds = array<i64: 1, 8, 8, 8>}, {transform_indices = @transform_5, window_bounds = array<i64: 1, 8, 8, 8>}, {transform_indices = @transform_6, window_bounds = array<i64: 1, 8, 8, 8>}, {transform_indices = @transform_7, window_bounds = array<i64: 1, 8, 8, 8>}, {transform_indices = @transform_8, window_bounds = array<i64: 1, 8, 8, 8>}, {pipeline_mode = #tpu.pipeline_mode<synchronous>, transform_indices = @transform_9, window_bounds = array<i64: 1, 8, 8, 8>}, {transform_indices = @transform_10, window_bounds = array<i64: 1, 8, 8, 8>}]} {
    %c0 = arith.constant 0 : index
    %c0_0 = arith.constant 0 : index
    %c0_1 = arith.constant 0 : index
    %c0_2 = arith.constant 0 : index
    %0 = vector.load %arg1[%c0, %c0_0, %c0_1, %c0_2] : memref<1x8x8x8xf32, #tpu.memory_space<vmem>>, vector<1x8x8x8xf32>
    %c0_3 = arith.constant 0 : index
    %c0_4 = arith.constant 0 : index
    %c0_5 = arith.constant 0 : index
    %c0_6 = arith.constant 0 : index
    %1 = vector.load %arg2[%c0_3, %c0_4, %c0_5, %c0_6] : memref<1x8x8x8xf32, #tpu.memory_space<vmem>>, vector<1x8x8x8xf32>
    %2 = arith.maximumf %0, %1 : vector<1x8x8x8xf32>
    %c0_7 = arith.constant 0 : index
    %c0_8 = arith.constant 0 : index
    %c0_9 = arith.constant 0 : index
    %c0_10 = arith.constant 0 : index
    %3 = vector.load %arg3[%c0_7, %c0_8, %c0_9, %c0_10] : memref<1x8x8x8xf32, #tpu.memory_space<vmem>>, vector<1x8x8x8xf32>
    %4 = arith.maximumf %2, %3 : vector<1x8x8x8xf32>
    %c0_11 = arith.constant 0 : index
    %c0_12 = arith.constant 0 : index
    %c0_13 = arith.constant 0 : index
    %c0_14 = arith.constant 0 : index
    %5 = vector.load %arg4[%c0_11, %c0_12, %c0_13, %c0_14] : memref<1x8x8x8xf32, #tpu.memory_space<vmem>>, vector<1x8x8x8xf32>
    %6 = arith.maximumf %4, %5 : vector<1x8x8x8xf32>
    %c0_15 = arith.constant 0 : index
    %c0_16 = arith.constant 0 : index
    %c0_17 = arith.constant 0 : index
    %c0_18 = arith.constant 0 : index
    %7 = vector.load %arg5[%c0_15, %c0_16, %c0_17, %c0_18] : memref<1x8x8x8xf32, #tpu.memory_space<vmem>>, vector<1x8x8x8xf32>
    %8 = arith.maximumf %6, %7 : vector<1x8x8x8xf32>
    %c0_19 = arith.constant 0 : index
    %c0_20 = arith.constant 0 : index
    %c0_21 = arith.constant 0 : index
    %c0_22 = arith.constant 0 : index
    %9 = vector.load %arg6[%c0_19, %c0_20, %c0_21, %c0_22] : memref<1x8x8x8xf32, #tpu.memory_space<vmem>>, vector<1x8x8x8xf32>
    %10 = arith.maximumf %8, %9 : vector<1x8x8x8xf32>
    %c0_23 = arith.constant 0 : index
    %c0_24 = arith.constant 0 : index
    %c0_25 = arith.constant 0 : index
    %c0_26 = arith.constant 0 : index
    %11 = vector.load %arg7[%c0_23, %c0_24, %c0_25, %c0_26] : memref<1x8x8x8xf32, #tpu.memory_space<vmem>>, vector<1x8x8x8xf32>
    %12 = arith.maximumf %10, %11 : vector<1x8x8x8xf32>
    %c0_27 = arith.constant 0 : index
    %c0_28 = arith.constant 0 : index
    %c0_29 = arith.constant 0 : index
    %c0_30 = arith.constant 0 : index
    %13 = vector.load %arg8[%c0_27, %c0_28, %c0_29, %c0_30] : memref<1x8x8x8xf32, #tpu.memory_space<vmem>>, vector<1x8x8x8xf32>
    %14 = arith.maximumf %12, %13 : vector<1x8x8x8xf32>
    %c0_31 = arith.constant 0 : index
    %c0_32 = arith.constant 0 : index
    %c0_33 = arith.constant 0 : index
    %c0_34 = arith.constant 0 : index
    %15 = vector.load %arg9[%c0_31, %c0_32, %c0_33, %c0_34] : memref<1x8x8x8xf32, #tpu.memory_space<vmem>>, vector<1x8x8x8xf32>
    %16 = arith.maximumf %14, %15 : vector<1x8x8x8xf32>
    %c0_35 = arith.constant 0 : index
    %c0_36 = arith.constant 0 : index
    %c0_37 = arith.constant 0 : index
    %c0_38 = arith.constant 0 : index
    %17 = vector.load %arg10[%c0_35, %c0_36, %c0_37, %c0_38] : memref<1x8x8x8xf32, #tpu.memory_space<vmem>>, vector<1x8x8x8xf32>
    %18 = arith.addf %16, %17 : vector<1x8x8x8xf32>
    %c0_39 = arith.constant 0 : index
    %c0_40 = arith.constant 0 : index
    %c0_41 = arith.constant 0 : index
    %c0_42 = arith.constant 0 : index
    %19 = vector.load %arg11[%c0_39, %c0_40, %c0_41, %c0_42] : memref<1x8x8x8xf32, #tpu.memory_space<vmem>>, vector<1x8x8x8xf32>
    tpu.vector_store %arg11[%c0_39, %c0_40, %c0_41, %c0_42], %18 {strides = array<i32>} : memref<1x8x8x8xf32, #tpu.memory_space<vmem>>, vector<1x8x8x8xf32>,
    return
  }
  func.func @transform_0(%arg0: i32) -> (i32, i32, i32, i32) {
    %c0_i32 = arith.constant 0 : i32
    %c0_i32_0 = arith.constant 0 : i32
    %c0_i32_1 = arith.constant 0 : i32
    %c0_i32_2 = arith.constant 0 : i32
    return %arg0, %c0_i32, %c0_i32_0, %c0_i32_1 : i32, i32, i32, i32
  }
  func.func @transform_1(%arg0: i32) -> (i32, i32, i32, i32) {
    %c0_i32 = arith.constant 0 : i32
    %c0_i32_0 = arith.constant 0 : i32
    %c0_i32_1 = arith.constant 0 : i32
    %c0_i32_2 = arith.constant 0 : i32
    return %arg0, %c0_i32, %c0_i32_0, %c0_i32_1 : i32, i32, i32, i32
  }
  func.func @transform_2(%arg0: i32) -> (i32, i32, i32, i32) {
    %c0_i32 = arith.constant 0 : i32
    %c0_i32_0 = arith.constant 0 : i32
    %c0_i32_1 = arith.constant 0 : i32
    %c0_i32_2 = arith.constant 0 : i32
    return %arg0, %c0_i32, %c0_i32_0, %c0_i32_1 : i32, i32, i32, i32
  }
  func.func @transform_3(%arg0: i32) -> (i32, i32, i32, i32) {
    %c0_i32 = arith.constant 0 : i32
    %c0_i32_0 = arith.constant 0 : i32
    %c0_i32_1 = arith.constant 0 : i32
    %c0_i32_2 = arith.constant 0 : i32
    return %arg0, %c0_i32, %c0_i32_0, %c0_i32_1 : i32, i32, i32, i32
  }
  func.func @transform_4(%arg0: i32) -> (i32, i32, i32, i32) {
    %c0_i32 = arith.constant 0 : i32
    %c0_i32_0 = arith.constant 0 : i32
    %c0_i32_1 = arith.constant 0 : i32
    %c0_i32_2 = arith.constant 0 : i32
    return %arg0, %c0_i32, %c0_i32_0, %c0_i32_1 : i32, i32, i32, i32
  }
  func.func @transform_5(%arg0: i32) -> (i32, i32, i32, i32) {
    %c0_i32 = arith.constant 0 : i32
    %c0_i32_0 = arith.constant 0 : i32
    %c0_i32_1 = arith.constant 0 : i32
    %c0_i32_2 = arith.constant 0 : i32
    return %arg0, %c0_i32, %c0_i32_0, %c0_i32_1 : i32, i32, i32, i32
  }
  func.func @transform_6(%arg0: i32) -> (i32, i32, i32, i32) {
    %c0_i32 = arith.constant 0 : i32
    %c0_i32_0 = arith.constant 0 : i32
    %c0_i32_1 = arith.constant 0 : i32
    %c0_i32_2 = arith.constant 0 : i32
    return %arg0, %c0_i32, %c0_i32_0, %c0_i32_1 : i32, i32, i32, i32
  }
  func.func @transform_7(%arg0: i32) -> (i32, i32, i32, i32) {
    %c0_i32 = arith.constant 0 : i32
    %c0_i32_0 = arith.constant 0 : i32
    %c0_i32_1 = arith.constant 0 : i32
    %c0_i32_2 = arith.constant 0 : i32
    return %arg0, %c0_i32, %c0_i32_0, %c0_i32_1 : i32, i32, i32, i32
  }
  func.func @transform_8(%arg0: i32) -> (i32, i32, i32, i32) {
    %c0_i32 = arith.constant 0 : i32
    %c0_i32_0 = arith.constant 0 : i32
    %c0_i32_1 = arith.constant 0 : i32
    %c0_i32_2 = arith.constant 0 : i32
    return %arg0, %c0_i32, %c0_i32_0, %c0_i32_1 : i32, i32, i32, i32
  }
  func.func @transform_9(%arg0: i32) -> (i32, i32, i32, i32) {
    %c0_i32 = arith.constant 0 : i32
    %c0_i32_0 = arith.constant 0 : i32
    %c0_i32_1 = arith.constant 0 : i32
    %c0_i32_2 = arith.constant 0 : i32
    %c0_i32_3 = arith.constant 0 : i32
    return %c0_i32, %c0_i32_0, %c0_i32_1, %c0_i32_2 : i32, i32, i32, i32
  }
  func.func @transform_10(%arg0: i32) -> (i32, i32, i32, i32) {
    %c0_i32 = arith.constant 0 : i32
    %c0_i32_0 = arith.constant 0 : i32
    %c0_i32_1 = arith.constant 0 : i32
    %c0_i32_2 = arith.constant 0 : i32
    return %arg0, %c0_i32, %c0_i32_0, %c0_i32_1 : i32, i32, i32, i32
  }
}

module attributes {stable_mosaic.version = 11 : i64} {
  func.func @_matmul_bn_act_kernel(%arg0: i32, %arg1: i32, %arg2: i32, %arg3: memref<128x8xbf16, #tpu.memory_space<vmem>>, %arg4: memref<8x128xbf16, #tpu.memory_space<vmem>>, %arg5: memref<1x128xf32, #tpu.memory_space<vmem>>, %arg6: memref<1x128xf32, #tpu.memory_space<vmem>>, %arg7: memref<128x128xf32, #tpu.memory_space<vmem>>, %arg8: memref<128x128xf32, #tpu.memory_space<vmem>>) attributes {dimension_semantics = [#tpu.dimension_semantics<parallel>, #tpu.dimension_semantics<parallel>, #tpu.dimension_semantics<arbitrary>], iteration_bounds = array<i64: 1, 1, 1>, scalar_prefetch = 0 : i64, scratch_operands = 1 : i64, tpu.core_type = #tpu.core_type<tc>, window_params = [{transform_indices = @transform_0, window_bounds = array<i64: 128, 8>}, {transform_indices = @transform_1, window_bounds = array<i64: 8, 128>}, {transform_indices = @transform_2, window_bounds = array<i64: 1, 128>}, {transform_indices = @transform_3, window_bounds = array<i64: 1, 128>}, {transform_indices = @transform_4, window_bounds = array<i64: 128, 128>}]} {
    %c0_i32 = arith.constant 0 : i32
    %0 = arith.cmpi eq, %arg2, %c0_i32 : i32
    %1 = arith.extui %0 : i1 to i32
    %c0_i32_0 = arith.constant 0 : i32
    %2 = arith.cmpi ne, %1, %c0_i32_0 : i32
    scf.if %2 {
      %cst_10 = arith.constant 0.000000e+00 : f32
      %12 = vector.broadcast %cst_10 : f32 to vector<128x128xf32>
      %c0_11 = arith.constant 0 : index
      %c0_12 = arith.constant 0 : index
      %13 = vector.load %arg8[%c0_11, %c0_12] : memref<128x128xf32, #tpu.memory_space<vmem>>, vector<128x128xf32>
      tpu.vector_store %arg8[%c0_11, %c0_12], %12 {strides = array<i32>} : memref<128x128xf32, #tpu.memory_space<vmem>>, vector<128x128xf32>,
    } else {
    }
    %c0 = arith.constant 0 : index
    %c0_1 = arith.constant 0 : index
    %3 = vector.load %arg8[%c0, %c0_1] : memref<128x128xf32, #tpu.memory_space<vmem>>, vector<128x128xf32>
    %c0_2 = arith.constant 0 : index
    %c0_3 = arith.constant 0 : index
    %4 = vector.load %arg3[%c0_2, %c0_3] : memref<128x8xbf16, #tpu.memory_space<vmem>>, vector<128x8xbf16>
    %c0_4 = arith.constant 0 : index
    %c0_5 = arith.constant 0 : index
    %5 = vector.load %arg4[%c0_4, %c0_5] : memref<8x128xbf16, #tpu.memory_space<vmem>>, vector<8x128xbf16>
    %cst = arith.constant dense<0.000000e+00> : vector<128x128xf32>
    %6 = tpu.matmul %4, %5, %cst {dimension_numbers = #tpu.dot_dimension_numbers<[1], [0], [0], [1], [0, 0, 1, 1], [], []>} : vector<128x8xbf16>, vector<8x128xbf16>, vector<128x128xf32> -> vector<128x128xf32>
    %7 = arith.addf %3, %6 : vector<128x128xf32>
    %c0_6 = arith.constant 0 : index
    %c0_7 = arith.constant 0 : index
    %8 = vector.load %arg8[%c0_6, %c0_7] : memref<128x128xf32, #tpu.memory_space<vmem>>, vector<128x128xf32>
    tpu.vector_store %arg8[%c0_6, %c0_7], %7 {strides = array<i32>} : memref<128x128xf32, #tpu.memory_space<vmem>>, vector<128x128xf32>,
    %c0_i32_8 = arith.constant 0 : i32
    %9 = arith.cmpi eq, %arg2, %c0_i32_8 : i32
    %10 = arith.extui %9 : i1 to i32
    %c0_i32_9 = arith.constant 0 : i32
    %11 = arith.cmpi ne, %10, %c0_i32_9 : i32
    scf.if %11 {
      %c0_10 = arith.constant 0 : index
      %c0_11 = arith.constant 0 : index
      %12 = vector.load %arg8[%c0_10, %c0_11] : memref<128x128xf32, #tpu.memory_space<vmem>>, vector<128x128xf32>
      %c0_12 = arith.constant 0 : index
      %c0_13 = arith.constant 0 : index
      %13 = vector.load %arg5[%c0_12, %c0_13] : memref<1x128xf32, #tpu.memory_space<vmem>>, vector<1x128xf32>
      %14 = vector.broadcast %13 : vector<1x128xf32> to vector<128x128xf32>
      %15 = arith.mulf %12, %14 : vector<128x128xf32>
      %c0_14 = arith.constant 0 : index
      %c0_15 = arith.constant 0 : index
      %16 = vector.load %arg6[%c0_14, %c0_15] : memref<1x128xf32, #tpu.memory_space<vmem>>, vector<1x128xf32>
      %17 = vector.broadcast %16 : vector<1x128xf32> to vector<128x128xf32>
      %18 = arith.addf %15, %17 : vector<128x128xf32>
      %c0_16 = arith.constant 0 : index
      %c0_17 = arith.constant 0 : index
      %19 = vector.load %arg7[%c0_16, %c0_17] : memref<128x128xf32, #tpu.memory_space<vmem>>, vector<128x128xf32>
      tpu.vector_store %arg7[%c0_16, %c0_17], %18 {strides = array<i32>} : memref<128x128xf32, #tpu.memory_space<vmem>>, vector<128x128xf32>,
    } else {
    }
    return
  }
  func.func @transform_0(%arg0: i32, %arg1: i32, %arg2: i32) -> (i32, i32) {
    %c0_i32 = arith.constant 0 : i32
    return %arg0, %arg2 : i32, i32
  }
  func.func @transform_1(%arg0: i32, %arg1: i32, %arg2: i32) -> (i32, i32) {
    %c0_i32 = arith.constant 0 : i32
    return %arg2, %arg1 : i32, i32
  }
  func.func @transform_2(%arg0: i32, %arg1: i32, %arg2: i32) -> (i32, i32) {
    %c0_i32 = arith.constant 0 : i32
    %c0_i32_0 = arith.constant 0 : i32
    return %c0_i32, %arg1 : i32, i32
  }
  func.func @transform_3(%arg0: i32, %arg1: i32, %arg2: i32) -> (i32, i32) {
    %c0_i32 = arith.constant 0 : i32
    %c0_i32_0 = arith.constant 0 : i32
    return %c0_i32, %arg1 : i32, i32
  }
  func.func @transform_4(%arg0: i32, %arg1: i32, %arg2: i32) -> (i32, i32) {
    %c0_i32 = arith.constant 0 : i32
    return %arg0, %arg1 : i32, i32
  }
}

module attributes {stable_mosaic.version = 11 : i64} {
  func.func @_seq_attn_kernel(%arg0: i32, %arg1: memref<16x8x8xf32, #tpu.memory_space<vmem>>, %arg2: memref<16x8x8xf32, #tpu.memory_space<vmem>>, %arg3: memref<16x8x8xf32, #tpu.memory_space<vmem>>, %arg4: memref<16x8x8xf32, #tpu.memory_space<vmem>>) attributes {dimension_semantics = [#tpu.dimension_semantics<parallel>], iteration_bounds = array<i64: 1>, scalar_prefetch = 0 : i64, scratch_operands = 0 : i64, tpu.core_type = #tpu.core_type<tc>, window_params = [{transform_indices = @transform_0, window_bounds = array<i64: 16, 8, 8>}, {transform_indices = @transform_1, window_bounds = array<i64: 16, 8, 8>}, {transform_indices = @transform_2, window_bounds = array<i64: 16, 8, 8>}, {transform_indices = @transform_3, window_bounds = array<i64: 16, 8, 8>}]} {
    %c0 = arith.constant 0 : index
    %c0_0 = arith.constant 0 : index
    %c0_1 = arith.constant 0 : index
    %0 = vector.load %arg1[%c0, %c0_0, %c0_1] : memref<16x8x8xf32, #tpu.memory_space<vmem>>, vector<16x8x8xf32>
    %c0_2 = arith.constant 0 : index
    %c0_3 = arith.constant 0 : index
    %c0_4 = arith.constant 0 : index
    %1 = vector.load %arg2[%c0_2, %c0_3, %c0_4] : memref<16x8x8xf32, #tpu.memory_space<vmem>>, vector<16x8x8xf32>
    %c0_5 = arith.constant 0 : index
    %c0_6 = arith.constant 0 : index
    %c0_7 = arith.constant 0 : index
    %2 = vector.load %arg3[%c0_5, %c0_6, %c0_7] : memref<16x8x8xf32, #tpu.memory_space<vmem>>, vector<16x8x8xf32>
    "tpu.trace_start"() <{level = 10 : i32, message = "nqc,nkc->nqk"}> : () -> ()
    %cst = arith.constant dense<0.000000e+00> : vector<16x8x8xf32>
    %3 = tpu.matmul %0, %1, %cst {dimension_numbers = #tpu.dot_dimension_numbers<[2], [2], [1], [1], [0, 0, 0, 1, 1, 1], [0], [0]>} : vector<16x8x8xf32>, vector<16x8x8xf32>, vector<16x8x8xf32> -> vector<16x8x8xf32>
    "tpu.trace_stop"() : () -> ()
    %cst_8 = arith.constant 0.353553385 : f32
    %4 = vector.broadcast %cst_8 : f32 to vector<16x8x8xf32>
    %5 = arith.mulf %3, %4 : vector<16x8x8xf32>
    %cst_9 = arith.constant dense<0xFF800000> : vector<16x8xf32>
    %6 = vector.multi_reduction <maximumf>, %5, %cst_9 [2] : vector<16x8x8xf32> to vector<16x8xf32>
    %cst_10 = arith.constant 0xFF800000 : f32
    %7 = vector.broadcast %cst_10 : f32 to vector<16x8xf32>
    %8 = arith.maximumf %7, %6 : vector<16x8xf32>
    %9 = vector.shape_cast %8 : vector<16x8xf32> to vector<16x8x1xf32>
    %10 = vector.broadcast %9 : vector<16x8x1xf32> to vector<16x8x8xf32>
    %11 = arith.subf %5, %10 : vector<16x8x8xf32>
    %12 = math.exp %11 : vector<16x8x8xf32>
    %cst_11 = arith.constant dense<0.000000e+00> : vector<16x8xf32>
    %13 = vector.multi_reduction <add>, %12, %cst_11 [2] : vector<16x8x8xf32> to vector<16x8xf32>
    %14 = vector.shape_cast %13 : vector<16x8xf32> to vector<16x8x1xf32>
    %15 = vector.broadcast %14 : vector<16x8x1xf32> to vector<16x8x8xf32>
    %16 = arith.divf %12, %15 : vector<16x8x8xf32>
    "tpu.trace_start"() <{level = 10 : i32, message = "nqk,nkc->nqc"}> : () -> ()
    %cst_12 = arith.constant dense<0.000000e+00> : vector<16x8x8xf32>
    %17 = tpu.matmul %16, %2, %cst_12 {dimension_numbers = #tpu.dot_dimension_numbers<[2], [1], [1], [2], [0, 0, 0, 1, 1, 2], [0], [0]>} : vector<16x8x8xf32>, vector<16x8x8xf32>, vector<16x8x8xf32> -> vector<16x8x8xf32>
    "tpu.trace_stop"() : () -> ()
    %c0_13 = arith.constant 0 : index
    %c0_14 = arith.constant 0 : index
    %c0_15 = arith.constant 0 : index
    %18 = vector.load %arg4[%c0_13, %c0_14, %c0_15] : memref<16x8x8xf32, #tpu.memory_space<vmem>>, vector<16x8x8xf32>
    tpu.vector_store %arg4[%c0_13, %c0_14, %c0_15], %17 {strides = array<i32>} : memref<16x8x8xf32, #tpu.memory_space<vmem>>, vector<16x8x8xf32>,
    return
  }
  func.func @transform_0(%arg0: i32) -> (i32, i32, i32) {
    %c0_i32 = arith.constant 0 : i32
    %c0_i32_0 = arith.constant 0 : i32
    %c0_i32_1 = arith.constant 0 : i32
    return %arg0, %c0_i32, %c0_i32_0 : i32, i32, i32
  }
  func.func @transform_1(%arg0: i32) -> (i32, i32, i32) {
    %c0_i32 = arith.constant 0 : i32
    %c0_i32_0 = arith.constant 0 : i32
    %c0_i32_1 = arith.constant 0 : i32
    return %arg0, %c0_i32, %c0_i32_0 : i32, i32, i32
  }
  func.func @transform_2(%arg0: i32) -> (i32, i32, i32) {
    %c0_i32 = arith.constant 0 : i32
    %c0_i32_0 = arith.constant 0 : i32
    %c0_i32_1 = arith.constant 0 : i32
    return %arg0, %c0_i32, %c0_i32_0 : i32, i32, i32
  }
  func.func @transform_3(%arg0: i32) -> (i32, i32, i32) {
    %c0_i32 = arith.constant 0 : i32
    %c0_i32_0 = arith.constant 0 : i32
    %c0_i32_1 = arith.constant 0 : i32
    return %arg0, %c0_i32, %c0_i32_0 : i32, i32, i32
  }
}

module attributes {stable_mosaic.version = 11 : i64} {
  func.func @_matmul_bn_act_kernel(%arg0: i32, %arg1: i32, %arg2: i32, %arg3: memref<128x16xbf16, #tpu.memory_space<vmem>>, %arg4: memref<16x128xbf16, #tpu.memory_space<vmem>>, %arg5: memref<1x128xf32, #tpu.memory_space<vmem>>, %arg6: memref<1x128xf32, #tpu.memory_space<vmem>>, %arg7: memref<128x128xf32, #tpu.memory_space<vmem>>, %arg8: memref<128x128xf32, #tpu.memory_space<vmem>>) attributes {dimension_semantics = [#tpu.dimension_semantics<parallel>, #tpu.dimension_semantics<parallel>, #tpu.dimension_semantics<arbitrary>], iteration_bounds = array<i64: 1, 1, 1>, scalar_prefetch = 0 : i64, scratch_operands = 1 : i64, tpu.core_type = #tpu.core_type<tc>, window_params = [{transform_indices = @transform_0, window_bounds = array<i64: 128, 16>}, {transform_indices = @transform_1, window_bounds = array<i64: 16, 128>}, {transform_indices = @transform_2, window_bounds = array<i64: 1, 128>}, {transform_indices = @transform_3, window_bounds = array<i64: 1, 128>}, {transform_indices = @transform_4, window_bounds = array<i64: 128, 128>}]} {
    %c0_i32 = arith.constant 0 : i32
    %0 = arith.cmpi eq, %arg2, %c0_i32 : i32
    %1 = arith.extui %0 : i1 to i32
    %c0_i32_0 = arith.constant 0 : i32
    %2 = arith.cmpi ne, %1, %c0_i32_0 : i32
    scf.if %2 {
      %cst_10 = arith.constant 0.000000e+00 : f32
      %12 = vector.broadcast %cst_10 : f32 to vector<128x128xf32>
      %c0_11 = arith.constant 0 : index
      %c0_12 = arith.constant 0 : index
      %13 = vector.load %arg8[%c0_11, %c0_12] : memref<128x128xf32, #tpu.memory_space<vmem>>, vector<128x128xf32>
      tpu.vector_store %arg8[%c0_11, %c0_12], %12 {strides = array<i32>} : memref<128x128xf32, #tpu.memory_space<vmem>>, vector<128x128xf32>,
    } else {
    }
    %c0 = arith.constant 0 : index
    %c0_1 = arith.constant 0 : index
    %3 = vector.load %arg8[%c0, %c0_1] : memref<128x128xf32, #tpu.memory_space<vmem>>, vector<128x128xf32>
    %c0_2 = arith.constant 0 : index
    %c0_3 = arith.constant 0 : index
    %4 = vector.load %arg3[%c0_2, %c0_3] : memref<128x16xbf16, #tpu.memory_space<vmem>>, vector<128x16xbf16>
    %c0_4 = arith.constant 0 : index
    %c0_5 = arith.constant 0 : index
    %5 = vector.load %arg4[%c0_4, %c0_5] : memref<16x128xbf16, #tpu.memory_space<vmem>>, vector<16x128xbf16>
    %cst = arith.constant dense<0.000000e+00> : vector<128x128xf32>
    %6 = tpu.matmul %4, %5, %cst {dimension_numbers = #tpu.dot_dimension_numbers<[1], [0], [0], [1], [0, 0, 1, 1], [], []>} : vector<128x16xbf16>, vector<16x128xbf16>, vector<128x128xf32> -> vector<128x128xf32>
    %7 = arith.addf %3, %6 : vector<128x128xf32>
    %c0_6 = arith.constant 0 : index
    %c0_7 = arith.constant 0 : index
    %8 = vector.load %arg8[%c0_6, %c0_7] : memref<128x128xf32, #tpu.memory_space<vmem>>, vector<128x128xf32>
    tpu.vector_store %arg8[%c0_6, %c0_7], %7 {strides = array<i32>} : memref<128x128xf32, #tpu.memory_space<vmem>>, vector<128x128xf32>,
    %c0_i32_8 = arith.constant 0 : i32
    %9 = arith.cmpi eq, %arg2, %c0_i32_8 : i32
    %10 = arith.extui %9 : i1 to i32
    %c0_i32_9 = arith.constant 0 : i32
    %11 = arith.cmpi ne, %10, %c0_i32_9 : i32
    scf.if %11 {
      %c0_10 = arith.constant 0 : index
      %c0_11 = arith.constant 0 : index
      %12 = vector.load %arg8[%c0_10, %c0_11] : memref<128x128xf32, #tpu.memory_space<vmem>>, vector<128x128xf32>
      %c0_12 = arith.constant 0 : index
      %c0_13 = arith.constant 0 : index
      %13 = vector.load %arg5[%c0_12, %c0_13] : memref<1x128xf32, #tpu.memory_space<vmem>>, vector<1x128xf32>
      %14 = vector.broadcast %13 : vector<1x128xf32> to vector<128x128xf32>
      %15 = arith.mulf %12, %14 : vector<128x128xf32>
      %c0_14 = arith.constant 0 : index
      %c0_15 = arith.constant 0 : index
      %16 = vector.load %arg6[%c0_14, %c0_15] : memref<1x128xf32, #tpu.memory_space<vmem>>, vector<1x128xf32>
      %17 = vector.broadcast %16 : vector<1x128xf32> to vector<128x128xf32>
      %18 = arith.addf %15, %17 : vector<128x128xf32>
      %cst_16 = arith.constant 0.000000e+00 : f32
      %19 = vector.broadcast %cst_16 : f32 to vector<128x128xf32>
      %20 = arith.maximumf %18, %19 : vector<128x128xf32>
      %c0_17 = arith.constant 0 : index
      %c0_18 = arith.constant 0 : index
      %21 = vector.load %arg7[%c0_17, %c0_18] : memref<128x128xf32, #tpu.memory_space<vmem>>, vector<128x128xf32>
      tpu.vector_store %arg7[%c0_17, %c0_18], %20 {strides = array<i32>} : memref<128x128xf32, #tpu.memory_space<vmem>>, vector<128x128xf32>,
    } else {
    }
    return
  }
  func.func @transform_0(%arg0: i32, %arg1: i32, %arg2: i32) -> (i32, i32) {
    %c0_i32 = arith.constant 0 : i32
    return %arg0, %arg2 : i32, i32
  }
  func.func @transform_1(%arg0: i32, %arg1: i32, %arg2: i32) -> (i32, i32) {
    %c0_i32 = arith.constant 0 : i32
    return %arg2, %arg1 : i32, i32
  }
  func.func @transform_2(%arg0: i32, %arg1: i32, %arg2: i32) -> (i32, i32) {
    %c0_i32 = arith.constant 0 : i32
    %c0_i32_0 = arith.constant 0 : i32
    return %c0_i32, %arg1 : i32, i32
  }
  func.func @transform_3(%arg0: i32, %arg1: i32, %arg2: i32) -> (i32, i32) {
    %c0_i32 = arith.constant 0 : i32
    %c0_i32_0 = arith.constant 0 : i32
    return %c0_i32, %arg1 : i32, i32
  }
  func.func @transform_4(%arg0: i32, %arg1: i32, %arg2: i32) -> (i32, i32) {
    %c0_i32 = arith.constant 0 : i32
    return %arg0, %arg1 : i32, i32
  }
}

module attributes {stable_mosaic.version = 11 : i64} {
  func.func @_matmul_bn_act_kernel(%arg0: i32, %arg1: i32, %arg2: i32, %arg3: memref<128x72xbf16, #tpu.memory_space<vmem>>, %arg4: memref<72x128xbf16, #tpu.memory_space<vmem>>, %arg5: memref<1x128xf32, #tpu.memory_space<vmem>>, %arg6: memref<1x128xf32, #tpu.memory_space<vmem>>, %arg7: memref<128x128xf32, #tpu.memory_space<vmem>>, %arg8: memref<128x128xf32, #tpu.memory_space<vmem>>, %arg9: memref<128x128xf32, #tpu.memory_space<vmem>>) attributes {dimension_semantics = [#tpu.dimension_semantics<parallel>, #tpu.dimension_semantics<parallel>, #tpu.dimension_semantics<arbitrary>], iteration_bounds = array<i64: 1, 1, 1>, scalar_prefetch = 0 : i64, scratch_operands = 1 : i64, tpu.core_type = #tpu.core_type<tc>, window_params = [{transform_indices = @transform_0, window_bounds = array<i64: 128, 72>}, {transform_indices = @transform_1, window_bounds = array<i64: 72, 128>}, {transform_indices = @transform_2, window_bounds = array<i64: 1, 128>}, {transform_indices = @transform_3, window_bounds = array<i64: 1, 128>}, {transform_indices = @transform_4, window_bounds = array<i64: 128, 128>}, {transform_indices = @transform_5, window_bounds = array<i64: 128, 128>}]} {
    %c0_i32 = arith.constant 0 : i32
    %0 = arith.cmpi eq, %arg2, %c0_i32 : i32
    %1 = arith.extui %0 : i1 to i32
    %c0_i32_0 = arith.constant 0 : i32
    %2 = arith.cmpi ne, %1, %c0_i32_0 : i32
    scf.if %2 {
      %cst_10 = arith.constant 0.000000e+00 : f32
      %12 = vector.broadcast %cst_10 : f32 to vector<128x128xf32>
      %c0_11 = arith.constant 0 : index
      %c0_12 = arith.constant 0 : index
      %13 = vector.load %arg9[%c0_11, %c0_12] : memref<128x128xf32, #tpu.memory_space<vmem>>, vector<128x128xf32>
      tpu.vector_store %arg9[%c0_11, %c0_12], %12 {strides = array<i32>} : memref<128x128xf32, #tpu.memory_space<vmem>>, vector<128x128xf32>,
    } else {
    }
    %c0 = arith.constant 0 : index
    %c0_1 = arith.constant 0 : index
    %3 = vector.load %arg9[%c0, %c0_1] : memref<128x128xf32, #tpu.memory_space<vmem>>, vector<128x128xf32>
    %c0_2 = arith.constant 0 : index
    %c0_3 = arith.constant 0 : index
    %4 = vector.load %arg3[%c0_2, %c0_3] : memref<128x72xbf16, #tpu.memory_space<vmem>>, vector<128x72xbf16>
    %c0_4 = arith.constant 0 : index
    %c0_5 = arith.constant 0 : index
    %5 = vector.load %arg4[%c0_4, %c0_5] : memref<72x128xbf16, #tpu.memory_space<vmem>>, vector<72x128xbf16>
    %cst = arith.constant dense<0.000000e+00> : vector<128x128xf32>
    %6 = tpu.matmul %4, %5, %cst {dimension_numbers = #tpu.dot_dimension_numbers<[1], [0], [0], [1], [0, 0, 1, 1], [], []>} : vector<128x72xbf16>, vector<72x128xbf16>, vector<128x128xf32> -> vector<128x128xf32>
    %7 = arith.addf %3, %6 : vector<128x128xf32>
    %c0_6 = arith.constant 0 : index
    %c0_7 = arith.constant 0 : index
    %8 = vector.load %arg9[%c0_6, %c0_7] : memref<128x128xf32, #tpu.memory_space<vmem>>, vector<128x128xf32>
    tpu.vector_store %arg9[%c0_6, %c0_7], %7 {strides = array<i32>} : memref<128x128xf32, #tpu.memory_space<vmem>>, vector<128x128xf32>,
    %c0_i32_8 = arith.constant 0 : i32
    %9 = arith.cmpi eq, %arg2, %c0_i32_8 : i32
    %10 = arith.extui %9 : i1 to i32
    %c0_i32_9 = arith.constant 0 : i32
    %11 = arith.cmpi ne, %10, %c0_i32_9 : i32
    scf.if %11 {
      %c0_10 = arith.constant 0 : index
      %c0_11 = arith.constant 0 : index
      %12 = vector.load %arg9[%c0_10, %c0_11] : memref<128x128xf32, #tpu.memory_space<vmem>>, vector<128x128xf32>
      %c0_12 = arith.constant 0 : index
      %c0_13 = arith.constant 0 : index
      %13 = vector.load %arg5[%c0_12, %c0_13] : memref<1x128xf32, #tpu.memory_space<vmem>>, vector<1x128xf32>
      %14 = vector.broadcast %13 : vector<1x128xf32> to vector<128x128xf32>
      %15 = arith.mulf %12, %14 : vector<128x128xf32>
      %c0_14 = arith.constant 0 : index
      %c0_15 = arith.constant 0 : index
      %16 = vector.load %arg6[%c0_14, %c0_15] : memref<1x128xf32, #tpu.memory_space<vmem>>, vector<1x128xf32>
      %17 = vector.broadcast %16 : vector<1x128xf32> to vector<128x128xf32>
      %18 = arith.addf %15, %17 : vector<128x128xf32>
      %c0_16 = arith.constant 0 : index
      %c0_17 = arith.constant 0 : index
      %19 = vector.load %arg7[%c0_16, %c0_17] : memref<128x128xf32, #tpu.memory_space<vmem>>, vector<128x128xf32>
      %20 = arith.addf %18, %19 : vector<128x128xf32>
      %cst_18 = arith.constant 0.000000e+00 : f32
      %21 = vector.broadcast %cst_18 : f32 to vector<128x128xf32>
      %22 = arith.maximumf %20, %21 : vector<128x128xf32>
      %c0_19 = arith.constant 0 : index
      %c0_20 = arith.constant 0 : index
      %23 = vector.load %arg8[%c0_19, %c0_20] : memref<128x128xf32, #tpu.memory_space<vmem>>, vector<128x128xf32>
      tpu.vector_store %arg8[%c0_19, %c0_20], %22 {strides = array<i32>} : memref<128x128xf32, #tpu.memory_space<vmem>>, vector<128x128xf32>,
    } else {
    }
    return
  }
  func.func @transform_0(%arg0: i32, %arg1: i32, %arg2: i32) -> (i32, i32) {
    %c0_i32 = arith.constant 0 : i32
    return %arg0, %arg2 : i32, i32
  }
  func.func @transform_1(%arg0: i32, %arg1: i32, %arg2: i32) -> (i32, i32) {
    %c0_i32 = arith.constant 0 : i32
    return %arg2, %arg1 : i32, i32
  }
  func.func @transform_2(%arg0: i32, %arg1: i32, %arg2: i32) -> (i32, i32) {
    %c0_i32 = arith.constant 0 : i32
    %c0_i32_0 = arith.constant 0 : i32
    return %c0_i32, %arg1 : i32, i32
  }
  func.func @transform_3(%arg0: i32, %arg1: i32, %arg2: i32) -> (i32, i32) {
    %c0_i32 = arith.constant 0 : i32
    %c0_i32_0 = arith.constant 0 : i32
    return %c0_i32, %arg1 : i32, i32
  }
  func.func @transform_4(%arg0: i32, %arg1: i32, %arg2: i32) -> (i32, i32) {
    %c0_i32 = arith.constant 0 : i32
    return %arg0, %arg1 : i32, i32
  }
  func.func @transform_5(%arg0: i32, %arg1: i32, %arg2: i32) -> (i32, i32) {
    %c0_i32 = arith.constant 0 : i32
    return %arg0, %arg1 : i32, i32
  }
}

module attributes {stable_mosaic.version = 11 : i64} {
  func.func @_matmul_bn_act_kernel(%arg0: i32, %arg1: i32, %arg2: i32, %arg3: memref<32x72xbf16, #tpu.memory_space<vmem>>, %arg4: memref<72x128xbf16, #tpu.memory_space<vmem>>, %arg5: memref<1x128xf32, #tpu.memory_space<vmem>>, %arg6: memref<1x128xf32, #tpu.memory_space<vmem>>, %arg7: memref<32x128xf32, #tpu.memory_space<vmem>>, %arg8: memref<32x128xf32, #tpu.memory_space<vmem>>, %arg9: memref<32x128xf32, #tpu.memory_space<vmem>>) attributes {dimension_semantics = [#tpu.dimension_semantics<parallel>, #tpu.dimension_semantics<parallel>, #tpu.dimension_semantics<arbitrary>], iteration_bounds = array<i64: 1, 1, 1>, scalar_prefetch = 0 : i64, scratch_operands = 1 : i64, tpu.core_type = #tpu.core_type<tc>, window_params = [{transform_indices = @transform_0, window_bounds = array<i64: 32, 72>}, {transform_indices = @transform_1, window_bounds = array<i64: 72, 128>}, {transform_indices = @transform_2, window_bounds = array<i64: 1, 128>}, {transform_indices = @transform_3, window_bounds = array<i64: 1, 128>}, {transform_indices = @transform_4, window_bounds = array<i64: 32, 128>}, {transform_indices = @transform_5, window_bounds = array<i64: 32, 128>}]} {
    %c0_i32 = arith.constant 0 : i32
    %0 = arith.cmpi eq, %arg2, %c0_i32 : i32
    %1 = arith.extui %0 : i1 to i32
    %c0_i32_0 = arith.constant 0 : i32
    %2 = arith.cmpi ne, %1, %c0_i32_0 : i32
    scf.if %2 {
      %cst_10 = arith.constant 0.000000e+00 : f32
      %12 = vector.broadcast %cst_10 : f32 to vector<32x128xf32>
      %c0_11 = arith.constant 0 : index
      %c0_12 = arith.constant 0 : index
      %13 = vector.load %arg9[%c0_11, %c0_12] : memref<32x128xf32, #tpu.memory_space<vmem>>, vector<32x128xf32>
      tpu.vector_store %arg9[%c0_11, %c0_12], %12 {strides = array<i32>} : memref<32x128xf32, #tpu.memory_space<vmem>>, vector<32x128xf32>,
    } else {
    }
    %c0 = arith.constant 0 : index
    %c0_1 = arith.constant 0 : index
    %3 = vector.load %arg9[%c0, %c0_1] : memref<32x128xf32, #tpu.memory_space<vmem>>, vector<32x128xf32>
    %c0_2 = arith.constant 0 : index
    %c0_3 = arith.constant 0 : index
    %4 = vector.load %arg3[%c0_2, %c0_3] : memref<32x72xbf16, #tpu.memory_space<vmem>>, vector<32x72xbf16>
    %c0_4 = arith.constant 0 : index
    %c0_5 = arith.constant 0 : index
    %5 = vector.load %arg4[%c0_4, %c0_5] : memref<72x128xbf16, #tpu.memory_space<vmem>>, vector<72x128xbf16>
    %cst = arith.constant dense<0.000000e+00> : vector<32x128xf32>
    %6 = tpu.matmul %4, %5, %cst {dimension_numbers = #tpu.dot_dimension_numbers<[1], [0], [0], [1], [0, 0, 1, 1], [], []>} : vector<32x72xbf16>, vector<72x128xbf16>, vector<32x128xf32> -> vector<32x128xf32>
    %7 = arith.addf %3, %6 : vector<32x128xf32>
    %c0_6 = arith.constant 0 : index
    %c0_7 = arith.constant 0 : index
    %8 = vector.load %arg9[%c0_6, %c0_7] : memref<32x128xf32, #tpu.memory_space<vmem>>, vector<32x128xf32>
    tpu.vector_store %arg9[%c0_6, %c0_7], %7 {strides = array<i32>} : memref<32x128xf32, #tpu.memory_space<vmem>>, vector<32x128xf32>,
    %c0_i32_8 = arith.constant 0 : i32
    %9 = arith.cmpi eq, %arg2, %c0_i32_8 : i32
    %10 = arith.extui %9 : i1 to i32
    %c0_i32_9 = arith.constant 0 : i32
    %11 = arith.cmpi ne, %10, %c0_i32_9 : i32
    scf.if %11 {
      %c0_10 = arith.constant 0 : index
      %c0_11 = arith.constant 0 : index
      %12 = vector.load %arg9[%c0_10, %c0_11] : memref<32x128xf32, #tpu.memory_space<vmem>>, vector<32x128xf32>
      %c0_12 = arith.constant 0 : index
      %c0_13 = arith.constant 0 : index
      %13 = vector.load %arg5[%c0_12, %c0_13] : memref<1x128xf32, #tpu.memory_space<vmem>>, vector<1x128xf32>
      %14 = vector.broadcast %13 : vector<1x128xf32> to vector<32x128xf32>
      %15 = arith.mulf %12, %14 : vector<32x128xf32>
      %c0_14 = arith.constant 0 : index
      %c0_15 = arith.constant 0 : index
      %16 = vector.load %arg6[%c0_14, %c0_15] : memref<1x128xf32, #tpu.memory_space<vmem>>, vector<1x128xf32>
      %17 = vector.broadcast %16 : vector<1x128xf32> to vector<32x128xf32>
      %18 = arith.addf %15, %17 : vector<32x128xf32>
      %c0_16 = arith.constant 0 : index
      %c0_17 = arith.constant 0 : index
      %19 = vector.load %arg7[%c0_16, %c0_17] : memref<32x128xf32, #tpu.memory_space<vmem>>, vector<32x128xf32>
      %20 = arith.addf %18, %19 : vector<32x128xf32>
      %cst_18 = arith.constant 0.000000e+00 : f32
      %21 = vector.broadcast %cst_18 : f32 to vector<32x128xf32>
      %22 = arith.maximumf %20, %21 : vector<32x128xf32>
      %c0_19 = arith.constant 0 : index
      %c0_20 = arith.constant 0 : index
      %23 = vector.load %arg8[%c0_19, %c0_20] : memref<32x128xf32, #tpu.memory_space<vmem>>, vector<32x128xf32>
      tpu.vector_store %arg8[%c0_19, %c0_20], %22 {strides = array<i32>} : memref<32x128xf32, #tpu.memory_space<vmem>>, vector<32x128xf32>,
    } else {
    }
    return
  }
  func.func @transform_0(%arg0: i32, %arg1: i32, %arg2: i32) -> (i32, i32) {
    %c0_i32 = arith.constant 0 : i32
    return %arg0, %arg2 : i32, i32
  }
  func.func @transform_1(%arg0: i32, %arg1: i32, %arg2: i32) -> (i32, i32) {
    %c0_i32 = arith.constant 0 : i32
    return %arg2, %arg1 : i32, i32
  }
  func.func @transform_2(%arg0: i32, %arg1: i32, %arg2: i32) -> (i32, i32) {
    %c0_i32 = arith.constant 0 : i32
    %c0_i32_0 = arith.constant 0 : i32
    return %c0_i32, %arg1 : i32, i32
  }
  func.func @transform_3(%arg0: i32, %arg1: i32, %arg2: i32) -> (i32, i32) {
    %c0_i32 = arith.constant 0 : i32
    %c0_i32_0 = arith.constant 0 : i32
    return %c0_i32, %arg1 : i32, i32
  }
  func.func @transform_4(%arg0: i32, %arg1: i32, %arg2: i32) -> (i32, i32) {
    %c0_i32 = arith.constant 0 : i32
    return %arg0, %arg1 : i32, i32
  }
  func.func @transform_5(%arg0: i32, %arg1: i32, %arg2: i32) -> (i32, i32) {
    %c0_i32 = arith.constant 0 : i32
    return %arg0, %arg1 : i32, i32
  }
}

module attributes {stable_mosaic.version = 11 : i64} {
  func.func @_seq_attn_kernel(%arg0: i32, %arg1: memref<8x4x16xf32, #tpu.memory_space<vmem>>, %arg2: memref<8x4x16xf32, #tpu.memory_space<vmem>>, %arg3: memref<8x4x16xf32, #tpu.memory_space<vmem>>, %arg4: memref<8x4x16xf32, #tpu.memory_space<vmem>>) attributes {dimension_semantics = [#tpu.dimension_semantics<parallel>], iteration_bounds = array<i64: 1>, scalar_prefetch = 0 : i64, scratch_operands = 0 : i64, tpu.core_type = #tpu.core_type<tc>, window_params = [{transform_indices = @transform_0, window_bounds = array<i64: 8, 4, 16>}, {transform_indices = @transform_1, window_bounds = array<i64: 8, 4, 16>}, {transform_indices = @transform_2, window_bounds = array<i64: 8, 4, 16>}, {transform_indices = @transform_3, window_bounds = array<i64: 8, 4, 16>}]} {
    %c0 = arith.constant 0 : index
    %c0_0 = arith.constant 0 : index
    %c0_1 = arith.constant 0 : index
    %0 = vector.load %arg1[%c0, %c0_0, %c0_1] : memref<8x4x16xf32, #tpu.memory_space<vmem>>, vector<8x4x16xf32>
    %c0_2 = arith.constant 0 : index
    %c0_3 = arith.constant 0 : index
    %c0_4 = arith.constant 0 : index
    %1 = vector.load %arg2[%c0_2, %c0_3, %c0_4] : memref<8x4x16xf32, #tpu.memory_space<vmem>>, vector<8x4x16xf32>
    %c0_5 = arith.constant 0 : index
    %c0_6 = arith.constant 0 : index
    %c0_7 = arith.constant 0 : index
    %2 = vector.load %arg3[%c0_5, %c0_6, %c0_7] : memref<8x4x16xf32, #tpu.memory_space<vmem>>, vector<8x4x16xf32>
    "tpu.trace_start"() <{level = 10 : i32, message = "nqc,nkc->nqk"}> : () -> ()
    %cst = arith.constant dense<0.000000e+00> : vector<8x4x4xf32>
    %3 = tpu.matmul %0, %1, %cst {dimension_numbers = #tpu.dot_dimension_numbers<[2], [2], [1], [1], [0, 0, 0, 1, 1, 1], [0], [0]>} : vector<8x4x16xf32>, vector<8x4x16xf32>, vector<8x4x4xf32> -> vector<8x4x4xf32>
    "tpu.trace_stop"() : () -> ()
    %cst_8 = arith.constant 2.500000e-01 : f32
    %4 = vector.broadcast %cst_8 : f32 to vector<8x4x4xf32>
    %5 = arith.mulf %3, %4 : vector<8x4x4xf32>
    %cst_9 = arith.constant dense<0xFF800000> : vector<8x4xf32>
    %6 = vector.multi_reduction <maximumf>, %5, %cst_9 [2] : vector<8x4x4xf32> to vector<8x4xf32>
    %cst_10 = arith.constant 0xFF800000 : f32
    %7 = vector.broadcast %cst_10 : f32 to vector<8x4xf32>
    %8 = arith.maximumf %7, %6 : vector<8x4xf32>
    %9 = vector.shape_cast %8 : vector<8x4xf32> to vector<8x4x1xf32>
    %10 = vector.broadcast %9 : vector<8x4x1xf32> to vector<8x4x4xf32>
    %11 = arith.subf %5, %10 : vector<8x4x4xf32>
    %12 = math.exp %11 : vector<8x4x4xf32>
    %cst_11 = arith.constant dense<0.000000e+00> : vector<8x4xf32>
    %13 = vector.multi_reduction <add>, %12, %cst_11 [2] : vector<8x4x4xf32> to vector<8x4xf32>
    %14 = vector.shape_cast %13 : vector<8x4xf32> to vector<8x4x1xf32>
    %15 = vector.broadcast %14 : vector<8x4x1xf32> to vector<8x4x4xf32>
    %16 = arith.divf %12, %15 : vector<8x4x4xf32>
    "tpu.trace_start"() <{level = 10 : i32, message = "nqk,nkc->nqc"}> : () -> ()
    %cst_12 = arith.constant dense<0.000000e+00> : vector<8x4x16xf32>
    %17 = tpu.matmul %16, %2, %cst_12 {dimension_numbers = #tpu.dot_dimension_numbers<[2], [1], [1], [2], [0, 0, 0, 1, 1, 2], [0], [0]>} : vector<8x4x4xf32>, vector<8x4x16xf32>, vector<8x4x16xf32> -> vector<8x4x16xf32>
    "tpu.trace_stop"() : () -> ()
    %c0_13 = arith.constant 0 : index
    %c0_14 = arith.constant 0 : index
    %c0_15 = arith.constant 0 : index
    %18 = vector.load %arg4[%c0_13, %c0_14, %c0_15] : memref<8x4x16xf32, #tpu.memory_space<vmem>>, vector<8x4x16xf32>
    tpu.vector_store %arg4[%c0_13, %c0_14, %c0_15], %17 {strides = array<i32>} : memref<8x4x16xf32, #tpu.memory_space<vmem>>, vector<8x4x16xf32>,
    return
  }
  func.func @transform_0(%arg0: i32) -> (i32, i32, i32) {
    %c0_i32 = arith.constant 0 : i32
    %c0_i32_0 = arith.constant 0 : i32
    %c0_i32_1 = arith.constant 0 : i32
    return %arg0, %c0_i32, %c0_i32_0 : i32, i32, i32
  }
  func.func @transform_1(%arg0: i32) -> (i32, i32, i32) {
    %c0_i32 = arith.constant 0 : i32
    %c0_i32_0 = arith.constant 0 : i32
    %c0_i32_1 = arith.constant 0 : i32
    return %arg0, %c0_i32, %c0_i32_0 : i32, i32, i32
  }
  func.func @transform_2(%arg0: i32) -> (i32, i32, i32) {
    %c0_i32 = arith.constant 0 : i32
    %c0_i32_0 = arith.constant 0 : i32
    %c0_i32_1 = arith.constant 0 : i32
    return %arg0, %c0_i32, %c0_i32_0 : i32, i32, i32
  }
  func.func @transform_3(%arg0: i32) -> (i32, i32, i32) {
    %c0_i32 = arith.constant 0 : i32
    %c0_i32_0 = arith.constant 0 : i32
    %c0_i32_1 = arith.constant 0 : i32
    return %arg0, %c0_i32, %c0_i32_0 : i32, i32, i32
  }
}

module attributes {stable_mosaic.version = 11 : i64} {
  func.func @_matmul_bn_act_kernel(%arg0: i32, %arg1: i32, %arg2: i32, %arg3: memref<32x8xbf16, #tpu.memory_space<vmem>>, %arg4: memref<8x128xbf16, #tpu.memory_space<vmem>>, %arg5: memref<1x128xf32, #tpu.memory_space<vmem>>, %arg6: memref<1x128xf32, #tpu.memory_space<vmem>>, %arg7: memref<32x128xf32, #tpu.memory_space<vmem>>, %arg8: memref<32x128xf32, #tpu.memory_space<vmem>>) attributes {dimension_semantics = [#tpu.dimension_semantics<parallel>, #tpu.dimension_semantics<parallel>, #tpu.dimension_semantics<arbitrary>], iteration_bounds = array<i64: 1, 1, 1>, scalar_prefetch = 0 : i64, scratch_operands = 1 : i64, tpu.core_type = #tpu.core_type<tc>, window_params = [{transform_indices = @transform_0, window_bounds = array<i64: 32, 8>}, {transform_indices = @transform_1, window_bounds = array<i64: 8, 128>}, {transform_indices = @transform_2, window_bounds = array<i64: 1, 128>}, {transform_indices = @transform_3, window_bounds = array<i64: 1, 128>}, {transform_indices = @transform_4, window_bounds = array<i64: 32, 128>}]} {
    %c0_i32 = arith.constant 0 : i32
    %0 = arith.cmpi eq, %arg2, %c0_i32 : i32
    %1 = arith.extui %0 : i1 to i32
    %c0_i32_0 = arith.constant 0 : i32
    %2 = arith.cmpi ne, %1, %c0_i32_0 : i32
    scf.if %2 {
      %cst_10 = arith.constant 0.000000e+00 : f32
      %12 = vector.broadcast %cst_10 : f32 to vector<32x128xf32>
      %c0_11 = arith.constant 0 : index
      %c0_12 = arith.constant 0 : index
      %13 = vector.load %arg8[%c0_11, %c0_12] : memref<32x128xf32, #tpu.memory_space<vmem>>, vector<32x128xf32>
      tpu.vector_store %arg8[%c0_11, %c0_12], %12 {strides = array<i32>} : memref<32x128xf32, #tpu.memory_space<vmem>>, vector<32x128xf32>,
    } else {
    }
    %c0 = arith.constant 0 : index
    %c0_1 = arith.constant 0 : index
    %3 = vector.load %arg8[%c0, %c0_1] : memref<32x128xf32, #tpu.memory_space<vmem>>, vector<32x128xf32>
    %c0_2 = arith.constant 0 : index
    %c0_3 = arith.constant 0 : index
    %4 = vector.load %arg3[%c0_2, %c0_3] : memref<32x8xbf16, #tpu.memory_space<vmem>>, vector<32x8xbf16>
    %c0_4 = arith.constant 0 : index
    %c0_5 = arith.constant 0 : index
    %5 = vector.load %arg4[%c0_4, %c0_5] : memref<8x128xbf16, #tpu.memory_space<vmem>>, vector<8x128xbf16>
    %cst = arith.constant dense<0.000000e+00> : vector<32x128xf32>
    %6 = tpu.matmul %4, %5, %cst {dimension_numbers = #tpu.dot_dimension_numbers<[1], [0], [0], [1], [0, 0, 1, 1], [], []>} : vector<32x8xbf16>, vector<8x128xbf16>, vector<32x128xf32> -> vector<32x128xf32>
    %7 = arith.addf %3, %6 : vector<32x128xf32>
    %c0_6 = arith.constant 0 : index
    %c0_7 = arith.constant 0 : index
    %8 = vector.load %arg8[%c0_6, %c0_7] : memref<32x128xf32, #tpu.memory_space<vmem>>, vector<32x128xf32>
    tpu.vector_store %arg8[%c0_6, %c0_7], %7 {strides = array<i32>} : memref<32x128xf32, #tpu.memory_space<vmem>>, vector<32x128xf32>,
    %c0_i32_8 = arith.constant 0 : i32
    %9 = arith.cmpi eq, %arg2, %c0_i32_8 : i32
    %10 = arith.extui %9 : i1 to i32
    %c0_i32_9 = arith.constant 0 : i32
    %11 = arith.cmpi ne, %10, %c0_i32_9 : i32
    scf.if %11 {
      %c0_10 = arith.constant 0 : index
      %c0_11 = arith.constant 0 : index
      %12 = vector.load %arg8[%c0_10, %c0_11] : memref<32x128xf32, #tpu.memory_space<vmem>>, vector<32x128xf32>
      %c0_12 = arith.constant 0 : index
      %c0_13 = arith.constant 0 : index
      %13 = vector.load %arg5[%c0_12, %c0_13] : memref<1x128xf32, #tpu.memory_space<vmem>>, vector<1x128xf32>
      %14 = vector.broadcast %13 : vector<1x128xf32> to vector<32x128xf32>
      %15 = arith.mulf %12, %14 : vector<32x128xf32>
      %c0_14 = arith.constant 0 : index
      %c0_15 = arith.constant 0 : index
      %16 = vector.load %arg6[%c0_14, %c0_15] : memref<1x128xf32, #tpu.memory_space<vmem>>, vector<1x128xf32>
      %17 = vector.broadcast %16 : vector<1x128xf32> to vector<32x128xf32>
      %18 = arith.addf %15, %17 : vector<32x128xf32>
      %c0_16 = arith.constant 0 : index
      %c0_17 = arith.constant 0 : index
      %19 = vector.load %arg7[%c0_16, %c0_17] : memref<32x128xf32, #tpu.memory_space<vmem>>, vector<32x128xf32>
      tpu.vector_store %arg7[%c0_16, %c0_17], %18 {strides = array<i32>} : memref<32x128xf32, #tpu.memory_space<vmem>>, vector<32x128xf32>,
    } else {
    }
    return
  }
  func.func @transform_0(%arg0: i32, %arg1: i32, %arg2: i32) -> (i32, i32) {
    %c0_i32 = arith.constant 0 : i32
    return %arg0, %arg2 : i32, i32
  }
  func.func @transform_1(%arg0: i32, %arg1: i32, %arg2: i32) -> (i32, i32) {
    %c0_i32 = arith.constant 0 : i32
    return %arg2, %arg1 : i32, i32
  }
  func.func @transform_2(%arg0: i32, %arg1: i32, %arg2: i32) -> (i32, i32) {
    %c0_i32 = arith.constant 0 : i32
    %c0_i32_0 = arith.constant 0 : i32
    return %c0_i32, %arg1 : i32, i32
  }
  func.func @transform_3(%arg0: i32, %arg1: i32, %arg2: i32) -> (i32, i32) {
    %c0_i32 = arith.constant 0 : i32
    %c0_i32_0 = arith.constant 0 : i32
    return %c0_i32, %arg1 : i32, i32
  }
  func.func @transform_4(%arg0: i32, %arg1: i32, %arg2: i32) -> (i32, i32) {
    %c0_i32 = arith.constant 0 : i32
    return %arg0, %arg1 : i32, i32
  }
}

module attributes {stable_mosaic.version = 11 : i64} {
  func.func @_matmul_bn_act_kernel(%arg0: i32, %arg1: i32, %arg2: i32, %arg3: memref<32x16xbf16, #tpu.memory_space<vmem>>, %arg4: memref<16x128xbf16, #tpu.memory_space<vmem>>, %arg5: memref<1x128xf32, #tpu.memory_space<vmem>>, %arg6: memref<1x128xf32, #tpu.memory_space<vmem>>, %arg7: memref<32x128xf32, #tpu.memory_space<vmem>>, %arg8: memref<32x128xf32, #tpu.memory_space<vmem>>) attributes {dimension_semantics = [#tpu.dimension_semantics<parallel>, #tpu.dimension_semantics<parallel>, #tpu.dimension_semantics<arbitrary>], iteration_bounds = array<i64: 1, 1, 1>, scalar_prefetch = 0 : i64, scratch_operands = 1 : i64, tpu.core_type = #tpu.core_type<tc>, window_params = [{transform_indices = @transform_0, window_bounds = array<i64: 32, 16>}, {transform_indices = @transform_1, window_bounds = array<i64: 16, 128>}, {transform_indices = @transform_2, window_bounds = array<i64: 1, 128>}, {transform_indices = @transform_3, window_bounds = array<i64: 1, 128>}, {transform_indices = @transform_4, window_bounds = array<i64: 32, 128>}]} {
    %c0_i32 = arith.constant 0 : i32
    %0 = arith.cmpi eq, %arg2, %c0_i32 : i32
    %1 = arith.extui %0 : i1 to i32
    %c0_i32_0 = arith.constant 0 : i32
    %2 = arith.cmpi ne, %1, %c0_i32_0 : i32
    scf.if %2 {
      %cst_10 = arith.constant 0.000000e+00 : f32
      %12 = vector.broadcast %cst_10 : f32 to vector<32x128xf32>
      %c0_11 = arith.constant 0 : index
      %c0_12 = arith.constant 0 : index
      %13 = vector.load %arg8[%c0_11, %c0_12] : memref<32x128xf32, #tpu.memory_space<vmem>>, vector<32x128xf32>
      tpu.vector_store %arg8[%c0_11, %c0_12], %12 {strides = array<i32>} : memref<32x128xf32, #tpu.memory_space<vmem>>, vector<32x128xf32>,
    } else {
    }
    %c0 = arith.constant 0 : index
    %c0_1 = arith.constant 0 : index
    %3 = vector.load %arg8[%c0, %c0_1] : memref<32x128xf32, #tpu.memory_space<vmem>>, vector<32x128xf32>
    %c0_2 = arith.constant 0 : index
    %c0_3 = arith.constant 0 : index
    %4 = vector.load %arg3[%c0_2, %c0_3] : memref<32x16xbf16, #tpu.memory_space<vmem>>, vector<32x16xbf16>
    %c0_4 = arith.constant 0 : index
    %c0_5 = arith.constant 0 : index
    %5 = vector.load %arg4[%c0_4, %c0_5] : memref<16x128xbf16, #tpu.memory_space<vmem>>, vector<16x128xbf16>
    %cst = arith.constant dense<0.000000e+00> : vector<32x128xf32>
    %6 = tpu.matmul %4, %5, %cst {dimension_numbers = #tpu.dot_dimension_numbers<[1], [0], [0], [1], [0, 0, 1, 1], [], []>} : vector<32x16xbf16>, vector<16x128xbf16>, vector<32x128xf32> -> vector<32x128xf32>
    %7 = arith.addf %3, %6 : vector<32x128xf32>
    %c0_6 = arith.constant 0 : index
    %c0_7 = arith.constant 0 : index
    %8 = vector.load %arg8[%c0_6, %c0_7] : memref<32x128xf32, #tpu.memory_space<vmem>>, vector<32x128xf32>
    tpu.vector_store %arg8[%c0_6, %c0_7], %7 {strides = array<i32>} : memref<32x128xf32, #tpu.memory_space<vmem>>, vector<32x128xf32>,
    %c0_i32_8 = arith.constant 0 : i32
    %9 = arith.cmpi eq, %arg2, %c0_i32_8 : i32
    %10 = arith.extui %9 : i1 to i32
    %c0_i32_9 = arith.constant 0 : i32
    %11 = arith.cmpi ne, %10, %c0_i32_9 : i32
    scf.if %11 {
      %c0_10 = arith.constant 0 : index
      %c0_11 = arith.constant 0 : index
      %12 = vector.load %arg8[%c0_10, %c0_11] : memref<32x128xf32, #tpu.memory_space<vmem>>, vector<32x128xf32>
      %c0_12 = arith.constant 0 : index
      %c0_13 = arith.constant 0 : index
      %13 = vector.load %arg5[%c0_12, %c0_13] : memref<1x128xf32, #tpu.memory_space<vmem>>, vector<1x128xf32>
      %14 = vector.broadcast %13 : vector<1x128xf32> to vector<32x128xf32>
      %15 = arith.mulf %12, %14 : vector<32x128xf32>
      %c0_14 = arith.constant 0 : index
      %c0_15 = arith.constant 0 : index
      %16 = vector.load %arg6[%c0_14, %c0_15] : memref<1x128xf32, #tpu.memory_space<vmem>>, vector<1x128xf32>
      %17 = vector.broadcast %16 : vector<1x128xf32> to vector<32x128xf32>
      %18 = arith.addf %15, %17 : vector<32x128xf32>
      %c0_16 = arith.constant 0 : index
      %c0_17 = arith.constant 0 : index
      %19 = vector.load %arg7[%c0_16, %c0_17] : memref<32x128xf32, #tpu.memory_space<vmem>>, vector<32x128xf32>
      tpu.vector_store %arg7[%c0_16, %c0_17], %18 {strides = array<i32>} : memref<32x128xf32, #tpu.memory_space<vmem>>, vector<32x128xf32>,
    } else {
    }
    return
  }
  func.func @transform_0(%arg0: i32, %arg1: i32, %arg2: i32) -> (i32, i32) {
    %c0_i32 = arith.constant 0 : i32
    return %arg0, %arg2 : i32, i32
  }
  func.func @transform_1(%arg0: i32, %arg1: i32, %arg2: i32) -> (i32, i32) {
    %c0_i32 = arith.constant 0 : i32
    return %arg2, %arg1 : i32, i32
  }
  func.func @transform_2(%arg0: i32, %arg1: i32, %arg2: i32) -> (i32, i32) {
    %c0_i32 = arith.constant 0 : i32
    %c0_i32_0 = arith.constant 0 : i32
    return %c0_i32, %arg1 : i32, i32
  }
  func.func @transform_3(%arg0: i32, %arg1: i32, %arg2: i32) -> (i32, i32) {
    %c0_i32 = arith.constant 0 : i32
    %c0_i32_0 = arith.constant 0 : i32
    return %c0_i32, %arg1 : i32, i32
  }
  func.func @transform_4(%arg0: i32, %arg1: i32, %arg2: i32) -> (i32, i32) {
    %c0_i32 = arith.constant 0 : i32
    return %arg0, %arg1 : i32, i32
  }
}

module attributes {stable_mosaic.version = 11 : i64} {
  func.func @_matmul_bn_act_kernel(%arg0: i32, %arg1: i32, %arg2: i32, %arg3: memref<32x32xbf16, #tpu.memory_space<vmem>>, %arg4: memref<32x128xbf16, #tpu.memory_space<vmem>>, %arg5: memref<1x128xf32, #tpu.memory_space<vmem>>, %arg6: memref<1x128xf32, #tpu.memory_space<vmem>>, %arg7: memref<32x128xf32, #tpu.memory_space<vmem>>, %arg8: memref<32x128xf32, #tpu.memory_space<vmem>>) attributes {dimension_semantics = [#tpu.dimension_semantics<parallel>, #tpu.dimension_semantics<parallel>, #tpu.dimension_semantics<arbitrary>], iteration_bounds = array<i64: 1, 1, 1>, scalar_prefetch = 0 : i64, scratch_operands = 1 : i64, tpu.core_type = #tpu.core_type<tc>, window_params = [{transform_indices = @transform_0, window_bounds = array<i64: 32, 32>}, {transform_indices = @transform_1, window_bounds = array<i64: 32, 128>}, {transform_indices = @transform_2, window_bounds = array<i64: 1, 128>}, {transform_indices = @transform_3, window_bounds = array<i64: 1, 128>}, {transform_indices = @transform_4, window_bounds = array<i64: 32, 128>}]} {
    %c0_i32 = arith.constant 0 : i32
    %0 = arith.cmpi eq, %arg2, %c0_i32 : i32
    %1 = arith.extui %0 : i1 to i32
    %c0_i32_0 = arith.constant 0 : i32
    %2 = arith.cmpi ne, %1, %c0_i32_0 : i32
    scf.if %2 {
      %cst_10 = arith.constant 0.000000e+00 : f32
      %12 = vector.broadcast %cst_10 : f32 to vector<32x128xf32>
      %c0_11 = arith.constant 0 : index
      %c0_12 = arith.constant 0 : index
      %13 = vector.load %arg8[%c0_11, %c0_12] : memref<32x128xf32, #tpu.memory_space<vmem>>, vector<32x128xf32>
      tpu.vector_store %arg8[%c0_11, %c0_12], %12 {strides = array<i32>} : memref<32x128xf32, #tpu.memory_space<vmem>>, vector<32x128xf32>,
    } else {
    }
    %c0 = arith.constant 0 : index
    %c0_1 = arith.constant 0 : index
    %3 = vector.load %arg8[%c0, %c0_1] : memref<32x128xf32, #tpu.memory_space<vmem>>, vector<32x128xf32>
    %c0_2 = arith.constant 0 : index
    %c0_3 = arith.constant 0 : index
    %4 = vector.load %arg3[%c0_2, %c0_3] : memref<32x32xbf16, #tpu.memory_space<vmem>>, vector<32x32xbf16>
    %c0_4 = arith.constant 0 : index
    %c0_5 = arith.constant 0 : index
    %5 = vector.load %arg4[%c0_4, %c0_5] : memref<32x128xbf16, #tpu.memory_space<vmem>>, vector<32x128xbf16>
    %cst = arith.constant dense<0.000000e+00> : vector<32x128xf32>
    %6 = tpu.matmul %4, %5, %cst {dimension_numbers = #tpu.dot_dimension_numbers<[1], [0], [0], [1], [0, 0, 1, 1], [], []>} : vector<32x32xbf16>, vector<32x128xbf16>, vector<32x128xf32> -> vector<32x128xf32>
    %7 = arith.addf %3, %6 : vector<32x128xf32>
    %c0_6 = arith.constant 0 : index
    %c0_7 = arith.constant 0 : index
    %8 = vector.load %arg8[%c0_6, %c0_7] : memref<32x128xf32, #tpu.memory_space<vmem>>, vector<32x128xf32>
    tpu.vector_store %arg8[%c0_6, %c0_7], %7 {strides = array<i32>} : memref<32x128xf32, #tpu.memory_space<vmem>>, vector<32x128xf32>,
    %c0_i32_8 = arith.constant 0 : i32
    %9 = arith.cmpi eq, %arg2, %c0_i32_8 : i32
    %10 = arith.extui %9 : i1 to i32
    %c0_i32_9 = arith.constant 0 : i32
    %11 = arith.cmpi ne, %10, %c0_i32_9 : i32
    scf.if %11 {
      %c0_10 = arith.constant 0 : index
      %c0_11 = arith.constant 0 : index
      %12 = vector.load %arg8[%c0_10, %c0_11] : memref<32x128xf32, #tpu.memory_space<vmem>>, vector<32x128xf32>
      %c0_12 = arith.constant 0 : index
      %c0_13 = arith.constant 0 : index
      %13 = vector.load %arg5[%c0_12, %c0_13] : memref<1x128xf32, #tpu.memory_space<vmem>>, vector<1x128xf32>
      %14 = vector.broadcast %13 : vector<1x128xf32> to vector<32x128xf32>
      %15 = arith.mulf %12, %14 : vector<32x128xf32>
      %c0_14 = arith.constant 0 : index
      %c0_15 = arith.constant 0 : index
      %16 = vector.load %arg6[%c0_14, %c0_15] : memref<1x128xf32, #tpu.memory_space<vmem>>, vector<1x128xf32>
      %17 = vector.broadcast %16 : vector<1x128xf32> to vector<32x128xf32>
      %18 = arith.addf %15, %17 : vector<32x128xf32>
      %cst_16 = arith.constant 0.000000e+00 : f32
      %19 = vector.broadcast %cst_16 : f32 to vector<32x128xf32>
      %20 = arith.maximumf %18, %19 : vector<32x128xf32>
      %c0_17 = arith.constant 0 : index
      %c0_18 = arith.constant 0 : index
      %21 = vector.load %arg7[%c0_17, %c0_18] : memref<32x128xf32, #tpu.memory_space<vmem>>, vector<32x128xf32>
      tpu.vector_store %arg7[%c0_17, %c0_18], %20 {strides = array<i32>} : memref<32x128xf32, #tpu.memory_space<vmem>>, vector<32x128xf32>,
    } else {
    }
    return
  }
  func.func @transform_0(%arg0: i32, %arg1: i32, %arg2: i32) -> (i32, i32) {
    %c0_i32 = arith.constant 0 : i32
    return %arg0, %arg2 : i32, i32
  }
  func.func @transform_1(%arg0: i32, %arg1: i32, %arg2: i32) -> (i32, i32) {
    %c0_i32 = arith.constant 0 : i32
    return %arg2, %arg1 : i32, i32
  }
  func.func @transform_2(%arg0: i32, %arg1: i32, %arg2: i32) -> (i32, i32) {
    %c0_i32 = arith.constant 0 : i32
    %c0_i32_0 = arith.constant 0 : i32
    return %c0_i32, %arg1 : i32, i32
  }
  func.func @transform_3(%arg0: i32, %arg1: i32, %arg2: i32) -> (i32, i32) {
    %c0_i32 = arith.constant 0 : i32
    %c0_i32_0 = arith.constant 0 : i32
    return %c0_i32, %arg1 : i32, i32
  }
  func.func @transform_4(%arg0: i32, %arg1: i32, %arg2: i32) -> (i32, i32) {
    %c0_i32 = arith.constant 0 : i32
    return %arg0, %arg1 : i32, i32
  }
}

module attributes {stable_mosaic.version = 11 : i64} {
  func.func @_matmul_bn_act_kernel(%arg0: i32, %arg1: i32, %arg2: i32, %arg3: memref<8x144xbf16, #tpu.memory_space<vmem>>, %arg4: memref<144x128xbf16, #tpu.memory_space<vmem>>, %arg5: memref<1x128xf32, #tpu.memory_space<vmem>>, %arg6: memref<1x128xf32, #tpu.memory_space<vmem>>, %arg7: memref<8x128xf32, #tpu.memory_space<vmem>>, %arg8: memref<8x128xf32, #tpu.memory_space<vmem>>, %arg9: memref<8x128xf32, #tpu.memory_space<vmem>>) attributes {dimension_semantics = [#tpu.dimension_semantics<parallel>, #tpu.dimension_semantics<parallel>, #tpu.dimension_semantics<arbitrary>], iteration_bounds = array<i64: 1, 1, 1>, scalar_prefetch = 0 : i64, scratch_operands = 1 : i64, tpu.core_type = #tpu.core_type<tc>, window_params = [{transform_indices = @transform_0, window_bounds = array<i64: 8, 144>}, {transform_indices = @transform_1, window_bounds = array<i64: 144, 128>}, {transform_indices = @transform_2, window_bounds = array<i64: 1, 128>}, {transform_indices = @transform_3, window_bounds = array<i64: 1, 128>}, {transform_indices = @transform_4, window_bounds = array<i64: 8, 128>}, {transform_indices = @transform_5, window_bounds = array<i64: 8, 128>}]} {
    %c0_i32 = arith.constant 0 : i32
    %0 = arith.cmpi eq, %arg2, %c0_i32 : i32
    %1 = arith.extui %0 : i1 to i32
    %c0_i32_0 = arith.constant 0 : i32
    %2 = arith.cmpi ne, %1, %c0_i32_0 : i32
    scf.if %2 {
      %cst_10 = arith.constant 0.000000e+00 : f32
      %12 = vector.broadcast %cst_10 : f32 to vector<8x128xf32>
      %c0_11 = arith.constant 0 : index
      %c0_12 = arith.constant 0 : index
      %13 = vector.load %arg9[%c0_11, %c0_12] : memref<8x128xf32, #tpu.memory_space<vmem>>, vector<8x128xf32>
      tpu.vector_store %arg9[%c0_11, %c0_12], %12 {strides = array<i32>} : memref<8x128xf32, #tpu.memory_space<vmem>>, vector<8x128xf32>,
    } else {
    }
    %c0 = arith.constant 0 : index
    %c0_1 = arith.constant 0 : index
    %3 = vector.load %arg9[%c0, %c0_1] : memref<8x128xf32, #tpu.memory_space<vmem>>, vector<8x128xf32>
    %c0_2 = arith.constant 0 : index
    %c0_3 = arith.constant 0 : index
    %4 = vector.load %arg3[%c0_2, %c0_3] : memref<8x144xbf16, #tpu.memory_space<vmem>>, vector<8x144xbf16>
    %c0_4 = arith.constant 0 : index
    %c0_5 = arith.constant 0 : index
    %5 = vector.load %arg4[%c0_4, %c0_5] : memref<144x128xbf16, #tpu.memory_space<vmem>>, vector<144x128xbf16>
    %cst = arith.constant dense<0.000000e+00> : vector<8x128xf32>
    %6 = tpu.matmul %4, %5, %cst {dimension_numbers = #tpu.dot_dimension_numbers<[1], [0], [0], [1], [0, 0, 1, 1], [], []>} : vector<8x144xbf16>, vector<144x128xbf16>, vector<8x128xf32> -> vector<8x128xf32>
    %7 = arith.addf %3, %6 : vector<8x128xf32>
    %c0_6 = arith.constant 0 : index
    %c0_7 = arith.constant 0 : index
    %8 = vector.load %arg9[%c0_6, %c0_7] : memref<8x128xf32, #tpu.memory_space<vmem>>, vector<8x128xf32>
    tpu.vector_store %arg9[%c0_6, %c0_7], %7 {strides = array<i32>} : memref<8x128xf32, #tpu.memory_space<vmem>>, vector<8x128xf32>,
    %c0_i32_8 = arith.constant 0 : i32
    %9 = arith.cmpi eq, %arg2, %c0_i32_8 : i32
    %10 = arith.extui %9 : i1 to i32
    %c0_i32_9 = arith.constant 0 : i32
    %11 = arith.cmpi ne, %10, %c0_i32_9 : i32
    scf.if %11 {
      %c0_10 = arith.constant 0 : index
      %c0_11 = arith.constant 0 : index
      %12 = vector.load %arg9[%c0_10, %c0_11] : memref<8x128xf32, #tpu.memory_space<vmem>>, vector<8x128xf32>
      %c0_12 = arith.constant 0 : index
      %c0_13 = arith.constant 0 : index
      %13 = vector.load %arg5[%c0_12, %c0_13] : memref<1x128xf32, #tpu.memory_space<vmem>>, vector<1x128xf32>
      %14 = vector.broadcast %13 : vector<1x128xf32> to vector<8x128xf32>
      %15 = arith.mulf %12, %14 : vector<8x128xf32>
      %c0_14 = arith.constant 0 : index
      %c0_15 = arith.constant 0 : index
      %16 = vector.load %arg6[%c0_14, %c0_15] : memref<1x128xf32, #tpu.memory_space<vmem>>, vector<1x128xf32>
      %17 = vector.broadcast %16 : vector<1x128xf32> to vector<8x128xf32>
      %18 = arith.addf %15, %17 : vector<8x128xf32>
      %c0_16 = arith.constant 0 : index
      %c0_17 = arith.constant 0 : index
      %19 = vector.load %arg7[%c0_16, %c0_17] : memref<8x128xf32, #tpu.memory_space<vmem>>, vector<8x128xf32>
      %20 = arith.addf %18, %19 : vector<8x128xf32>
      %cst_18 = arith.constant 0.000000e+00 : f32
      %21 = vector.broadcast %cst_18 : f32 to vector<8x128xf32>
      %22 = arith.maximumf %20, %21 : vector<8x128xf32>
      %c0_19 = arith.constant 0 : index
      %c0_20 = arith.constant 0 : index
      %23 = vector.load %arg8[%c0_19, %c0_20] : memref<8x128xf32, #tpu.memory_space<vmem>>, vector<8x128xf32>
      tpu.vector_store %arg8[%c0_19, %c0_20], %22 {strides = array<i32>} : memref<8x128xf32, #tpu.memory_space<vmem>>, vector<8x128xf32>,
    } else {
    }
    return
  }
  func.func @transform_0(%arg0: i32, %arg1: i32, %arg2: i32) -> (i32, i32) {
    %c0_i32 = arith.constant 0 : i32
    return %arg0, %arg2 : i32, i32
  }
  func.func @transform_1(%arg0: i32, %arg1: i32, %arg2: i32) -> (i32, i32) {
    %c0_i32 = arith.constant 0 : i32
    return %arg2, %arg1 : i32, i32
  }
  func.func @transform_2(%arg0: i32, %arg1: i32, %arg2: i32) -> (i32, i32) {
    %c0_i32 = arith.constant 0 : i32
    %c0_i32_0 = arith.constant 0 : i32
    return %c0_i32, %arg1 : i32, i32
  }
  func.func @transform_3(%arg0: i32, %arg1: i32, %arg2: i32) -> (i32, i32) {
    %c0_i32 = arith.constant 0 : i32
    %c0_i32_0 = arith.constant 0 : i32
    return %c0_i32, %arg1 : i32, i32
  }
  func.func @transform_4(%arg0: i32, %arg1: i32, %arg2: i32) -> (i32, i32) {
    %c0_i32 = arith.constant 0 : i32
    return %arg0, %arg1 : i32, i32
  }
  func.func @transform_5(%arg0: i32, %arg1: i32, %arg2: i32) -> (i32, i32) {
    %c0_i32 = arith.constant 0 : i32
    return %arg0, %arg1 : i32, i32
  }
}

module attributes {stable_mosaic.version = 11 : i64} {
  func.func @_matmul_bn_act_kernel(%arg0: i32, %arg1: i32, %arg2: i32, %arg3: memref<8x16xbf16, #tpu.memory_space<vmem>>, %arg4: memref<16x128xbf16, #tpu.memory_space<vmem>>, %arg5: memref<1x128xf32, #tpu.memory_space<vmem>>, %arg6: memref<1x128xf32, #tpu.memory_space<vmem>>, %arg7: memref<8x128xf32, #tpu.memory_space<vmem>>, %arg8: memref<8x128xf32, #tpu.memory_space<vmem>>) attributes {dimension_semantics = [#tpu.dimension_semantics<parallel>, #tpu.dimension_semantics<parallel>, #tpu.dimension_semantics<arbitrary>], iteration_bounds = array<i64: 1, 1, 1>, scalar_prefetch = 0 : i64, scratch_operands = 1 : i64, tpu.core_type = #tpu.core_type<tc>, window_params = [{transform_indices = @transform_0, window_bounds = array<i64: 8, 16>}, {transform_indices = @transform_1, window_bounds = array<i64: 16, 128>}, {transform_indices = @transform_2, window_bounds = array<i64: 1, 128>}, {transform_indices = @transform_3, window_bounds = array<i64: 1, 128>}, {transform_indices = @transform_4, window_bounds = array<i64: 8, 128>}]} {
    %c0_i32 = arith.constant 0 : i32
    %0 = arith.cmpi eq, %arg2, %c0_i32 : i32
    %1 = arith.extui %0 : i1 to i32
    %c0_i32_0 = arith.constant 0 : i32
    %2 = arith.cmpi ne, %1, %c0_i32_0 : i32
    scf.if %2 {
      %cst_10 = arith.constant 0.000000e+00 : f32
      %12 = vector.broadcast %cst_10 : f32 to vector<8x128xf32>
      %c0_11 = arith.constant 0 : index
      %c0_12 = arith.constant 0 : index
      %13 = vector.load %arg8[%c0_11, %c0_12] : memref<8x128xf32, #tpu.memory_space<vmem>>, vector<8x128xf32>
      tpu.vector_store %arg8[%c0_11, %c0_12], %12 {strides = array<i32>} : memref<8x128xf32, #tpu.memory_space<vmem>>, vector<8x128xf32>,
    } else {
    }
    %c0 = arith.constant 0 : index
    %c0_1 = arith.constant 0 : index
    %3 = vector.load %arg8[%c0, %c0_1] : memref<8x128xf32, #tpu.memory_space<vmem>>, vector<8x128xf32>
    %c0_2 = arith.constant 0 : index
    %c0_3 = arith.constant 0 : index
    %4 = vector.load %arg3[%c0_2, %c0_3] : memref<8x16xbf16, #tpu.memory_space<vmem>>, vector<8x16xbf16>
    %c0_4 = arith.constant 0 : index
    %c0_5 = arith.constant 0 : index
    %5 = vector.load %arg4[%c0_4, %c0_5] : memref<16x128xbf16, #tpu.memory_space<vmem>>, vector<16x128xbf16>
    %cst = arith.constant dense<0.000000e+00> : vector<8x128xf32>
    %6 = tpu.matmul %4, %5, %cst {dimension_numbers = #tpu.dot_dimension_numbers<[1], [0], [0], [1], [0, 0, 1, 1], [], []>} : vector<8x16xbf16>, vector<16x128xbf16>, vector<8x128xf32> -> vector<8x128xf32>
    %7 = arith.addf %3, %6 : vector<8x128xf32>
    %c0_6 = arith.constant 0 : index
    %c0_7 = arith.constant 0 : index
    %8 = vector.load %arg8[%c0_6, %c0_7] : memref<8x128xf32, #tpu.memory_space<vmem>>, vector<8x128xf32>
    tpu.vector_store %arg8[%c0_6, %c0_7], %7 {strides = array<i32>} : memref<8x128xf32, #tpu.memory_space<vmem>>, vector<8x128xf32>,
    %c0_i32_8 = arith.constant 0 : i32
    %9 = arith.cmpi eq, %arg2, %c0_i32_8 : i32
    %10 = arith.extui %9 : i1 to i32
    %c0_i32_9 = arith.constant 0 : i32
    %11 = arith.cmpi ne, %10, %c0_i32_9 : i32
    scf.if %11 {
      %c0_10 = arith.constant 0 : index
      %c0_11 = arith.constant 0 : index
      %12 = vector.load %arg8[%c0_10, %c0_11] : memref<8x128xf32, #tpu.memory_space<vmem>>, vector<8x128xf32>
      %c0_12 = arith.constant 0 : index
      %c0_13 = arith.constant 0 : index
      %13 = vector.load %arg5[%c0_12, %c0_13] : memref<1x128xf32, #tpu.memory_space<vmem>>, vector<1x128xf32>
      %14 = vector.broadcast %13 : vector<1x128xf32> to vector<8x128xf32>
      %15 = arith.mulf %12, %14 : vector<8x128xf32>
      %c0_14 = arith.constant 0 : index
      %c0_15 = arith.constant 0 : index
      %16 = vector.load %arg6[%c0_14, %c0_15] : memref<1x128xf32, #tpu.memory_space<vmem>>, vector<1x128xf32>
      %17 = vector.broadcast %16 : vector<1x128xf32> to vector<8x128xf32>
      %18 = arith.addf %15, %17 : vector<8x128xf32>
      %c0_16 = arith.constant 0 : index
      %c0_17 = arith.constant 0 : index
      %19 = vector.load %arg7[%c0_16, %c0_17] : memref<8x128xf32, #tpu.memory_space<vmem>>, vector<8x128xf32>
      tpu.vector_store %arg7[%c0_16, %c0_17], %18 {strides = array<i32>} : memref<8x128xf32, #tpu.memory_space<vmem>>, vector<8x128xf32>,
    } else {
    }
    return
  }
  func.func @transform_0(%arg0: i32, %arg1: i32, %arg2: i32) -> (i32, i32) {
    %c0_i32 = arith.constant 0 : i32
    return %arg0, %arg2 : i32, i32
  }
  func.func @transform_1(%arg0: i32, %arg1: i32, %arg2: i32) -> (i32, i32) {
    %c0_i32 = arith.constant 0 : i32
    return %arg2, %arg1 : i32, i32
  }
  func.func @transform_2(%arg0: i32, %arg1: i32, %arg2: i32) -> (i32, i32) {
    %c0_i32 = arith.constant 0 : i32
    %c0_i32_0 = arith.constant 0 : i32
    return %c0_i32, %arg1 : i32, i32
  }
  func.func @transform_3(%arg0: i32, %arg1: i32, %arg2: i32) -> (i32, i32) {
    %c0_i32 = arith.constant 0 : i32
    %c0_i32_0 = arith.constant 0 : i32
    return %c0_i32, %arg1 : i32, i32
  }
  func.func @transform_4(%arg0: i32, %arg1: i32, %arg2: i32) -> (i32, i32) {
    %c0_i32 = arith.constant 0 : i32
    return %arg0, %arg1 : i32, i32
  }
}

module attributes {stable_mosaic.version = 11 : i64} {
  func.func @_matmul_bn_act_kernel(%arg0: i32, %arg1: i32, %arg2: i32, %arg3: memref<8x32xbf16, #tpu.memory_space<vmem>>, %arg4: memref<32x128xbf16, #tpu.memory_space<vmem>>, %arg5: memref<1x128xf32, #tpu.memory_space<vmem>>, %arg6: memref<1x128xf32, #tpu.memory_space<vmem>>, %arg7: memref<8x128xf32, #tpu.memory_space<vmem>>, %arg8: memref<8x128xf32, #tpu.memory_space<vmem>>) attributes {dimension_semantics = [#tpu.dimension_semantics<parallel>, #tpu.dimension_semantics<parallel>, #tpu.dimension_semantics<arbitrary>], iteration_bounds = array<i64: 1, 1, 1>, scalar_prefetch = 0 : i64, scratch_operands = 1 : i64, tpu.core_type = #tpu.core_type<tc>, window_params = [{transform_indices = @transform_0, window_bounds = array<i64: 8, 32>}, {transform_indices = @transform_1, window_bounds = array<i64: 32, 128>}, {transform_indices = @transform_2, window_bounds = array<i64: 1, 128>}, {transform_indices = @transform_3, window_bounds = array<i64: 1, 128>}, {transform_indices = @transform_4, window_bounds = array<i64: 8, 128>}]} {
    %c0_i32 = arith.constant 0 : i32
    %0 = arith.cmpi eq, %arg2, %c0_i32 : i32
    %1 = arith.extui %0 : i1 to i32
    %c0_i32_0 = arith.constant 0 : i32
    %2 = arith.cmpi ne, %1, %c0_i32_0 : i32
    scf.if %2 {
      %cst_10 = arith.constant 0.000000e+00 : f32
      %12 = vector.broadcast %cst_10 : f32 to vector<8x128xf32>
      %c0_11 = arith.constant 0 : index
      %c0_12 = arith.constant 0 : index
      %13 = vector.load %arg8[%c0_11, %c0_12] : memref<8x128xf32, #tpu.memory_space<vmem>>, vector<8x128xf32>
      tpu.vector_store %arg8[%c0_11, %c0_12], %12 {strides = array<i32>} : memref<8x128xf32, #tpu.memory_space<vmem>>, vector<8x128xf32>,
    } else {
    }
    %c0 = arith.constant 0 : index
    %c0_1 = arith.constant 0 : index
    %3 = vector.load %arg8[%c0, %c0_1] : memref<8x128xf32, #tpu.memory_space<vmem>>, vector<8x128xf32>
    %c0_2 = arith.constant 0 : index
    %c0_3 = arith.constant 0 : index
    %4 = vector.load %arg3[%c0_2, %c0_3] : memref<8x32xbf16, #tpu.memory_space<vmem>>, vector<8x32xbf16>
    %c0_4 = arith.constant 0 : index
    %c0_5 = arith.constant 0 : index
    %5 = vector.load %arg4[%c0_4, %c0_5] : memref<32x128xbf16, #tpu.memory_space<vmem>>, vector<32x128xbf16>
    %cst = arith.constant dense<0.000000e+00> : vector<8x128xf32>
    %6 = tpu.matmul %4, %5, %cst {dimension_numbers = #tpu.dot_dimension_numbers<[1], [0], [0], [1], [0, 0, 1, 1], [], []>} : vector<8x32xbf16>, vector<32x128xbf16>, vector<8x128xf32> -> vector<8x128xf32>
    %7 = arith.addf %3, %6 : vector<8x128xf32>
    %c0_6 = arith.constant 0 : index
    %c0_7 = arith.constant 0 : index
    %8 = vector.load %arg8[%c0_6, %c0_7] : memref<8x128xf32, #tpu.memory_space<vmem>>, vector<8x128xf32>
    tpu.vector_store %arg8[%c0_6, %c0_7], %7 {strides = array<i32>} : memref<8x128xf32, #tpu.memory_space<vmem>>, vector<8x128xf32>,
    %c0_i32_8 = arith.constant 0 : i32
    %9 = arith.cmpi eq, %arg2, %c0_i32_8 : i32
    %10 = arith.extui %9 : i1 to i32
    %c0_i32_9 = arith.constant 0 : i32
    %11 = arith.cmpi ne, %10, %c0_i32_9 : i32
    scf.if %11 {
      %c0_10 = arith.constant 0 : index
      %c0_11 = arith.constant 0 : index
      %12 = vector.load %arg8[%c0_10, %c0_11] : memref<8x128xf32, #tpu.memory_space<vmem>>, vector<8x128xf32>
      %c0_12 = arith.constant 0 : index
      %c0_13 = arith.constant 0 : index
      %13 = vector.load %arg5[%c0_12, %c0_13] : memref<1x128xf32, #tpu.memory_space<vmem>>, vector<1x128xf32>
      %14 = vector.broadcast %13 : vector<1x128xf32> to vector<8x128xf32>
      %15 = arith.mulf %12, %14 : vector<8x128xf32>
      %c0_14 = arith.constant 0 : index
      %c0_15 = arith.constant 0 : index
      %16 = vector.load %arg6[%c0_14, %c0_15] : memref<1x128xf32, #tpu.memory_space<vmem>>, vector<1x128xf32>
      %17 = vector.broadcast %16 : vector<1x128xf32> to vector<8x128xf32>
      %18 = arith.addf %15, %17 : vector<8x128xf32>
      %c0_16 = arith.constant 0 : index
      %c0_17 = arith.constant 0 : index
      %19 = vector.load %arg7[%c0_16, %c0_17] : memref<8x128xf32, #tpu.memory_space<vmem>>, vector<8x128xf32>
      tpu.vector_store %arg7[%c0_16, %c0_17], %18 {strides = array<i32>} : memref<8x128xf32, #tpu.memory_space<vmem>>, vector<8x128xf32>,
    } else {
    }
    return
  }
  func.func @transform_0(%arg0: i32, %arg1: i32, %arg2: i32) -> (i32, i32) {
    %c0_i32 = arith.constant 0 : i32
    return %arg0, %arg2 : i32, i32
  }
  func.func @transform_1(%arg0: i32, %arg1: i32, %arg2: i32) -> (i32, i32) {
    %c0_i32 = arith.constant 0 : i32
    return %arg2, %arg1 : i32, i32
  }
  func.func @transform_2(%arg0: i32, %arg1: i32, %arg2: i32) -> (i32, i32) {
    %c0_i32 = arith.constant 0 : i32
    %c0_i32_0 = arith.constant 0 : i32
    return %c0_i32, %arg1 : i32, i32
  }
  func.func @transform_3(%arg0: i32, %arg1: i32, %arg2: i32) -> (i32, i32) {
    %c0_i32 = arith.constant 0 : i32
    %c0_i32_0 = arith.constant 0 : i32
    return %c0_i32, %arg1 : i32, i32
  }
  func.func @transform_4(%arg0: i32, %arg1: i32, %arg2: i32) -> (i32, i32) {
    %c0_i32 = arith.constant 0 : i32
    return %arg0, %arg1 : i32, i32
  }
}

module attributes {stable_mosaic.version = 11 : i64} {
  func.func @_seq_attn_kernel(%arg0: i32, %arg1: memref<4x2x32xf32, #tpu.memory_space<vmem>>, %arg2: memref<4x2x32xf32, #tpu.memory_space<vmem>>, %arg3: memref<4x2x32xf32, #tpu.memory_space<vmem>>, %arg4: memref<4x2x32xf32, #tpu.memory_space<vmem>>) attributes {dimension_semantics = [#tpu.dimension_semantics<parallel>], iteration_bounds = array<i64: 1>, scalar_prefetch = 0 : i64, scratch_operands = 0 : i64, tpu.core_type = #tpu.core_type<tc>, window_params = [{transform_indices = @transform_0, window_bounds = array<i64: 4, 2, 32>}, {transform_indices = @transform_1, window_bounds = array<i64: 4, 2, 32>}, {transform_indices = @transform_2, window_bounds = array<i64: 4, 2, 32>}, {transform_indices = @transform_3, window_bounds = array<i64: 4, 2, 32>}]} {
    %c0 = arith.constant 0 : index
    %c0_0 = arith.constant 0 : index
    %c0_1 = arith.constant 0 : index
    %0 = vector.load %arg1[%c0, %c0_0, %c0_1] : memref<4x2x32xf32, #tpu.memory_space<vmem>>, vector<4x2x32xf32>
    %c0_2 = arith.constant 0 : index
    %c0_3 = arith.constant 0 : index
    %c0_4 = arith.constant 0 : index
    %1 = vector.load %arg2[%c0_2, %c0_3, %c0_4] : memref<4x2x32xf32, #tpu.memory_space<vmem>>, vector<4x2x32xf32>
    %c0_5 = arith.constant 0 : index
    %c0_6 = arith.constant 0 : index
    %c0_7 = arith.constant 0 : index
    %2 = vector.load %arg3[%c0_5, %c0_6, %c0_7] : memref<4x2x32xf32, #tpu.memory_space<vmem>>, vector<4x2x32xf32>
    "tpu.trace_start"() <{level = 10 : i32, message = "nqc,nkc->nqk"}> : () -> ()
    %cst = arith.constant dense<0.000000e+00> : vector<4x2x2xf32>
    %3 = tpu.matmul %0, %1, %cst {dimension_numbers = #tpu.dot_dimension_numbers<[2], [2], [1], [1], [0, 0, 0, 1, 1, 1], [0], [0]>} : vector<4x2x32xf32>, vector<4x2x32xf32>, vector<4x2x2xf32> -> vector<4x2x2xf32>
    "tpu.trace_stop"() : () -> ()
    %cst_8 = arith.constant 0.176776692 : f32
    %4 = vector.broadcast %cst_8 : f32 to vector<4x2x2xf32>
    %5 = arith.mulf %3, %4 : vector<4x2x2xf32>
    %cst_9 = arith.constant dense<0xFF800000> : vector<4x2xf32>
    %6 = vector.multi_reduction <maximumf>, %5, %cst_9 [2] : vector<4x2x2xf32> to vector<4x2xf32>
    %cst_10 = arith.constant 0xFF800000 : f32
    %7 = vector.broadcast %cst_10 : f32 to vector<4x2xf32>
    %8 = arith.maximumf %7, %6 : vector<4x2xf32>
    %9 = vector.shape_cast %8 : vector<4x2xf32> to vector<4x2x1xf32>
    %10 = vector.broadcast %9 : vector<4x2x1xf32> to vector<4x2x2xf32>
    %11 = arith.subf %5, %10 : vector<4x2x2xf32>
    %12 = math.exp %11 : vector<4x2x2xf32>
    %cst_11 = arith.constant dense<0.000000e+00> : vector<4x2xf32>
    %13 = vector.multi_reduction <add>, %12, %cst_11 [2] : vector<4x2x2xf32> to vector<4x2xf32>
    %14 = vector.shape_cast %13 : vector<4x2xf32> to vector<4x2x1xf32>
    %15 = vector.broadcast %14 : vector<4x2x1xf32> to vector<4x2x2xf32>
    %16 = arith.divf %12, %15 : vector<4x2x2xf32>
    "tpu.trace_start"() <{level = 10 : i32, message = "nqk,nkc->nqc"}> : () -> ()
    %cst_12 = arith.constant dense<0.000000e+00> : vector<4x2x32xf32>
    %17 = tpu.matmul %16, %2, %cst_12 {dimension_numbers = #tpu.dot_dimension_numbers<[2], [1], [1], [2], [0, 0, 0, 1, 1, 2], [0], [0]>} : vector<4x2x2xf32>, vector<4x2x32xf32>, vector<4x2x32xf32> -> vector<4x2x32xf32>
    "tpu.trace_stop"() : () -> ()
    %c0_13 = arith.constant 0 : index
    %c0_14 = arith.constant 0 : index
    %c0_15 = arith.constant 0 : index
    %18 = vector.load %arg4[%c0_13, %c0_14, %c0_15] : memref<4x2x32xf32, #tpu.memory_space<vmem>>, vector<4x2x32xf32>
    tpu.vector_store %arg4[%c0_13, %c0_14, %c0_15], %17 {strides = array<i32>} : memref<4x2x32xf32, #tpu.memory_space<vmem>>, vector<4x2x32xf32>,
    return
  }
  func.func @transform_0(%arg0: i32) -> (i32, i32, i32) {
    %c0_i32 = arith.constant 0 : i32
    %c0_i32_0 = arith.constant 0 : i32
    %c0_i32_1 = arith.constant 0 : i32
    return %arg0, %c0_i32, %c0_i32_0 : i32, i32, i32
  }
  func.func @transform_1(%arg0: i32) -> (i32, i32, i32) {
    %c0_i32 = arith.constant 0 : i32
    %c0_i32_0 = arith.constant 0 : i32
    %c0_i32_1 = arith.constant 0 : i32
    return %arg0, %c0_i32, %c0_i32_0 : i32, i32, i32
  }
  func.func @transform_2(%arg0: i32) -> (i32, i32, i32) {
    %c0_i32 = arith.constant 0 : i32
    %c0_i32_0 = arith.constant 0 : i32
    %c0_i32_1 = arith.constant 0 : i32
    return %arg0, %c0_i32, %c0_i32_0 : i32, i32, i32
  }
  func.func @transform_3(%arg0: i32) -> (i32, i32, i32) {
    %c0_i32 = arith.constant 0 : i32
    %c0_i32_0 = arith.constant 0 : i32
    %c0_i32_1 = arith.constant 0 : i32
    return %arg0, %c0_i32, %c0_i32_0 : i32, i32, i32
  }
}

module attributes {stable_mosaic.version = 11 : i64} {
  func.func @_matmul_bn_act_kernel(%arg0: i32, %arg1: i32, %arg2: i32, %arg3: memref<8x64xbf16, #tpu.memory_space<vmem>>, %arg4: memref<64x128xbf16, #tpu.memory_space<vmem>>, %arg5: memref<1x128xf32, #tpu.memory_space<vmem>>, %arg6: memref<1x128xf32, #tpu.memory_space<vmem>>, %arg7: memref<8x128xf32, #tpu.memory_space<vmem>>, %arg8: memref<8x128xf32, #tpu.memory_space<vmem>>) attributes {dimension_semantics = [#tpu.dimension_semantics<parallel>, #tpu.dimension_semantics<parallel>, #tpu.dimension_semantics<arbitrary>], iteration_bounds = array<i64: 1, 1, 1>, scalar_prefetch = 0 : i64, scratch_operands = 1 : i64, tpu.core_type = #tpu.core_type<tc>, window_params = [{transform_indices = @transform_0, window_bounds = array<i64: 8, 64>}, {transform_indices = @transform_1, window_bounds = array<i64: 64, 128>}, {transform_indices = @transform_2, window_bounds = array<i64: 1, 128>}, {transform_indices = @transform_3, window_bounds = array<i64: 1, 128>}, {transform_indices = @transform_4, window_bounds = array<i64: 8, 128>}]} {
    %c0_i32 = arith.constant 0 : i32
    %0 = arith.cmpi eq, %arg2, %c0_i32 : i32
    %1 = arith.extui %0 : i1 to i32
    %c0_i32_0 = arith.constant 0 : i32
    %2 = arith.cmpi ne, %1, %c0_i32_0 : i32
    scf.if %2 {
      %cst_10 = arith.constant 0.000000e+00 : f32
      %12 = vector.broadcast %cst_10 : f32 to vector<8x128xf32>
      %c0_11 = arith.constant 0 : index
      %c0_12 = arith.constant 0 : index
      %13 = vector.load %arg8[%c0_11, %c0_12] : memref<8x128xf32, #tpu.memory_space<vmem>>, vector<8x128xf32>
      tpu.vector_store %arg8[%c0_11, %c0_12], %12 {strides = array<i32>} : memref<8x128xf32, #tpu.memory_space<vmem>>, vector<8x128xf32>,
    } else {
    }
    %c0 = arith.constant 0 : index
    %c0_1 = arith.constant 0 : index
    %3 = vector.load %arg8[%c0, %c0_1] : memref<8x128xf32, #tpu.memory_space<vmem>>, vector<8x128xf32>
    %c0_2 = arith.constant 0 : index
    %c0_3 = arith.constant 0 : index
    %4 = vector.load %arg3[%c0_2, %c0_3] : memref<8x64xbf16, #tpu.memory_space<vmem>>, vector<8x64xbf16>
    %c0_4 = arith.constant 0 : index
    %c0_5 = arith.constant 0 : index
    %5 = vector.load %arg4[%c0_4, %c0_5] : memref<64x128xbf16, #tpu.memory_space<vmem>>, vector<64x128xbf16>
    %cst = arith.constant dense<0.000000e+00> : vector<8x128xf32>
    %6 = tpu.matmul %4, %5, %cst {dimension_numbers = #tpu.dot_dimension_numbers<[1], [0], [0], [1], [0, 0, 1, 1], [], []>} : vector<8x64xbf16>, vector<64x128xbf16>, vector<8x128xf32> -> vector<8x128xf32>
    %7 = arith.addf %3, %6 : vector<8x128xf32>
    %c0_6 = arith.constant 0 : index
    %c0_7 = arith.constant 0 : index
    %8 = vector.load %arg8[%c0_6, %c0_7] : memref<8x128xf32, #tpu.memory_space<vmem>>, vector<8x128xf32>
    tpu.vector_store %arg8[%c0_6, %c0_7], %7 {strides = array<i32>} : memref<8x128xf32, #tpu.memory_space<vmem>>, vector<8x128xf32>,
    %c0_i32_8 = arith.constant 0 : i32
    %9 = arith.cmpi eq, %arg2, %c0_i32_8 : i32
    %10 = arith.extui %9 : i1 to i32
    %c0_i32_9 = arith.constant 0 : i32
    %11 = arith.cmpi ne, %10, %c0_i32_9 : i32
    scf.if %11 {
      %c0_10 = arith.constant 0 : index
      %c0_11 = arith.constant 0 : index
      %12 = vector.load %arg8[%c0_10, %c0_11] : memref<8x128xf32, #tpu.memory_space<vmem>>, vector<8x128xf32>
      %c0_12 = arith.constant 0 : index
      %c0_13 = arith.constant 0 : index
      %13 = vector.load %arg5[%c0_12, %c0_13] : memref<1x128xf32, #tpu.memory_space<vmem>>, vector<1x128xf32>
      %14 = vector.broadcast %13 : vector<1x128xf32> to vector<8x128xf32>
      %15 = arith.mulf %12, %14 : vector<8x128xf32>
      %c0_14 = arith.constant 0 : index
      %c0_15 = arith.constant 0 : index
      %16 = vector.load %arg6[%c0_14, %c0_15] : memref<1x128xf32, #tpu.memory_space<vmem>>, vector<1x128xf32>
      %17 = vector.broadcast %16 : vector<1x128xf32> to vector<8x128xf32>
      %18 = arith.addf %15, %17 : vector<8x128xf32>
      %cst_16 = arith.constant 0.000000e+00 : f32
      %19 = vector.broadcast %cst_16 : f32 to vector<8x128xf32>
      %20 = arith.maximumf %18, %19 : vector<8x128xf32>
      %c0_17 = arith.constant 0 : index
      %c0_18 = arith.constant 0 : index
      %21 = vector.load %arg7[%c0_17, %c0_18] : memref<8x128xf32, #tpu.memory_space<vmem>>, vector<8x128xf32>
      tpu.vector_store %arg7[%c0_17, %c0_18], %20 {strides = array<i32>} : memref<8x128xf32, #tpu.memory_space<vmem>>, vector<8x128xf32>,
    } else {
    }
    return
  }
  func.func @transform_0(%arg0: i32, %arg1: i32, %arg2: i32) -> (i32, i32) {
    %c0_i32 = arith.constant 0 : i32
    return %arg0, %arg2 : i32, i32
  }
  func.func @transform_1(%arg0: i32, %arg1: i32, %arg2: i32) -> (i32, i32) {
    %c0_i32 = arith.constant 0 : i32
    return %arg2, %arg1 : i32, i32
  }
  func.func @transform_2(%arg0: i32, %arg1: i32, %arg2: i32) -> (i32, i32) {
    %c0_i32 = arith.constant 0 : i32
    %c0_i32_0 = arith.constant 0 : i32
    return %c0_i32, %arg1 : i32, i32
  }
  func.func @transform_3(%arg0: i32, %arg1: i32, %arg2: i32) -> (i32, i32) {
    %c0_i32 = arith.constant 0 : i32
    %c0_i32_0 = arith.constant 0 : i32
    return %c0_i32, %arg1 : i32, i32
  }
  func.func @transform_4(%arg0: i32, %arg1: i32, %arg2: i32) -> (i32, i32) {
    %c0_i32 = arith.constant 0 : i32
    return %arg0, %arg1 : i32, i32
  }
}

module attributes {stable_mosaic.version = 11 : i64} {
  func.func @_avgpool_kernel(%arg0: i32, %arg1: memref<1x1x64xf32, #tpu.memory_space<vmem>>, %arg2: memref<1x1x64xf32, #tpu.memory_space<vmem>>) attributes {dimension_semantics = [#tpu.dimension_semantics<parallel>], iteration_bounds = array<i64: 2>, scalar_prefetch = 0 : i64, scratch_operands = 0 : i64, tpu.core_type = #tpu.core_type<tc>, window_params = [{transform_indices = @transform_0, window_bounds = array<i64: 1, 1, 64>}, {transform_indices = @transform_1, window_bounds = array<i64: 1, 1, 64>}]} {
    %c0 = arith.constant 0 : index
    %c0_0 = arith.constant 0 : index
    %c0_1 = arith.constant 0 : index
    %0 = vector.load %arg1[%c0, %c0_0, %c0_1] : memref<1x1x64xf32, #tpu.memory_space<vmem>>, vector<1x1x64xf32>
    %cst = arith.constant dense<0.000000e+00> : vector<1x64xf32>
    %1 = vector.multi_reduction <add>, %0, %cst [1] : vector<1x1x64xf32> to vector<1x64xf32>
    %2 = vector.shape_cast %1 : vector<1x64xf32> to vector<1x1x64xf32>
    %cst_2 = arith.constant 1.000000e+00 : f32
    %3 = vector.broadcast %cst_2 : f32 to vector<1x1x64xf32>
    %4 = arith.divf %2, %3 : vector<1x1x64xf32>
    %c0_3 = arith.constant 0 : index
    %c0_4 = arith.constant 0 : index
    %c0_5 = arith.constant 0 : index
    %5 = vector.load %arg2[%c0_3, %c0_4, %c0_5] : memref<1x1x64xf32, #tpu.memory_space<vmem>>, vector<1x1x64xf32>
    tpu.vector_store %arg2[%c0_3, %c0_4, %c0_5], %4 {strides = array<i32>} : memref<1x1x64xf32, #tpu.memory_space<vmem>>, vector<1x1x64xf32>,
    return
  }
  func.func @transform_0(%arg0: i32) -> (i32, i32, i32) {
    %c0_i32 = arith.constant 0 : i32
    %c0_i32_0 = arith.constant 0 : i32
    %c0_i32_1 = arith.constant 0 : i32
    return %arg0, %c0_i32, %c0_i32_0 : i32, i32, i32
  }
  func.func @transform_1(%arg0: i32) -> (i32, i32, i32) {
    %c0_i32 = arith.constant 0 : i32
    %c0_i32_0 = arith.constant 0 : i32
    %c0_i32_1 = arith.constant 0 : i32
    return %arg0, %c0_i32, %c0_i32_0 : i32, i32, i32
  }
}

module attributes {stable_mosaic.version = 11 : i64} {
  func.func @_matmul_bn_act_kernel(%arg0: i32, %arg1: i32, %arg2: i32, %arg3: memref<8x288xbf16, #tpu.memory_space<vmem>>, %arg4: memref<288x128xbf16, #tpu.memory_space<vmem>>, %arg5: memref<1x128xf32, #tpu.memory_space<vmem>>, %arg6: memref<1x128xf32, #tpu.memory_space<vmem>>, %arg7: memref<8x128xf32, #tpu.memory_space<vmem>>, %arg8: memref<8x128xf32, #tpu.memory_space<vmem>>, %arg9: memref<8x128xf32, #tpu.memory_space<vmem>>) attributes {dimension_semantics = [#tpu.dimension_semantics<parallel>, #tpu.dimension_semantics<parallel>, #tpu.dimension_semantics<arbitrary>], iteration_bounds = array<i64: 1, 1, 1>, scalar_prefetch = 0 : i64, scratch_operands = 1 : i64, tpu.core_type = #tpu.core_type<tc>, window_params = [{transform_indices = @transform_0, window_bounds = array<i64: 8, 288>}, {transform_indices = @transform_1, window_bounds = array<i64: 288, 128>}, {transform_indices = @transform_2, window_bounds = array<i64: 1, 128>}, {transform_indices = @transform_3, window_bounds = array<i64: 1, 128>}, {transform_indices = @transform_4, window_bounds = array<i64: 8, 128>}, {transform_indices = @transform_5, window_bounds = array<i64: 8, 128>}]} {
    %c0_i32 = arith.constant 0 : i32
    %0 = arith.cmpi eq, %arg2, %c0_i32 : i32
    %1 = arith.extui %0 : i1 to i32
    %c0_i32_0 = arith.constant 0 : i32
    %2 = arith.cmpi ne, %1, %c0_i32_0 : i32
    scf.if %2 {
      %cst_10 = arith.constant 0.000000e+00 : f32
      %12 = vector.broadcast %cst_10 : f32 to vector<8x128xf32>
      %c0_11 = arith.constant 0 : index
      %c0_12 = arith.constant 0 : index
      %13 = vector.load %arg9[%c0_11, %c0_12] : memref<8x128xf32, #tpu.memory_space<vmem>>, vector<8x128xf32>
      tpu.vector_store %arg9[%c0_11, %c0_12], %12 {strides = array<i32>} : memref<8x128xf32, #tpu.memory_space<vmem>>, vector<8x128xf32>,
    } else {
    }
    %c0 = arith.constant 0 : index
    %c0_1 = arith.constant 0 : index
    %3 = vector.load %arg9[%c0, %c0_1] : memref<8x128xf32, #tpu.memory_space<vmem>>, vector<8x128xf32>
    %c0_2 = arith.constant 0 : index
    %c0_3 = arith.constant 0 : index
    %4 = vector.load %arg3[%c0_2, %c0_3] : memref<8x288xbf16, #tpu.memory_space<vmem>>, vector<8x288xbf16>
    %c0_4 = arith.constant 0 : index
    %c0_5 = arith.constant 0 : index
    %5 = vector.load %arg4[%c0_4, %c0_5] : memref<288x128xbf16, #tpu.memory_space<vmem>>, vector<288x128xbf16>
    %cst = arith.constant dense<0.000000e+00> : vector<8x128xf32>
    %6 = tpu.matmul %4, %5, %cst {dimension_numbers = #tpu.dot_dimension_numbers<[1], [0], [0], [1], [0, 0, 1, 1], [], []>} : vector<8x288xbf16>, vector<288x128xbf16>, vector<8x128xf32> -> vector<8x128xf32>
    %7 = arith.addf %3, %6 : vector<8x128xf32>
    %c0_6 = arith.constant 0 : index
    %c0_7 = arith.constant 0 : index
    %8 = vector.load %arg9[%c0_6, %c0_7] : memref<8x128xf32, #tpu.memory_space<vmem>>, vector<8x128xf32>
    tpu.vector_store %arg9[%c0_6, %c0_7], %7 {strides = array<i32>} : memref<8x128xf32, #tpu.memory_space<vmem>>, vector<8x128xf32>,
    %c0_i32_8 = arith.constant 0 : i32
    %9 = arith.cmpi eq, %arg2, %c0_i32_8 : i32
    %10 = arith.extui %9 : i1 to i32
    %c0_i32_9 = arith.constant 0 : i32
    %11 = arith.cmpi ne, %10, %c0_i32_9 : i32
    scf.if %11 {
      %c0_10 = arith.constant 0 : index
      %c0_11 = arith.constant 0 : index
      %12 = vector.load %arg9[%c0_10, %c0_11] : memref<8x128xf32, #tpu.memory_space<vmem>>, vector<8x128xf32>
      %c0_12 = arith.constant 0 : index
      %c0_13 = arith.constant 0 : index
      %13 = vector.load %arg5[%c0_12, %c0_13] : memref<1x128xf32, #tpu.memory_space<vmem>>, vector<1x128xf32>
      %14 = vector.broadcast %13 : vector<1x128xf32> to vector<8x128xf32>
      %15 = arith.mulf %12, %14 : vector<8x128xf32>
      %c0_14 = arith.constant 0 : index
      %c0_15 = arith.constant 0 : index
      %16 = vector.load %arg6[%c0_14, %c0_15] : memref<1x128xf32, #tpu.memory_space<vmem>>, vector<1x128xf32>
      %17 = vector.broadcast %16 : vector<1x128xf32> to vector<8x128xf32>
      %18 = arith.addf %15, %17 : vector<8x128xf32>
      %c0_16 = arith.constant 0 : index
      %c0_17 = arith.constant 0 : index
      %19 = vector.load %arg7[%c0_16, %c0_17] : memref<8x128xf32, #tpu.memory_space<vmem>>, vector<8x128xf32>
      %20 = arith.addf %18, %19 : vector<8x128xf32>
      %cst_18 = arith.constant 0.000000e+00 : f32
      %21 = vector.broadcast %cst_18 : f32 to vector<8x128xf32>
      %22 = arith.maximumf %20, %21 : vector<8x128xf32>
      %c0_19 = arith.constant 0 : index
      %c0_20 = arith.constant 0 : index
      %23 = vector.load %arg8[%c0_19, %c0_20] : memref<8x128xf32, #tpu.memory_space<vmem>>, vector<8x128xf32>
      tpu.vector_store %arg8[%c0_19, %c0_20], %22 {strides = array<i32>} : memref<8x128xf32, #tpu.memory_space<vmem>>, vector<8x128xf32>,
    } else {
    }
    return
  }
  func.func @transform_0(%arg0: i32, %arg1: i32, %arg2: i32) -> (i32, i32) {
    %c0_i32 = arith.constant 0 : i32
    return %arg0, %arg2 : i32, i32
  }
  func.func @transform_1(%arg0: i32, %arg1: i32, %arg2: i32) -> (i32, i32) {
    %c0_i32 = arith.constant 0 : i32
    return %arg2, %arg1 : i32, i32
  }
  func.func @transform_2(%arg0: i32, %arg1: i32, %arg2: i32) -> (i32, i32) {
    %c0_i32 = arith.constant 0 : i32
    %c0_i32_0 = arith.constant 0 : i32
    return %c0_i32, %arg1 : i32, i32
  }
  func.func @transform_3(%arg0: i32, %arg1: i32, %arg2: i32) -> (i32, i32) {
    %c0_i32 = arith.constant 0 : i32
    %c0_i32_0 = arith.constant 0 : i32
    return %c0_i32, %arg1 : i32, i32
  }
  func.func @transform_4(%arg0: i32, %arg1: i32, %arg2: i32) -> (i32, i32) {
    %c0_i32 = arith.constant 0 : i32
    return %arg0, %arg1 : i32, i32
  }
  func.func @transform_5(%arg0: i32, %arg1: i32, %arg2: i32) -> (i32, i32) {
    %c0_i32 = arith.constant 0 : i32
    return %arg0, %arg1 : i32, i32
  }
}

module attributes {stable_mosaic.version = 11 : i64} {
  func.func @_matmul_bn_act_kernel(%arg0: i32, %arg1: i32, %arg2: i32, %arg3: memref<8x64xbf16, #tpu.memory_space<vmem>>, %arg4: memref<64x128xbf16, #tpu.memory_space<vmem>>, %arg5: memref<1x128xf32, #tpu.memory_space<vmem>>, %arg6: memref<1x128xf32, #tpu.memory_space<vmem>>, %arg7: memref<8x128xf32, #tpu.memory_space<vmem>>, %arg8: memref<8x128xf32, #tpu.memory_space<vmem>>) attributes {dimension_semantics = [#tpu.dimension_semantics<parallel>, #tpu.dimension_semantics<parallel>, #tpu.dimension_semantics<arbitrary>], iteration_bounds = array<i64: 1, 1, 1>, scalar_prefetch = 0 : i64, scratch_operands = 1 : i64, tpu.core_type = #tpu.core_type<tc>, window_params = [{transform_indices = @transform_0, window_bounds = array<i64: 8, 64>}, {transform_indices = @transform_1, window_bounds = array<i64: 64, 128>}, {transform_indices = @transform_2, window_bounds = array<i64: 1, 128>}, {transform_indices = @transform_3, window_bounds = array<i64: 1, 128>}, {transform_indices = @transform_4, window_bounds = array<i64: 8, 128>}]} {
    %c0_i32 = arith.constant 0 : i32
    %0 = arith.cmpi eq, %arg2, %c0_i32 : i32
    %1 = arith.extui %0 : i1 to i32
    %c0_i32_0 = arith.constant 0 : i32
    %2 = arith.cmpi ne, %1, %c0_i32_0 : i32
    scf.if %2 {
      %cst_10 = arith.constant 0.000000e+00 : f32
      %12 = vector.broadcast %cst_10 : f32 to vector<8x128xf32>
      %c0_11 = arith.constant 0 : index
      %c0_12 = arith.constant 0 : index
      %13 = vector.load %arg8[%c0_11, %c0_12] : memref<8x128xf32, #tpu.memory_space<vmem>>, vector<8x128xf32>
      tpu.vector_store %arg8[%c0_11, %c0_12], %12 {strides = array<i32>} : memref<8x128xf32, #tpu.memory_space<vmem>>, vector<8x128xf32>,
    } else {
    }
    %c0 = arith.constant 0 : index
    %c0_1 = arith.constant 0 : index
    %3 = vector.load %arg8[%c0, %c0_1] : memref<8x128xf32, #tpu.memory_space<vmem>>, vector<8x128xf32>
    %c0_2 = arith.constant 0 : index
    %c0_3 = arith.constant 0 : index
    %4 = vector.load %arg3[%c0_2, %c0_3] : memref<8x64xbf16, #tpu.memory_space<vmem>>, vector<8x64xbf16>
    %c0_4 = arith.constant 0 : index
    %c0_5 = arith.constant 0 : index
    %5 = vector.load %arg4[%c0_4, %c0_5] : memref<64x128xbf16, #tpu.memory_space<vmem>>, vector<64x128xbf16>
    %cst = arith.constant dense<0.000000e+00> : vector<8x128xf32>
    %6 = tpu.matmul %4, %5, %cst {dimension_numbers = #tpu.dot_dimension_numbers<[1], [0], [0], [1], [0, 0, 1, 1], [], []>} : vector<8x64xbf16>, vector<64x128xbf16>, vector<8x128xf32> -> vector<8x128xf32>
    %7 = arith.addf %3, %6 : vector<8x128xf32>
    %c0_6 = arith.constant 0 : index
    %c0_7 = arith.constant 0 : index
    %8 = vector.load %arg8[%c0_6, %c0_7] : memref<8x128xf32, #tpu.memory_space<vmem>>, vector<8x128xf32>
    tpu.vector_store %arg8[%c0_6, %c0_7], %7 {strides = array<i32>} : memref<8x128xf32, #tpu.memory_space<vmem>>, vector<8x128xf32>,
    %c0_i32_8 = arith.constant 0 : i32
    %9 = arith.cmpi eq, %arg2, %c0_i32_8 : i32
    %10 = arith.extui %9 : i1 to i32
    %c0_i32_9 = arith.constant 0 : i32
    %11 = arith.cmpi ne, %10, %c0_i32_9 : i32
    scf.if %11 {
      %c0_10 = arith.constant 0 : index
      %c0_11 = arith.constant 0 : index
      %12 = vector.load %arg8[%c0_10, %c0_11] : memref<8x128xf32, #tpu.memory_space<vmem>>, vector<8x128xf32>
      %c0_12 = arith.constant 0 : index
      %c0_13 = arith.constant 0 : index
      %13 = vector.load %arg5[%c0_12, %c0_13] : memref<1x128xf32, #tpu.memory_space<vmem>>, vector<1x128xf32>
      %14 = vector.broadcast %13 : vector<1x128xf32> to vector<8x128xf32>
      %15 = arith.mulf %12, %14 : vector<8x128xf32>
      %c0_14 = arith.constant 0 : index
      %c0_15 = arith.constant 0 : index
      %16 = vector.load %arg6[%c0_14, %c0_15] : memref<1x128xf32, #tpu.memory_space<vmem>>, vector<1x128xf32>
      %17 = vector.broadcast %16 : vector<1x128xf32> to vector<8x128xf32>
      %18 = arith.addf %15, %17 : vector<8x128xf32>
      %c0_16 = arith.constant 0 : index
      %c0_17 = arith.constant 0 : index
      %19 = vector.load %arg7[%c0_16, %c0_17] : memref<8x128xf32, #tpu.memory_space<vmem>>, vector<8x128xf32>
      tpu.vector_store %arg7[%c0_16, %c0_17], %18 {strides = array<i32>} : memref<8x128xf32, #tpu.memory_space<vmem>>, vector<8x128xf32>,
    } else {
    }
    return
  }
  func.func @transform_0(%arg0: i32, %arg1: i32, %arg2: i32) -> (i32, i32) {
    %c0_i32 = arith.constant 0 : i32
    return %arg0, %arg2 : i32, i32
  }
  func.func @transform_1(%arg0: i32, %arg1: i32, %arg2: i32) -> (i32, i32) {
    %c0_i32 = arith.constant 0 : i32
    return %arg2, %arg1 : i32, i32
  }
  func.func @transform_2(%arg0: i32, %arg1: i32, %arg2: i32) -> (i32, i32) {
    %c0_i32 = arith.constant 0 : i32
    %c0_i32_0 = arith.constant 0 : i32
    return %c0_i32, %arg1 : i32, i32
  }
  func.func @transform_3(%arg0: i32, %arg1: i32, %arg2: i32) -> (i32, i32) {
    %c0_i32 = arith.constant 0 : i32
    %c0_i32_0 = arith.constant 0 : i32
    return %c0_i32, %arg1 : i32, i32
  }
  func.func @transform_4(%arg0: i32, %arg1: i32, %arg2: i32) -> (i32, i32) {
    %c0_i32 = arith.constant 0 : i32
    return %arg0, %arg1 : i32, i32
  }
}

</mosaic_0001>

<bundles_post_ra>
// kernel: _lambda_.28
= control target key start
LH: loop header
LB: loop body
LE: loop exit
PB: predicated region body
PF: predicated region fallthrough
CT: control target
= control target key end

     0   :  { %s940_s13 = smov 0   ;;  %s1125_s0 = inlined_call_operand.vmem [shape: f32[2,8,8,8], index: 0, kind: input, shape index: {}]   ;;  %s1126_s1 = inlined_call_operand.vmem [shape: f32[2,8,8,8], index: 1, kind: input, shape index: {}]   ;;  %s1127_s2 = inlined_call_operand.vmem [shape: f32[2,8,8,8], index: 2, kind: input, shape index: {}]   ;;  %s1128_s3 = inlined_call_operand.vmem [shape: f32[2,8,8,8], index: 3, kind: input, shape index: {}]   ;;  %s1129_s4 = inlined_call_operand.vmem [shape: f32[2,8,8,8], index: 4, kind: input, shape index: {}]   ;;  %s1130_s5 = inlined_call_operand.vmem [shape: f32[2,8,8,8], index: 5, kind: input, shape index: {}]   ;;  %s1131_s6 = inlined_call_operand.vmem [shape: f32[2,8,8,8], index: 6, kind: input, shape index: {}]   ;;  %s1132_s7 = inlined_call_operand.vmem [shape: f32[2,8,8,8], index: 7, kind: input, shape index: {}]   ;;  %s1133_s8 = inlined_call_operand.vmem [shape: f32[2,8,8,8], index: 8, kind: input, shape index: {}]   ;;  %s1134_s9 = inlined_call_operand.vmem [shape: f32[1,8,8,8], index: 9, kind: input, shape index: {}]   ;;  %s1135_s10 = inlined_call_operand.vmem [shape: f32[2,8,8,8], index: 10, kind: output, shape index: {}]  }
   0x1 LB: > { %s832_s14 = sadd.s32 4294967295, %s883_s13   ;;  %p836_p0 = scmp.ge.s32.totalorder %s883_s13, 1  ;;  %s883_s13 = sphi %s940_s13, %s20_s13  }
   0x2   : > { %p392_p1 = scmp.lt.s32.totalorder %s883_s13, 3 }
   0x4   : > { %p393_p2 = pnand %p836_p0, %p392_p1 }
   0x5   : > { %p470_p3 = scmp.lt.s32.totalorder (!%p393_p2), %s832_s14, 1  ;;  %v656_v42 = vld [vmem:[%s1134_s9] sm:$0xff] (!%p393_p2)  ;;  %v657_v50 = vld [vmem:[%s1134_s9 + $0x8] sm:$0xff] (!%p393_p2)  ;;  %vm672_vm0 = vcmask (!%p393_p2), 64512  }
   0x6   : > { %396 = sbr.rel (%p393_p2) target bundleno = 54 (0x36), region = 60 }
   0xd   : > { %s1137_s14 = smov (!%p470_p3, %s832_s14), 1 }
   0xe   : > { %s948_s15 = sshll.u32 %s1137_s14, 6 }
   0xf   : > { %s954_s18 = scalar_lea.vmem %s1125_s0, %s948_s15  ;;  %s960_s21 = scalar_lea.vmem %s1126_s1, %s948_s15 }
  0x10   : > { %s966_s24 = scalar_lea.vmem %s1127_s2, %s948_s15  ;;  %s972_s27 = scalar_lea.vmem %s1128_s3, %s948_s15  ;;  %v520_v0 = vld [vmem:[%s954_s18] sm:$0xff]  ;;  %v521_v2 = vld [vmem:[%s954_s18 + $0x8] sm:$0xff]  ;;  %v522_v17 = vld [vmem:[%s954_s18 + $0x10] sm:$0xff] }
  0x11   : > { %v528_v1 = vld [vmem:[%s960_s21] sm:$0xff]  ;;  %s981_s30 = scalar_lea.vmem %s1129_s4, %s948_s15  ;;  %v529_v5 = vld [vmem:[%s960_s21 + $0x8] sm:$0xff]  ;;  %s989_s14 = scalar_lea.vmem %s1130_s5, %s948_s15  ;;  %v530_v18 = vld [vmem:[%s960_s21 + $0x10] sm:$0xff] }
  0x12   : > { %v536_v3 = vmax.f32 %v520_v0, %v528_v1  ;;  %v544_v4 = vld [vmem:[%s966_s24] sm:$0xff]  ;;  %v537_v7 = vmax.f32 %v521_v2, %v529_v5  ;;  %v545_v8 = vld [vmem:[%s966_s24 + $0x8] sm:$0xff]  ;;  %s999_s19 = scalar_lea.vmem %s1131_s6, %s948_s15  ;;  %v546_v19 = vld [vmem:[%s966_s24 + $0x10] sm:$0xff]  ;;  %s1010_s23 = scalar_lea.vmem %s1132_s7, %s948_s15  ;;  %v538_v22 = vmax.f32 %v522_v17, %v530_v18 }
  0x13   : > { %v560_v6 = vld [vmem:[%s972_s27] sm:$0xff]  ;;  %v561_v10 = vld [vmem:[%s972_s27 + $0x8] sm:$0xff]  ;;  %s1016_s28 = scalar_lea.vmem %s1133_s8, %s948_s15  ;;  %v562_v26 = vld [vmem:[%s972_s27 + $0x10] sm:$0xff]  ;;  %s1052_s22 = scalar_lea.vmem %s1135_s10, %s948_s15 }
  0x14   : > { %v552_v9 = vmax.f32 %v536_v3, %v544_v4  ;;  %v576_v11 = vld [vmem:[%s981_s30] sm:$0xff]  ;;  %v553_v12 = vmax.f32 %v537_v7, %v545_v8  ;;  %v577_v15 = vld [vmem:[%s981_s30 + $0x8] sm:$0xff]  ;;  %v554_v28 = vmax.f32 %v538_v22, %v546_v19  ;;  %v523_v29 = vld [vmem:[%s954_s18 + $0x18] sm:$0xff] }
  0x15   : > { %v592_v14 = vld [vmem:[%s989_s14] sm:$0xff]  ;;  %v593_v21 = vld [vmem:[%s989_s14 + $0x8] sm:$0xff]  ;;  %v531_v30 = vld [vmem:[%s960_s21 + $0x18] sm:$0xff] }
  0x16   : > { %v568_v13 = vmax.f32 %v552_v9, %v560_v6  ;;  %v569_v16 = vmax.f32 %v553_v12, %v561_v10  ;;  %v608_v23 = vld [vmem:[%s999_s19] sm:$0xff]  ;;  %v609_v25 = vld [vmem:[%s999_s19 + $0x8] sm:$0xff]  ;;  %v547_v31 = vld [vmem:[%s966_s24 + $0x18] sm:$0xff]  ;;  %v539_v36 = vmax.f32 %v523_v29, %v531_v30  ;;  %v570_v39 = vmax.f32 %v554_v28, %v562_v26 }
  0x17   : > { %v624_v32 = vld [vmem:[%s1010_s23] sm:$0xff]  ;;  %v578_v35 = vld [vmem:[%s981_s30 + $0x10] sm:$0xff]  ;;  %v625_v38 = vld [vmem:[%s1010_s23 + $0x8] sm:$0xff] }
  0x18   : > { %v584_v20 = vmax.f32 %v568_v13, %v576_v11  ;;  %v585_v24 = vmax.f32 %v569_v16, %v577_v15  ;;  %v640_v33 = vld [vmem:[%s1016_s28] sm:$0xff]  ;;  %v594_v40 = vld [vmem:[%s989_s14 + $0x10] sm:$0xff]  ;;  %v563_v41 = vld [vmem:[%s972_s27 + $0x18] sm:$0xff]  ;;  %v555_v44 = vmax.f32 %v539_v36, %v547_v31  ;;  %v586_v51 = vmax.f32 %v570_v39, %v578_v35 }
  0x19   : > { %v524_v45 = vld [vmem:[%s954_s18 + $0x20] sm:$0xff]  ;;  %v641_v49 = vld [vmem:[%s1016_s28 + $0x8] sm:$0xff]  ;;  %v579_v52 = vld [vmem:[%s981_s30 + $0x18] sm:$0xff] }
  0x1a   : > { %v600_v27 = vmax.f32 %v584_v20, %v592_v14  ;;  %v601_v34 = vmax.f32 %v585_v24, %v593_v21  ;;  %v532_v46 = vld [vmem:[%s960_s21 + $0x20] sm:$0xff]  ;;  %v610_v55 = vld [vmem:[%s999_s19 + $0x10] sm:$0xff]  ;;  %v571_v56 = vmax.f32 %v555_v44, %v563_v41  ;;  %v595_v57 = vld [vmem:[%s989_s14 + $0x18] sm:$0xff]  ;;  %v602_v60 = vmax.f32 %v586_v51, %v594_v40 }
  0x1b   : > { %v548_v47 = vld [vmem:[%s966_s24 + $0x20] sm:$0xff]  ;;  %v540_v53 = vmax.f32 %v524_v45, %v532_v46  ;;  %v525_v62 = vld [vmem:[%s954_s18 + $0x28] sm:$0xff]  ;;  %v626_v2 = vld [vmem:[%s1010_s23 + $0x10] sm:$0xff] }
  0x1c   : > { %v616_v37 = vmax.f32 %v600_v27, %v608_v23  ;;  %v617_v43 = vmax.f32 %v601_v34, %v609_v25  ;;  %v564_v58 = vld [vmem:[%s972_s27 + $0x20] sm:$0xff]  ;;  %v533_v63 = vld [vmem:[%s960_s21 + $0x28] sm:$0xff]  ;;  %v642_v3 = vld [vmem:[%s1016_s28 + $0x10] sm:$0xff]  ;;  %v587_v4 = vmax.f32 %v571_v56, %v579_v52  ;;  %v618_v8 = vmax.f32 %v602_v60, %v610_v55 }
  0x1d   : > { %v556_v61 = vmax.f32 %v540_v53, %v548_v47  ;;  %v549_v0 = vld [vmem:[%s966_s24 + $0x28] sm:$0xff]  ;;  %v580_v5 = vld [vmem:[%s981_s30 + $0x20] sm:$0xff]  ;;  %v541_v6 = vmax.f32 %v525_v62, %v533_v63  ;;  %v611_v9 = vld [vmem:[%s999_s19 + $0x18] sm:$0xff] }
  0x1e   : > { %v632_v48 = vmax.f32 %v616_v37, %v624_v32  ;;  %v633_v54 = vmax.f32 %v617_v43, %v625_v38  ;;  %v596_v11 = vld [vmem:[%s989_s14 + $0x20] sm:$0xff]  ;;  %v565_v12 = vld [vmem:[%s972_s27 + $0x28] sm:$0xff]  ;;  %v658_v14 = vld [vmem:[%s1134_s9 + $0x10] sm:$0xff]  ;;  %v603_v15 = vmax.f32 %v587_v4, %v595_v57  ;;  %v634_v20 = vmax.f32 %v618_v8, %v626_v2 }
  0x1f   : > { %v572_v10 = vmax.f32 %v556_v61, %v564_v58  ;;  %v557_v16 = vmax.f32 %v541_v6, %v549_v0  ;;  %v526_v17 = vld [vmem:[%s954_s18 + $0x30] sm:$0xff]  ;;  %v627_v21 = vld [vmem:[%s1010_s23 + $0x18] sm:$0xff]  ;;  %v581_v24 = vld [vmem:[%s981_s30 + $0x28] sm:$0xff] }
  0x20   : > { %v648_v59 = vmax.f32 %v632_v48, %v640_v33  ;;  %v649_v1 = vmax.f32 %v633_v54, %v641_v49  ;;  %v534_v18 = vld [vmem:[%s960_s21 + $0x30] sm:$0xff]  ;;  %v643_v22 = vld [vmem:[%s1016_s28 + $0x18] sm:$0xff]  ;;  %v619_v26 = vmax.f32 %v603_v15, %v611_v9  ;;  %v612_v27 = vld [vmem:[%s999_s19 + $0x20] sm:$0xff]  ;;  %v650_v31 = vmax.f32 %v634_v20, %v642_v3 }
  0x21   : > { %v550_v19 = vld [vmem:[%s966_s24 + $0x30] sm:$0xff]  ;;  %v588_v23 = vmax.f32 %v572_v10, %v580_v5  ;;  %v542_v25 = vmax.f32 %v526_v17, %v534_v18  ;;  %v573_v28 = vmax.f32 %v557_v16, %v565_v12  ;;  %v597_v29 = vld [vmem:[%s989_s14 + $0x28] sm:$0xff]  ;;  %v527_v34 = vld [vmem:[%s954_s18 + $0x38] sm:$0xff] }
  0x22   : > { %v664_v7 = vadd.f32 %v656_v42, %v648_v59  ;;  %v665_v13 = vadd.f32 %v657_v50, %v649_v1  ;;  %v566_v30 = vld [vmem:[%s972_s27 + $0x30] sm:$0xff]  ;;  %v535_v35 = vld [vmem:[%s960_s21 + $0x38] sm:$0xff]  ;;  %v635_v37 = vmax.f32 %v619_v26, %v627_v21  ;;  %v628_v38 = vld [vmem:[%s1010_s23 + $0x20] sm:$0xff]  ;;  %v666_v42 = vadd.f32 %v658_v14, %v650_v31 }
  0x23   : > { %v604_v32 = vmax.f32 %v588_v23, %v596_v11  ;;  %v558_v33 = vmax.f32 %v542_v25, %v550_v19  ;;  %v551_v36 = vld [vmem:[%s966_s24 + $0x38] sm:$0xff]  ;;  %v589_v39 = vmax.f32 %v573_v28, %v581_v24  ;;  %v582_v40 = vld [vmem:[%s981_s30 + $0x30] sm:$0xff]  ;;  %v543_v41 = vmax.f32 %v527_v34, %v535_v35  ;;  %v613_v45 = vld [vmem:[%s999_s19 + $0x28] sm:$0xff] }
  0x24   : > { %673 = vst.msk [vmem:[%s1052_s22] sm:$0xff] %vm672_vm0, %v664_v7  ;;  %674 = vst.msk [vmem:[%s1052_s22 + $0x8] sm:$0xff] %vm672_vm0, %v665_v13  ;;  %v659_v43 = vld [vmem:[%s1134_s9 + $0x18] sm:$0xff]  ;;  %v651_v48 = vmax.f32 %v635_v37, %v643_v22  ;;  %v644_v49 = vld [vmem:[%s1016_s28 + $0x20] sm:$0xff] }
  0x25   : > { %v620_v44 = vmax.f32 %v604_v32, %v612_v27  ;;  %v574_v46 = vmax.f32 %v558_v33, %v566_v30  ;;  %v567_v47 = vld [vmem:[%s972_s27 + $0x38] sm:$0xff]  ;;  %v605_v50 = vmax.f32 %v589_v39, %v597_v29  ;;  %v598_v51 = vld [vmem:[%s989_s14 + $0x30] sm:$0xff]  ;;  %v559_v52 = vmax.f32 %v543_v41, %v551_v36  ;;  %675 = vst.msk [vmem:[%s1052_s22 + $0x10] sm:$0xff] %vm672_vm0, %v666_v42  ;;  %v629_v54 = vld [vmem:[%s1010_s23 + $0x28] sm:$0xff] }
  0x26   : > { %v583_v56 = vld [vmem:[%s981_s30 + $0x38] sm:$0xff]  ;;  %v667_v57 = vadd.f32 %v659_v43, %v651_v48  ;;  %v660_v58 = vld [vmem:[%s1134_s9 + $0x20] sm:$0xff]  ;;  %v614_v60 = vld [vmem:[%s999_s19 + $0x30] sm:$0xff] }
  0x27   : > { %v636_v53 = vmax.f32 %v620_v44, %v628_v38  ;;  %v590_v55 = vmax.f32 %v574_v46, %v582_v40  ;;  %v621_v59 = vmax.f32 %v605_v50, %v613_v45  ;;  %v575_v61 = vmax.f32 %v559_v52, %v567_v47  ;;  %v645_v63 = vld [vmem:[%s1016_s28 + $0x28] sm:$0xff]  ;;  %v599_v1 = vld [vmem:[%s989_s14 + $0x38] sm:$0xff]  ;;  %v630_v3 = vld [vmem:[%s1010_s23 + $0x30] sm:$0xff] }
  0x28   : > { %676 = vst.msk [vmem:[%s1052_s22 + $0x18] sm:$0xff] %vm672_vm0, %v667_v57  ;;  %v661_v6 = vld [vmem:[%s1134_s9 + $0x28] sm:$0xff]  ;;  %v615_v8 = vld [vmem:[%s999_s19 + $0x38] sm:$0xff]  ;;  %v646_v10 = vld [vmem:[%s1016_s28 + $0x30] sm:$0xff] }
  0x29   : > { %v652_v62 = vmax.f32 %v636_v53, %v644_v49  ;;  %v606_v0 = vmax.f32 %v590_v55, %v598_v51  ;;  %v637_v2 = vmax.f32 %v621_v59, %v629_v54  ;;  %v591_v4 = vmax.f32 %v575_v61, %v583_v56  ;;  %v631_v13 = vld [vmem:[%s1010_s23 + $0x38] sm:$0xff]  ;;  %v662_v15 = vld [vmem:[%s1134_s9 + $0x30] sm:$0xff] }
  0x2a   : > { %v647_v18 = vld [vmem:[%s1016_s28 + $0x38] sm:$0xff] }
  0x2b   : > { %v668_v5 = vadd.f32 %v660_v58, %v652_v62  ;;  %v622_v7 = vmax.f32 %v606_v0, %v614_v60  ;;  %v653_v9 = vmax.f32 %v637_v2, %v645_v63  ;;  %v607_v11 = vmax.f32 %v591_v4, %v599_v1  ;;  %v663_v21 = vld [vmem:[%s1134_s9 + $0x38] sm:$0xff] }
  0x2d   : > { %677 = vst.msk [vmem:[%s1052_s22 + $0x20] sm:$0xff] %vm672_vm0, %v668_v5  ;;  %v638_v12 = vmax.f32 %v622_v7, %v630_v3  ;;  %v669_v14 = vadd.f32 %v661_v6, %v653_v9  ;;  %v623_v16 = vmax.f32 %v607_v11, %v615_v8 }
  0x2f   : > { %v654_v17 = vmax.f32 %v638_v12, %v646_v10  ;;  %678 = vst.msk [vmem:[%s1052_s22 + $0x28] sm:$0xff] %vm672_vm0, %v669_v14  ;;  %v639_v19 = vmax.f32 %v623_v16, %v631_v13 }
  0x31   : > { %v670_v20 = vadd.f32 %v662_v15, %v654_v17  ;;  %v655_v22 = vmax.f32 %v639_v19, %v647_v18 }
  0x33   : > { %679 = vst.msk [vmem:[%s1052_s22 + $0x30] sm:$0xff] %vm672_vm0, %v670_v20  ;;  %v671_v23 = vadd.f32 %v663_v21, %v655_v22 }
  0x35   : > { %680 = vst.msk [vmem:[%s1052_s22 + $0x38] sm:$0xff] %vm672_vm0, %v671_v23 }
  0x36 PF: > { %s20_s13 = sadd.s32 1, %s883_s13  }
  0x37   : > { %p17_p4 = scmp.ge.s32.totalorder %s20_s13, 4  }
  0x39   :  { %19 = sbr.rel (!%p17_p4) target bundleno = 1 (0x1), region = 114 }

// kernel: _lambda_.29
= control target key start
LH: loop header
LB: loop body
LE: loop exit
PB: predicated region body
PF: predicated region fallthrough
CT: control target
= control target key end

     0   :  { %vm136_vm0 = vcmask 1043456   ;;  %vm111_vm1 = vcmask 64512   ;;  %s525_s1 = inlined_call_operand.vmem [shape: bf16[8,128], index: 1, kind: input, shape index: {}]   ;;  %s526_s0 = inlined_call_operand.vmem [shape: bf16[128,8], index: 0, kind: input, shape index: {}]   ;;  %s527_s2 = inlined_call_operand.vmem [shape: f32[1,128], index: 2, kind: input, shape index: {}]   ;;  %s528_s3 = inlined_call_operand.vmem [shape: f32[1,128], index: 3, kind: input, shape index: {}]   ;;  %s529_s4 = inlined_call_operand.vmem [shape: f32[128,128], index: 4, kind: output, shape index: {}]  }
   0x1   :  { %v70_v0 = vld [vmem:[%s525_s1] sm:$0xf]  ;;  %v405_v4 = vld [vmem:[%s526_s0 + $0x8] sm:$0xff]   ;;  %v407_v6 = vld [vmem:[%s526_s0 + $0x10] sm:$0xff]  }
   0x2   :  { %401 = vmatprep.subr.msk.bf16.mxu0 %vm136_vm0, %v70_v0  ;;  %402 = vmatprep.subr.msk.bf16.mxu1 %vm136_vm0, %v70_v0  ;;  %v138_v1 = vsel %vm136_vm0, %v70_v0, 0  ;;  %v403_v2 = vld [vmem:[%s526_s0] sm:$0xff]   ;;  %v406_v5 = vld [vmem:[%s526_s0 + $0x28] sm:$0xff]   ;;  %v408_v7 = vld [vmem:[%s526_s0 + $0x30] sm:$0xff]  }
   0x3   :  { %382 = vmatpush3.bf16.msra.mxu0 %v138_v1  ;;  %400 = vmatpush3.bf16.msra.mxu1 %v138_v1  ;;  %v404_v3 = vld [vmem:[%s526_s0 + $0x20] sm:$0xff]   ;;  %v409_v8 = vld [vmem:[%s526_s0 + $0x18] sm:$0xff]  }
   0x4   :  { %383 = vmatprep.mubr.msk.bf16.mxu0 %vm111_vm1, %v403_v2  ;;  %391 = vmatprep.mubr.msk.bf16.mxu1 %vm111_vm1, %v404_v3  ;;  %v410_v9 = vld [vmem:[%s526_s0 + $0x38] sm:$0xff]   ;;  %v370_v10 = vld [vmem:[%s527_s2] ss:$0 sm:$0xff] }
   0x5   :  { %v371_v12 = vld [vmem:[%s528_s3] ss:$0 sm:$0xff] }
   0x6   :  { %384 = vmatmul.mubr.msk.bf16.vlgmr.msra.gmra.mrb[0].mxu0 %vm111_vm1, %v405_v4  ;;  %392 = vmatmul.mubr.msk.bf16.vlgmr.msra.gmra.mrb[0].mxu1 %vm111_vm1, %v406_v5 }
   0x7   :  { %387 = vmatprep.mubr.msk.bf16.mxu0 %vm111_vm1, %v407_v6  ;;  %395 = vmatprep.mubr.msk.bf16.mxu1 %vm111_vm1, %v408_v7 }
   0xe   :  { %388 = vmatmul.mubr.msk.bf16.gmra.mrb[4].mxu0 %vm111_vm1, %v409_v8  ;;  %396 = vmatmul.mubr.msk.bf16.gmra.mrb[4].mxu1 %vm111_vm1, %v410_v9 }
  0xd9   :  { %v385_v11 = vpop.f32.mrb[0].mxu0  ;;  %v393_v14 = vpop.f32.mrb[0].mxu1 }
  0xda   :  { %v297_v13 = vmul.f32 %v385_v11, %v370_v10  ;;  %v174_v15 = vpop.f32.mrb[1].mxu0  ;;  %v305_v16 = vmul.f32 %v393_v14, %v370_v10  ;;  %v206_v18 = vpop.f32.mrb[1].mxu1 }
  0xdb   :  { %v295_v17 = vmul.f32 %v370_v10, %v174_v15  ;;  %v386_v19 = vpop.f32.mrb[2].mxu0  ;;  %v303_v21 = vmul.f32 %v370_v10, %v206_v18  ;;  %v394_v23 = vpop.f32.mrb[2].mxu1 }
  0xdc   :  { %v320_v20 = vadd.f32 %v371_v12, %v297_v13  ;;  %v298_v22 = vmul.f32 %v386_v19, %v370_v10  ;;  %v177_v24 = vpop.f32.mrb[3].mxu0  ;;  %v328_v25 = vadd.f32 %v371_v12, %v305_v16  ;;  %v306_v27 = vmul.f32 %v394_v23, %v370_v10  ;;  %v209_v29 = vpop.f32.mrb[3].mxu1 }
  0xdd   :  { %v318_v26 = vadd.f32 %v371_v12, %v295_v17  ;;  %v296_v28 = vmul.f32 %v370_v10, %v177_v24  ;;  %v326_v30 = vadd.f32 %v371_v12, %v303_v21  ;;  %v304_v32 = vmul.f32 %v370_v10, %v209_v29 }
  0xde   :  { %336 = vst [vmem:[%s529_s4 + $0x10] sm:$0xff] %v320_v20  ;;  %v321_v31 = vadd.f32 %v371_v12, %v298_v22  ;;  %344 = vst [vmem:[%s529_s4 + $0x50] sm:$0xff] %v328_v25  ;;  %v329_v33 = vadd.f32 %v371_v12, %v306_v27 }
  0xdf   :  { %334 = vst [vmem:[%s529_s4] sm:$0xff] %v318_v26  ;;  %v319_v34 = vadd.f32 %v371_v12, %v296_v28  ;;  %342 = vst [vmem:[%s529_s4 + $0x40] sm:$0xff] %v326_v30  ;;  %v327_v35 = vadd.f32 %v371_v12, %v304_v32 }
  0xe0   :  { %337 = vst [vmem:[%s529_s4 + $0x18] sm:$0xff] %v321_v31  ;;  %345 = vst [vmem:[%s529_s4 + $0x58] sm:$0xff] %v329_v33 }
  0xe1   :  { %335 = vst [vmem:[%s529_s4 + $0x8] sm:$0xff] %v319_v34  ;;  %v389_v36 = vpop.f32.mrb[4].mxu0  ;;  %343 = vst [vmem:[%s529_s4 + $0x48] sm:$0xff] %v327_v35  ;;  %v397_v38 = vpop.f32.mrb[4].mxu1 }
  0xe2   :  { %v301_v37 = vmul.f32 %v389_v36, %v370_v10  ;;  %v190_v39 = vpop.f32.mrb[5].mxu0  ;;  %v309_v40 = vmul.f32 %v397_v38, %v370_v10  ;;  %v222_v42 = vpop.f32.mrb[5].mxu1 }
  0xe3   :  { %v299_v41 = vmul.f32 %v370_v10, %v190_v39  ;;  %v390_v43 = vpop.f32.mrb[6].mxu0  ;;  %v307_v45 = vmul.f32 %v370_v10, %v222_v42  ;;  %v398_v47 = vpop.f32.mrb[6].mxu1 }
  0xe4   :  { %v324_v44 = vadd.f32 %v371_v12, %v301_v37  ;;  %v302_v46 = vmul.f32 %v390_v43, %v370_v10  ;;  %v193_v48 = vpop.f32.mrb[7].mxu0  ;;  %v332_v49 = vadd.f32 %v371_v12, %v309_v40  ;;  %v310_v51 = vmul.f32 %v398_v47, %v370_v10  ;;  %v225_v53 = vpop.f32.mrb[7].mxu1 }
  0xe5   :  { %v322_v50 = vadd.f32 %v371_v12, %v299_v41  ;;  %v300_v52 = vmul.f32 %v370_v10, %v193_v48  ;;  %v330_v54 = vadd.f32 %v371_v12, %v307_v45  ;;  %v308_v56 = vmul.f32 %v370_v10, %v225_v53 }
  0xe6   :  { %340 = vst [vmem:[%s529_s4 + $0x30] sm:$0xff] %v324_v44  ;;  %v325_v55 = vadd.f32 %v371_v12, %v302_v46  ;;  %348 = vst [vmem:[%s529_s4 + $0x70] sm:$0xff] %v332_v49  ;;  %v333_v57 = vadd.f32 %v371_v12, %v310_v51 }
  0xe7   :  { %338 = vst [vmem:[%s529_s4 + $0x20] sm:$0xff] %v322_v50  ;;  %v323_v58 = vadd.f32 %v371_v12, %v300_v52  ;;  %346 = vst [vmem:[%s529_s4 + $0x60] sm:$0xff] %v330_v54  ;;  %v331_v59 = vadd.f32 %v371_v12, %v308_v56 }
  0xe8   :  { %341 = vst [vmem:[%s529_s4 + $0x38] sm:$0xff] %v325_v55  ;;  %349 = vst [vmem:[%s529_s4 + $0x78] sm:$0xff] %v333_v57 }
  0xe9   :  { %339 = vst [vmem:[%s529_s4 + $0x28] sm:$0xff] %v323_v58  ;;  %347 = vst [vmem:[%s529_s4 + $0x68] sm:$0xff] %v331_v59 }

// kernel: _lambda_.27
= control target key start
LH: loop header
LB: loop body
LE: loop exit
PB: predicated region body
PF: predicated region fallthrough
CT: control target
= control target key end

     0   :  { %s1412_s15 = smov 0   ;;  %s1414_s16 = smov 0   ;;  %s1640_s0 = inlined_call_operand.vmem [shape: bf16[512,147], index: 0, kind: input, shape index: {}]   ;;  %s1641_s1 = inlined_call_operand.vmem [shape: bf16[147,128], index: 1, kind: input, shape index: {}]   ;;  %s1642_s2 = inlined_call_operand.vmem [shape: f32[1,128], index: 2, kind: input, shape index: {}]   ;;  %s1643_s3 = inlined_call_operand.vmem [shape: f32[1,128], index: 3, kind: input, shape index: {}]   ;;  %s1644_s4 = inlined_call_operand.vmem [shape: f32[512,128], index: 4, kind: output, shape index: {}]  }
   0x1   :  { %s1416_s17 = smov 0  }
   0x2 LB: > { %s33_s18 = sadd.s32 1, %s1379_s16  ;;  %p1188_p0 = scmp.ge.s32.totalorder %s1383_s17, 1  ;;  %s1383_s17 = sphi %s1416_s17, %s14_s17   ;;  %s1379_s16 = sphi %s1414_s16, %s1646_s16   ;;  %s1375_s15 = sphi %s1412_s15, %s1645_s15  }
   0x3   : > { %p35_p1 = scmp.ge.s32.totalorder %s33_s18, 2  ;;  %p224_p2 = scmp.lt.s32.totalorder %s1383_s17, 3 }
   0x5   : > { %s1648_s18 = smov (%p35_p1, %s33_s18), 0  ;;  %p225_p3 = pnand %p1188_p0, %p224_p2 }
   0x6   : > { %v1303_v0 = vld [vmem:[%s1641_s1] sm:$0xff] (!%p225_p3)   ;;  %v1385_v1 = vmov (!%p225_p3), 0   ;;  %v1304_v2 = vld [vmem:[%s1641_s1 + $0x8] sm:$0xff] (!%p225_p3)   ;;  %v1305_v3 = vld [vmem:[%s1641_s1 + $0x10] sm:$0xff] (!%p225_p3)   ;;  %s1189_s25 = sshll.u32 (!%p225_p3), %s1375_s15, 5  ;;  %vm629_vm0 = vcmask (!%p225_p3), 154624  }
   0x7   : > { %228 = sbr.rel (%p225_p3) target bundleno = 322 (0x142), region = 36  ;;  %685 = vmatprep.subr.bf16.mxu0 (!%p225_p3), %v1385_v1  ;;  %1257 = vmatprep.subr.bf16.mxu1 (!%p225_p3), %v1385_v1  ;;  %p274_p4 = scmp.lt.s32.totalorder (!%p225_p3), %s1189_s25, 63  ;;  %v1306_v4 = vld [vmem:[%s1641_s1 + $0x18] sm:$0xff] (!%p225_p3)   ;;  %v1307_v5 = vld [vmem:[%s1641_s1 + $0x20] sm:$0xff] (!%p225_p3)   ;;  %v1308_v8 = vld [vmem:[%s1641_s1 + $0x28] sm:$0xff] (!%p225_p3)   ;;  %vm678_vm1 = vcmask (!%p225_p3), 1040384  }
   0x8   : > { %686 = vmatpush1.bf16.msra.mxu0 (!%p225_p3), %v1303_v0  ;;  %1267 = vmatpush1.bf16.msra.mxu1 (!%p225_p3), %v1303_v0  ;;  %v1309_v9 = vld [vmem:[%s1641_s1 + $0x30] sm:$0xff] (!%p225_p3)   ;;  %v1310_v10 = vld [vmem:[%s1641_s1 + $0x38] sm:$0xff] (!%p225_p3)   ;;  %vm679_vm2 = vcmask (!%p225_p3), 1041408   ;;  %v1386_v11 = vmov (!%p225_p3), 65535   ;;  %v1311_v13 = vld [vmem:[%s1641_s1 + $0x40] sm:$0xff] (!%p225_p3)  }
   0x9   : > { %687 = vmatprep.subr.bf16.mxu0 (!%p225_p3), %v1385_v1  ;;  %1258 = vmatprep.subr.bf16.mxu1 (!%p225_p3), %v1385_v1  ;;  %v680_v12 = vsel (!%p225_p3), %vm678_vm1, 4294967295, %v1386_v11  ;;  %v1312_v14 = vld [vmem:[%s1641_s1 + $0x48] ss:$0 sps:$4 sm:$0x33] (!%p225_p3)   ;;  %v1521_v47 = vld [vmem:[%s1642_s2] ss:$0 sm:$0xff] (!%p225_p3) }
   0xa   : > { %v681_v15 = vsel (!%p225_p3), %vm679_vm2, %v680_v12, 0  ;;  %v1526_v49 = vld [vmem:[%s1643_s3] ss:$0 sm:$0xff] (!%p225_p3) }
   0xb   : > { %v683_v16 = vand.u32 (!%p225_p3), %v1312_v14, %v681_v15 }
   0xc   : > { %688 = vmatpush1.bf16.msra.mxu0 (!%p225_p3), %v1304_v2  ;;  %1268 = vmatpush1.bf16.msra.mxu1 (!%p225_p3), %v1304_v2 }
   0xd   : > { %689 = vmatprep.subr.bf16.mxu0 (!%p225_p3), %v1385_v1  ;;  %1259 = vmatprep.subr.bf16.mxu1 (!%p225_p3), %v1385_v1 }
   0xe   : > { %s1650_s25 = smov (!%p274_p4, %s1189_s25), 63 }
   0xf   : > { %s1256_s28 = sshll.u32 %s1650_s25, 3 }
  0x10   : > { %690 = vmatpush1.bf16.msra.mxu0 %v1305_v3  ;;  %1269 = vmatpush1.bf16.msra.mxu1 %v1305_v3  ;;  %s1450_s5 = scalar_lea.vmem %s1640_s0, %s1256_s28  ;;  %s1535_s29 = scalar_lea.vmem %s1644_s4, %s1256_s28 }
  0x11   : > { %691 = vmatprep.subr.bf16.mxu0 %v1385_v1  ;;  %1260 = vmatprep.subr.bf16.mxu1 %v1385_v1  ;;  %v1315_v6 = vld [vmem:[%s1450_s5 + $0x4] ss:$8 sps:$4 sm:$0xff]   ;;  %v1313_v17 = vld [vmem:[%s1450_s5] ss:$8 sps:$4 sm:$0xff]   ;;  %v1319_v19 = vld [vmem:[%s1450_s5 + $0x14] ss:$8 sps:$4 sm:$0xff]  }
  0x12   : > { %v1318_v7 = vld [vmem:[%s1450_s5 + $0x84] ss:$8 sps:$4 sm:$0xff]   ;;  %1236 = vmatprep.mubr.msk.bf16.mxu0 %vm629_vm0, %v1315_v6  ;;  %v1316_v18 = vld [vmem:[%s1450_s5 + $0x80] ss:$8 sps:$4 sm:$0xff]   ;;  %v1321_v20 = vld [vmem:[%s1450_s5 + $0x94] ss:$8 sps:$4 sm:$0xff]  }
  0x13   : > { %1244 = vmatprep.mubr.msk.bf16.mxu1 %vm629_vm0, %v1318_v7  ;;  %v1323_v21 = vld [vmem:[%s1450_s5 + $0x10] ss:$8 sps:$4 sm:$0xff]   ;;  %v1325_v23 = vld [vmem:[%s1450_s5 + $0x24] ss:$8 sps:$4 sm:$0xff]   ;;  %v1329_v25 = vld [vmem:[%s1450_s5 + $0x20] ss:$8 sps:$4 sm:$0xff]  }
  0x14   : > { %692 = vmatpush1.bf16.msra.mxu0 %v1306_v4  ;;  %1270 = vmatpush1.bf16.msra.mxu1 %v1306_v4  ;;  %v1324_v22 = vld [vmem:[%s1450_s5 + $0x90] ss:$8 sps:$4 sm:$0xff]   ;;  %v1327_v24 = vld [vmem:[%s1450_s5 + $0xa4] ss:$8 sps:$4 sm:$0xff]   ;;  %v1330_v26 = vld [vmem:[%s1450_s5 + $0xa0] ss:$8 sps:$4 sm:$0xff]  }
  0x15   : > { %693 = vmatprep.subr.bf16.mxu0 %v1385_v1  ;;  %1261 = vmatprep.subr.bf16.mxu1 %v1385_v1  ;;  %v1331_v27 = vld [vmem:[%s1450_s5 + $0x34] ss:$8 sps:$4 sm:$0xff]   ;;  %v1335_v29 = vld [vmem:[%s1450_s5 + $0x30] ss:$8 sps:$4 sm:$0xff]   ;;  %v1337_v31 = vld [vmem:[%s1450_s5 + $0x44] ss:$8 sps:$4 sm:$0xff]  }
  0x16   : > { %v1333_v28 = vld [vmem:[%s1450_s5 + $0xb4] ss:$8 sps:$4 sm:$0xff]   ;;  %v1336_v30 = vld [vmem:[%s1450_s5 + $0xb0] ss:$8 sps:$4 sm:$0xff]   ;;  %v1339_v32 = vld [vmem:[%s1450_s5 + $0xc4] ss:$8 sps:$4 sm:$0xff]  }
  0x17   : > { %v1341_v33 = vld [vmem:[%s1450_s5 + $0x40] ss:$8 sps:$4 sm:$0xff]   ;;  %v1343_v35 = vld [vmem:[%s1450_s5 + $0x54] ss:$8 sps:$4 sm:$0xff]   ;;  %v1347_v37 = vld [vmem:[%s1450_s5 + $0x50] ss:$8 sps:$4 sm:$0xff]  }
  0x18   : > { %694 = vmatpush1.bf16.msra.mxu0 %v1307_v5  ;;  %1271 = vmatpush1.bf16.msra.mxu1 %v1307_v5  ;;  %v1342_v34 = vld [vmem:[%s1450_s5 + $0xc0] ss:$8 sps:$4 sm:$0xff]   ;;  %v1345_v36 = vld [vmem:[%s1450_s5 + $0xd4] ss:$8 sps:$4 sm:$0xff]   ;;  %v1348_v38 = vld [vmem:[%s1450_s5 + $0xd0] ss:$8 sps:$4 sm:$0xff]  }
  0x19   : > { %695 = vmatprep.subr.bf16.mxu0 %v1385_v1  ;;  %1262 = vmatprep.subr.bf16.mxu1 %v1385_v1  ;;  %v1349_v39 = vld [vmem:[%s1450_s5 + $0x64] ss:$8 sps:$4 sm:$0xff]   ;;  %v1353_v41 = vld [vmem:[%s1450_s5 + $0x60] ss:$8 sps:$4 sm:$0xff]   ;;  %v1355_v43 = vld [vmem:[%s1450_s5 + $0x74] ss:$8 sps:$4 sm:$0xff]  }
  0x1a   : > { %v1351_v40 = vld [vmem:[%s1450_s5 + $0xe4] ss:$8 sps:$4 sm:$0xff]   ;;  %v1354_v42 = vld [vmem:[%s1450_s5 + $0xe0] ss:$8 sps:$4 sm:$0xff]   ;;  %v1357_v44 = vld [vmem:[%s1450_s5 + $0xf4] ss:$8 sps:$4 sm:$0xff]  }
  0x1b   : > { %v1359_v45 = vld [vmem:[%s1450_s5 + $0x70] ss:$8 sps:$4 sm:$0xff]  }
  0x1c   : > { %696 = vmatpush1.bf16.msra.mxu0 %v1308_v8  ;;  %1272 = vmatpush1.bf16.msra.mxu1 %v1308_v8  ;;  %v1360_v46 = vld [vmem:[%s1450_s5 + $0xf0] ss:$8 sps:$4 sm:$0xff]  }
  0x1d   : > { %697 = vmatprep.subr.bf16.mxu0 %v1385_v1  ;;  %1263 = vmatprep.subr.bf16.mxu1 %v1385_v1 }
  0x20   : > { %698 = vmatpush1.bf16.msra.mxu0 %v1309_v9  ;;  %1273 = vmatpush1.bf16.msra.mxu1 %v1309_v9 }
  0x21   : > { %699 = vmatprep.subr.bf16.mxu0 %v1385_v1  ;;  %1264 = vmatprep.subr.bf16.mxu1 %v1385_v1 }
  0x24   : > { %700 = vmatpush1.bf16.msra.mxu0 %v1310_v10  ;;  %1274 = vmatpush1.bf16.msra.mxu1 %v1310_v10 }
  0x25   : > { %701 = vmatprep.subr.bf16.mxu0 %v1385_v1  ;;  %1265 = vmatprep.subr.bf16.mxu1 %v1385_v1 }
  0x28   : > { %702 = vmatpush1.bf16.msra.mxu0 %v1311_v13  ;;  %1275 = vmatpush1.bf16.msra.mxu1 %v1311_v13 }
  0x29   : > { %703 = vmatprep.subr.bf16.mxu0 %v1385_v1  ;;  %1266 = vmatprep.subr.bf16.mxu1 %v1385_v1 }
  0x2c   : > { %704 = vmatpush1.bf16.msra.mxu0 %v683_v16  ;;  %1276 = vmatpush1.bf16.msra.mxu1 %v683_v16 }
  0x2f   : > { %718 = vmatmul.mubr.bf16.vlgmr.msra.gmra.mrb[0].mxu0 %v1313_v17  ;;  %782 = vmatmul.mubr.bf16.vlgmr.msra.gmra.mrb[0].mxu1 %v1316_v18 }
  0x30   : > { %1237 = vmatprep.mubr.msk.bf16.mxu0 %vm629_vm0, %v1319_v19  ;;  %1245 = vmatprep.mubr.msk.bf16.mxu1 %vm629_vm0, %v1321_v20 }
  0x37   : > { %726 = vmatmul.mubr.bf16.gmra.mrb[4].mxu0 %v1323_v21  ;;  %790 = vmatmul.mubr.bf16.gmra.mrb[4].mxu1 %v1324_v22 }
  0x38   : > { %1238 = vmatprep.mubr.msk.bf16.mxu0 %vm629_vm0, %v1325_v23  ;;  %1246 = vmatprep.mubr.msk.bf16.mxu1 %vm629_vm0, %v1327_v24 }
  0x3f   : > { %734 = vmatmul.mubr.bf16.gmra.mrb[8].mxu0 %v1329_v25  ;;  %798 = vmatmul.mubr.bf16.gmra.mrb[8].mxu1 %v1330_v26 }
  0x40   : > { %1239 = vmatprep.mubr.msk.bf16.mxu0 %vm629_vm0, %v1331_v27  ;;  %1247 = vmatprep.mubr.msk.bf16.mxu1 %vm629_vm0, %v1333_v28 }
  0x47   : > { %742 = vmatmul.mubr.bf16.gmra.mrb[12].mxu0 %v1335_v29  ;;  %806 = vmatmul.mubr.bf16.gmra.mrb[12].mxu1 %v1336_v30 }
  0x48   : > { %1240 = vmatprep.mubr.msk.bf16.mxu0 %vm629_vm0, %v1337_v31  ;;  %1248 = vmatprep.mubr.msk.bf16.mxu1 %vm629_vm0, %v1339_v32 }
  0x4f   : > { %750 = vmatmul.mubr.bf16.gmra.mrb[16].mxu0 %v1341_v33  ;;  %814 = vmatmul.mubr.bf16.gmra.mrb[16].mxu1 %v1342_v34 }
  0x50   : > { %1241 = vmatprep.mubr.msk.bf16.mxu0 %vm629_vm0, %v1343_v35  ;;  %1249 = vmatprep.mubr.msk.bf16.mxu1 %vm629_vm0, %v1345_v36 }
  0x57   : > { %758 = vmatmul.mubr.bf16.gmra.mrb[20].mxu0 %v1347_v37  ;;  %822 = vmatmul.mubr.bf16.gmra.mrb[20].mxu1 %v1348_v38 }
  0x58   : > { %1242 = vmatprep.mubr.msk.bf16.mxu0 %vm629_vm0, %v1349_v39  ;;  %1250 = vmatprep.mubr.msk.bf16.mxu1 %vm629_vm0, %v1351_v40 }
  0x5f   : > { %766 = vmatmul.mubr.bf16.gmra.mrb[24].mxu0 %v1353_v41  ;;  %830 = vmatmul.mubr.bf16.gmra.mrb[24].mxu1 %v1354_v42 }
  0x60   : > { %1243 = vmatprep.mubr.msk.bf16.mxu0 %vm629_vm0, %v1355_v43  ;;  %1251 = vmatprep.mubr.msk.bf16.mxu1 %vm629_vm0, %v1357_v44 }
  0x67   : > { %774 = vmatmul.mubr.bf16.gmra.mrb[28].mxu0 %v1359_v45  ;;  %838 = vmatmul.mubr.bf16.gmra.mrb[28].mxu1 %v1360_v46 }
 0x102   : > { %v719_v48 = vpop.f32.mrb[0].mxu0  ;;  %v783_v50 = vpop.f32.mrb[0].mxu1 }
 0x103   : > { %v952_v51 = vmul.f32 %v1521_v47, %v719_v48  ;;  %v968_v52 = vmul.f32 %v1521_v47, %v783_v50  ;;  %v721_v53 = vpop.f32.mrb[1].mxu0  ;;  %v785_v54 = vpop.f32.mrb[1].mxu1 }
 0x104   : > { %v722_v55 = vpop.f32.mrb[2].mxu0  ;;  %v786_v56 = vpop.f32.mrb[2].mxu1 }
 0x105   : > { %v991_v57 = vadd.f32 %v1526_v49, %v952_v51  ;;  %v1007_v58 = vadd.f32 %v1526_v49, %v968_v52  ;;  %v953_v59 = vmul.f32 %v1521_v47, %v722_v55  ;;  %v969_v60 = vmul.f32 %v1521_v47, %v786_v56  ;;  %v724_v61 = vpop.f32.mrb[3].mxu0  ;;  %v788_v62 = vpop.f32.mrb[3].mxu1 }
 0x107   : > { %1023 = vst [vmem:[%s1535_s29] sm:$0xff] %v991_v57  ;;  %1039 = vst [vmem:[%s1535_s29 + $0x80] sm:$0xff] %v1007_v58  ;;  %v992_v63 = vadd.f32 %v1526_v49, %v953_v59  ;;  %v1008_v0 = vadd.f32 %v1526_v49, %v969_v60 }
 0x109   : > { %1024 = vst [vmem:[%s1535_s29 + $0x8] sm:$0xff] %v992_v63  ;;  %1040 = vst [vmem:[%s1535_s29 + $0x88] sm:$0xff] %v1008_v0 }
 0x10a   : > { %v727_v1 = vpop.f32.mrb[4].mxu0  ;;  %v791_v2 = vpop.f32.mrb[4].mxu1 }
 0x10b   : > { %v954_v3 = vmul.f32 %v1521_v47, %v727_v1  ;;  %v970_v4 = vmul.f32 %v1521_v47, %v791_v2  ;;  %v729_v5 = vpop.f32.mrb[5].mxu0  ;;  %v793_v6 = vpop.f32.mrb[5].mxu1 }
 0x10c   : > { %v730_v7 = vpop.f32.mrb[6].mxu0  ;;  %v794_v8 = vpop.f32.mrb[6].mxu1 }
 0x10d   : > { %v993_v9 = vadd.f32 %v1526_v49, %v954_v3  ;;  %v1009_v10 = vadd.f32 %v1526_v49, %v970_v4  ;;  %v955_v11 = vmul.f32 %v1521_v47, %v730_v7  ;;  %v971_v12 = vmul.f32 %v1521_v47, %v794_v8  ;;  %v732_v13 = vpop.f32.mrb[7].mxu0  ;;  %v796_v14 = vpop.f32.mrb[7].mxu1 }
 0x10f   : > { %1025 = vst [vmem:[%s1535_s29 + $0x10] sm:$0xff] %v993_v9  ;;  %1041 = vst [vmem:[%s1535_s29 + $0x90] sm:$0xff] %v1009_v10  ;;  %v994_v15 = vadd.f32 %v1526_v49, %v955_v11  ;;  %v1010_v16 = vadd.f32 %v1526_v49, %v971_v12 }
 0x111   : > { %1026 = vst [vmem:[%s1535_s29 + $0x18] sm:$0xff] %v994_v15  ;;  %1042 = vst [vmem:[%s1535_s29 + $0x98] sm:$0xff] %v1010_v16 }
 0x112   : > { %v735_v17 = vpop.f32.mrb[8].mxu0  ;;  %v799_v18 = vpop.f32.mrb[8].mxu1 }
 0x113   : > { %v956_v19 = vmul.f32 %v1521_v47, %v735_v17  ;;  %v972_v20 = vmul.f32 %v1521_v47, %v799_v18  ;;  %v737_v21 = vpop.f32.mrb[9].mxu0  ;;  %v801_v22 = vpop.f32.mrb[9].mxu1 }
 0x114   : > { %v738_v23 = vpop.f32.mrb[10].mxu0  ;;  %v802_v24 = vpop.f32.mrb[10].mxu1 }
 0x115   : > { %v995_v25 = vadd.f32 %v1526_v49, %v956_v19  ;;  %v1011_v26 = vadd.f32 %v1526_v49, %v972_v20  ;;  %v957_v27 = vmul.f32 %v1521_v47, %v738_v23  ;;  %v973_v28 = vmul.f32 %v1521_v47, %v802_v24  ;;  %v740_v29 = vpop.f32.mrb[11].mxu0  ;;  %v804_v30 = vpop.f32.mrb[11].mxu1 }
 0x117   : > { %1027 = vst [vmem:[%s1535_s29 + $0x20] sm:$0xff] %v995_v25  ;;  %1043 = vst [vmem:[%s1535_s29 + $0xa0] sm:$0xff] %v1011_v26  ;;  %v996_v31 = vadd.f32 %v1526_v49, %v957_v27  ;;  %v1012_v32 = vadd.f32 %v1526_v49, %v973_v28 }
 0x119   : > { %1028 = vst [vmem:[%s1535_s29 + $0x28] sm:$0xff] %v996_v31  ;;  %1044 = vst [vmem:[%s1535_s29 + $0xa8] sm:$0xff] %v1012_v32 }
 0x11a   : > { %v743_v33 = vpop.f32.mrb[12].mxu0  ;;  %v807_v34 = vpop.f32.mrb[12].mxu1 }
 0x11b   : > { %v958_v35 = vmul.f32 %v1521_v47, %v743_v33  ;;  %v974_v36 = vmul.f32 %v1521_v47, %v807_v34  ;;  %v745_v37 = vpop.f32.mrb[13].mxu0  ;;  %v809_v38 = vpop.f32.mrb[13].mxu1 }
 0x11c   : > { %v746_v39 = vpop.f32.mrb[14].mxu0  ;;  %v810_v40 = vpop.f32.mrb[14].mxu1 }
 0x11d   : > { %v997_v41 = vadd.f32 %v1526_v49, %v958_v35  ;;  %v1013_v42 = vadd.f32 %v1526_v49, %v974_v36  ;;  %v959_v43 = vmul.f32 %v1521_v47, %v746_v39  ;;  %v975_v44 = vmul.f32 %v1521_v47, %v810_v40  ;;  %v748_v45 = vpop.f32.mrb[15].mxu0  ;;  %v812_v46 = vpop.f32.mrb[15].mxu1 }
 0x11f   : > { %1029 = vst [vmem:[%s1535_s29 + $0x30] sm:$0xff] %v997_v41  ;;  %1045 = vst [vmem:[%s1535_s29 + $0xb0] sm:$0xff] %v1013_v42  ;;  %v998_v48 = vadd.f32 %v1526_v49, %v959_v43  ;;  %v1014_v50 = vadd.f32 %v1526_v49, %v975_v44 }
 0x121   : > { %1030 = vst [vmem:[%s1535_s29 + $0x38] sm:$0xff] %v998_v48  ;;  %1046 = vst [vmem:[%s1535_s29 + $0xb8] sm:$0xff] %v1014_v50 }
 0x122   : > { %v751_v51 = vpop.f32.mrb[16].mxu0  ;;  %v815_v52 = vpop.f32.mrb[16].mxu1 }
 0x123   : > { %v960_v53 = vmul.f32 %v1521_v47, %v751_v51  ;;  %v976_v54 = vmul.f32 %v1521_v47, %v815_v52  ;;  %v753_v55 = vpop.f32.mrb[17].mxu0  ;;  %v817_v56 = vpop.f32.mrb[17].mxu1 }
 0x124   : > { %v754_v57 = vpop.f32.mrb[18].mxu0  ;;  %v818_v58 = vpop.f32.mrb[18].mxu1 }
 0x125   : > { %v999_v59 = vadd.f32 %v1526_v49, %v960_v53  ;;  %v1015_v60 = vadd.f32 %v1526_v49, %v976_v54  ;;  %v961_v61 = vmul.f32 %v1521_v47, %v754_v57  ;;  %v977_v62 = vmul.f32 %v1521_v47, %v818_v58  ;;  %v756_v63 = vpop.f32.mrb[19].mxu0  ;;  %v820_v0 = vpop.f32.mrb[19].mxu1 }
 0x127   : > { %1031 = vst [vmem:[%s1535_s29 + $0x40] sm:$0xff] %v999_v59  ;;  %1047 = vst [vmem:[%s1535_s29 + $0xc0] sm:$0xff] %v1015_v60  ;;  %v1000_v1 = vadd.f32 %v1526_v49, %v961_v61  ;;  %v1016_v2 = vadd.f32 %v1526_v49, %v977_v62 }
 0x129   : > { %1032 = vst [vmem:[%s1535_s29 + $0x48] sm:$0xff] %v1000_v1  ;;  %1048 = vst [vmem:[%s1535_s29 + $0xc8] sm:$0xff] %v1016_v2 }
 0x12a   : > { %v759_v3 = vpop.f32.mrb[20].mxu0  ;;  %v823_v4 = vpop.f32.mrb[20].mxu1 }
 0x12b   : > { %v962_v5 = vmul.f32 %v1521_v47, %v759_v3  ;;  %v978_v6 = vmul.f32 %v1521_v47, %v823_v4  ;;  %v761_v7 = vpop.f32.mrb[21].mxu0  ;;  %v825_v8 = vpop.f32.mrb[21].mxu1 }
 0x12c   : > { %v762_v9 = vpop.f32.mrb[22].mxu0  ;;  %v826_v10 = vpop.f32.mrb[22].mxu1 }
 0x12d   : > { %v1001_v11 = vadd.f32 %v1526_v49, %v962_v5  ;;  %v1017_v12 = vadd.f32 %v1526_v49, %v978_v6  ;;  %v963_v13 = vmul.f32 %v1521_v47, %v762_v9  ;;  %v979_v14 = vmul.f32 %v1521_v47, %v826_v10  ;;  %v764_v15 = vpop.f32.mrb[23].mxu0  ;;  %v828_v16 = vpop.f32.mrb[23].mxu1 }
 0x12f   : > { %1033 = vst [vmem:[%s1535_s29 + $0x50] sm:$0xff] %v1001_v11  ;;  %1049 = vst [vmem:[%s1535_s29 + $0xd0] sm:$0xff] %v1017_v12  ;;  %v1002_v17 = vadd.f32 %v1526_v49, %v963_v13  ;;  %v1018_v18 = vadd.f32 %v1526_v49, %v979_v14 }
 0x131   : > { %1034 = vst [vmem:[%s1535_s29 + $0x58] sm:$0xff] %v1002_v17  ;;  %1050 = vst [vmem:[%s1535_s29 + $0xd8] sm:$0xff] %v1018_v18 }
 0x132   : > { %v767_v19 = vpop.f32.mrb[24].mxu0  ;;  %v831_v20 = vpop.f32.mrb[24].mxu1 }
 0x133   : > { %v964_v21 = vmul.f32 %v1521_v47, %v767_v19  ;;  %v980_v22 = vmul.f32 %v1521_v47, %v831_v20  ;;  %v769_v23 = vpop.f32.mrb[25].mxu0  ;;  %v833_v24 = vpop.f32.mrb[25].mxu1 }
 0x134   : > { %v770_v25 = vpop.f32.mrb[26].mxu0  ;;  %v834_v26 = vpop.f32.mrb[26].mxu1 }
 0x135   : > { %v1003_v27 = vadd.f32 %v1526_v49, %v964_v21  ;;  %v1019_v28 = vadd.f32 %v1526_v49, %v980_v22  ;;  %v965_v29 = vmul.f32 %v1521_v47, %v770_v25  ;;  %v981_v30 = vmul.f32 %v1521_v47, %v834_v26  ;;  %v772_v31 = vpop.f32.mrb[27].mxu0  ;;  %v836_v32 = vpop.f32.mrb[27].mxu1 }
 0x137   : > { %1035 = vst [vmem:[%s1535_s29 + $0x60] sm:$0xff] %v1003_v27  ;;  %1051 = vst [vmem:[%s1535_s29 + $0xe0] sm:$0xff] %v1019_v28  ;;  %v1004_v33 = vadd.f32 %v1526_v49, %v965_v29  ;;  %v1020_v34 = vadd.f32 %v1526_v49, %v981_v30 }
 0x139   : > { %1036 = vst [vmem:[%s1535_s29 + $0x68] sm:$0xff] %v1004_v33  ;;  %1052 = vst [vmem:[%s1535_s29 + $0xe8] sm:$0xff] %v1020_v34 }
 0x13a   : > { %v775_v35 = vpop.f32.mrb[28].mxu0  ;;  %v839_v36 = vpop.f32.mrb[28].mxu1 }
 0x13b   : > { %v966_v37 = vmul.f32 %v1521_v47, %v775_v35  ;;  %v982_v38 = vmul.f32 %v1521_v47, %v839_v36  ;;  %v777_v39 = vpop.f32.mrb[29].mxu0  ;;  %v841_v40 = vpop.f32.mrb[29].mxu1 }
 0x13c   : > { %v778_v41 = vpop.f32.mrb[30].mxu0  ;;  %v842_v42 = vpop.f32.mrb[30].mxu1 }
 0x13d   : > { %v1005_v43 = vadd.f32 %v1526_v49, %v966_v37  ;;  %v1021_v44 = vadd.f32 %v1526_v49, %v982_v38  ;;  %v967_v45 = vmul.f32 %v1521_v47, %v778_v41  ;;  %v983_v46 = vmul.f32 %v1521_v47, %v842_v42  ;;  %v780_v48 = vpop.f32.mrb[31].mxu0  ;;  %v844_v50 = vpop.f32.mrb[31].mxu1 }
 0x13f   : > { %1037 = vst [vmem:[%s1535_s29 + $0x70] sm:$0xff] %v1005_v43  ;;  %1053 = vst [vmem:[%s1535_s29 + $0xf0] sm:$0xff] %v1021_v44  ;;  %v1006_v51 = vadd.f32 %v1526_v49, %v967_v45  ;;  %v1022_v52 = vadd.f32 %v1526_v49, %v983_v46 }
 0x141   : > { %1038 = vst [vmem:[%s1535_s29 + $0x78] sm:$0xff] %v1006_v51  ;;  %1054 = vst [vmem:[%s1535_s29 + $0xf8] sm:$0xff] %v1022_v52 }
 0x142 PF: > { %s14_s17 = sadd.s32 1, %s1383_s17   ;;  %s1645_s15 = smov %s1379_s16 }
 0x143   : > { %p11_p5 = scmp.ge.s32.totalorder %s14_s17, 4   ;;  %s1646_s16 = smov %s1648_s18 }
 0x145   :  { %13 = sbr.rel (!%p11_p5) target bundleno = 2 (0x2), region = 83 }

// kernel: _lambda_.32
= control target key start
LH: loop header
LB: loop body
LE: loop exit
PB: predicated region body
PF: predicated region fallthrough
CT: control target
= control target key end

     0   :  { %vm118_vm0 = vcmask 130048   ;;  %s562_s1 = inlined_call_operand.vmem [shape: bf16[16,128], index: 1, kind: input, shape index: {}]   ;;  %s563_s0 = inlined_call_operand.vmem [shape: bf16[128,16], index: 0, kind: input, shape index: {}]   ;;  %s564_s2 = inlined_call_operand.vmem [shape: f32[1,128], index: 2, kind: input, shape index: {}]   ;;  %s565_s3 = inlined_call_operand.vmem [shape: f32[1,128], index: 3, kind: input, shape index: {}]   ;;  %s566_s4 = inlined_call_operand.vmem [shape: f32[128,128], index: 4, kind: output, shape index: {}]  }
   0x1   :  { %v421_v0 = vld [vmem:[%s562_s1] sm:$0xff]   ;;  %v424_v3 = vld [vmem:[%s563_s0 + $0x8] sm:$0xff]   ;;  %v426_v5 = vld [vmem:[%s563_s0 + $0x10] sm:$0xff]  }
   0x2   :  { %v422_v1 = vld [vmem:[%s563_s0] sm:$0xff]   ;;  %401 = vmatprep.subr.bf16.mxu0 %v421_v0  ;;  %419 = vmatprep.subr.bf16.mxu1 %v421_v0  ;;  %v425_v4 = vld [vmem:[%s563_s0 + $0x28] sm:$0xff]   ;;  %v427_v6 = vld [vmem:[%s563_s0 + $0x30] sm:$0xff]  }
   0x3   :  { %v423_v2 = vld [vmem:[%s563_s0 + $0x20] sm:$0xff]   ;;  %402 = vmatpush3.bf16.msra.mxu0 %v421_v0  ;;  %420 = vmatpush3.bf16.msra.mxu1 %v421_v0  ;;  %v428_v7 = vld [vmem:[%s563_s0 + $0x18] sm:$0xff]  }
   0x4   :  { %403 = vmatprep.mubr.msk.bf16.mxu0 %vm118_vm0, %v422_v1  ;;  %411 = vmatprep.mubr.msk.bf16.mxu1 %vm118_vm0, %v423_v2  ;;  %v429_v8 = vld [vmem:[%s563_s0 + $0x38] sm:$0xff]   ;;  %v390_v9 = vld [vmem:[%s564_s2] ss:$0 sm:$0xff] }
   0x5   :  { %v496_v11 = vld [vmem:[%s565_s3] ss:$0 sm:$0xff] }
   0x6   :  { %404 = vmatmul.mubr.msk.bf16.vlgmr.msra.gmra.mrb[0].mxu0 %vm118_vm0, %v424_v3  ;;  %412 = vmatmul.mubr.msk.bf16.vlgmr.msra.gmra.mrb[0].mxu1 %vm118_vm0, %v425_v4 }
   0x7   :  { %407 = vmatprep.mubr.msk.bf16.mxu0 %vm118_vm0, %v426_v5  ;;  %415 = vmatprep.mubr.msk.bf16.mxu1 %vm118_vm0, %v427_v6 }
   0xe   :  { %408 = vmatmul.mubr.msk.bf16.gmra.mrb[4].mxu0 %vm118_vm0, %v428_v7  ;;  %416 = vmatmul.mubr.msk.bf16.gmra.mrb[4].mxu1 %vm118_vm0, %v429_v8 }
  0xd9   :  { %v405_v10 = vpop.f32.mrb[0].mxu0  ;;  %v413_v12 = vpop.f32.mrb[0].mxu1 }
  0xda   :  { %v300_v13 = vmul.f32 %v405_v10, %v390_v9  ;;  %v308_v14 = vmul.f32 %v413_v12, %v390_v9  ;;  %v177_v15 = vpop.f32.mrb[1].mxu0  ;;  %v209_v16 = vpop.f32.mrb[1].mxu1 }
  0xdb   :  { %v298_v17 = vmul.f32 %v390_v9, %v177_v15  ;;  %v306_v18 = vmul.f32 %v390_v9, %v209_v16  ;;  %v406_v19 = vpop.f32.mrb[2].mxu0  ;;  %v414_v20 = vpop.f32.mrb[2].mxu1 }
  0xdc   :  { %v323_v21 = vadd.f32 %v496_v11, %v300_v13  ;;  %v331_v22 = vadd.f32 %v496_v11, %v308_v14  ;;  %v301_v23 = vmul.f32 %v406_v19, %v390_v9  ;;  %v309_v24 = vmul.f32 %v414_v20, %v390_v9  ;;  %v180_v25 = vpop.f32.mrb[3].mxu0  ;;  %v212_v26 = vpop.f32.mrb[3].mxu1 }
  0xdd   :  { %v321_v27 = vadd.f32 %v496_v11, %v298_v17  ;;  %v329_v28 = vadd.f32 %v496_v11, %v306_v18  ;;  %v299_v29 = vmul.f32 %v390_v9, %v180_v25  ;;  %v307_v30 = vmul.f32 %v390_v9, %v212_v26 }
  0xde   :  { %v339_v31 = vmax.f32 %v323_v21, 0.0  ;;  %v347_v32 = vmax.f32 %v331_v22, 0.0  ;;  %v324_v33 = vadd.f32 %v496_v11, %v301_v23  ;;  %v332_v34 = vadd.f32 %v496_v11, %v309_v24 }
  0xdf   :  { %v337_v35 = vmax.f32 %v321_v27, 0.0  ;;  %v345_v36 = vmax.f32 %v329_v28, 0.0  ;;  %v322_v37 = vadd.f32 %v496_v11, %v299_v29  ;;  %v330_v38 = vadd.f32 %v496_v11, %v307_v30 }
  0xe0   :  { %355 = vst [vmem:[%s566_s4 + $0x10] sm:$0xff] %v339_v31  ;;  %363 = vst [vmem:[%s566_s4 + $0x50] sm:$0xff] %v347_v32  ;;  %v340_v39 = vmax.f32 %v324_v33, 0.0  ;;  %v348_v40 = vmax.f32 %v332_v34, 0.0 }
  0xe1   :  { %353 = vst [vmem:[%s566_s4] sm:$0xff] %v337_v35  ;;  %361 = vst [vmem:[%s566_s4 + $0x40] sm:$0xff] %v345_v36  ;;  %v338_v41 = vmax.f32 %v322_v37, 0.0  ;;  %v346_v42 = vmax.f32 %v330_v38, 0.0  ;;  %v409_v43 = vpop.f32.mrb[4].mxu0  ;;  %v417_v44 = vpop.f32.mrb[4].mxu1 }
  0xe2   :  { %356 = vst [vmem:[%s566_s4 + $0x18] sm:$0xff] %v340_v39  ;;  %364 = vst [vmem:[%s566_s4 + $0x58] sm:$0xff] %v348_v40  ;;  %v304_v45 = vmul.f32 %v409_v43, %v390_v9  ;;  %v312_v46 = vmul.f32 %v417_v44, %v390_v9  ;;  %v193_v47 = vpop.f32.mrb[5].mxu0  ;;  %v225_v48 = vpop.f32.mrb[5].mxu1 }
  0xe3   :  { %354 = vst [vmem:[%s566_s4 + $0x8] sm:$0xff] %v338_v41  ;;  %362 = vst [vmem:[%s566_s4 + $0x48] sm:$0xff] %v346_v42  ;;  %v302_v49 = vmul.f32 %v390_v9, %v193_v47  ;;  %v310_v50 = vmul.f32 %v390_v9, %v225_v48  ;;  %v410_v51 = vpop.f32.mrb[6].mxu0  ;;  %v418_v52 = vpop.f32.mrb[6].mxu1 }
  0xe4   :  { %v327_v53 = vadd.f32 %v496_v11, %v304_v45  ;;  %v335_v54 = vadd.f32 %v496_v11, %v312_v46  ;;  %v305_v55 = vmul.f32 %v410_v51, %v390_v9  ;;  %v313_v56 = vmul.f32 %v418_v52, %v390_v9  ;;  %v196_v57 = vpop.f32.mrb[7].mxu0  ;;  %v228_v58 = vpop.f32.mrb[7].mxu1 }
  0xe5   :  { %v325_v59 = vadd.f32 %v496_v11, %v302_v49  ;;  %v333_v60 = vadd.f32 %v496_v11, %v310_v50  ;;  %v303_v61 = vmul.f32 %v390_v9, %v196_v57  ;;  %v311_v62 = vmul.f32 %v390_v9, %v228_v58 }
  0xe6   :  { %v343_v63 = vmax.f32 %v327_v53, 0.0  ;;  %v351_v0 = vmax.f32 %v335_v54, 0.0  ;;  %v328_v1 = vadd.f32 %v496_v11, %v305_v55  ;;  %v336_v2 = vadd.f32 %v496_v11, %v313_v56 }
  0xe7   :  { %v341_v3 = vmax.f32 %v325_v59, 0.0  ;;  %v349_v4 = vmax.f32 %v333_v60, 0.0  ;;  %v326_v5 = vadd.f32 %v496_v11, %v303_v61  ;;  %v334_v6 = vadd.f32 %v496_v11, %v311_v62 }
  0xe8   :  { %359 = vst [vmem:[%s566_s4 + $0x30] sm:$0xff] %v343_v63  ;;  %367 = vst [vmem:[%s566_s4 + $0x70] sm:$0xff] %v351_v0  ;;  %v344_v7 = vmax.f32 %v328_v1, 0.0  ;;  %v352_v8 = vmax.f32 %v336_v2, 0.0 }
  0xe9   :  { %357 = vst [vmem:[%s566_s4 + $0x20] sm:$0xff] %v341_v3  ;;  %365 = vst [vmem:[%s566_s4 + $0x60] sm:$0xff] %v349_v4  ;;  %v342_v9 = vmax.f32 %v326_v5, 0.0  ;;  %v350_v10 = vmax.f32 %v334_v6, 0.0 }
  0xea   :  { %360 = vst [vmem:[%s566_s4 + $0x38] sm:$0xff] %v344_v7  ;;  %368 = vst [vmem:[%s566_s4 + $0x78] sm:$0xff] %v352_v8 }
  0xeb   :  { %358 = vst [vmem:[%s566_s4 + $0x28] sm:$0xff] %v342_v9  ;;  %366 = vst [vmem:[%s566_s4 + $0x68] sm:$0xff] %v350_v10 }

// kernel: _lambda_.30
= control target key start
LH: loop header
LB: loop body
LE: loop exit
PB: predicated region body
PF: predicated region fallthrough
CT: control target
= control target key end

     0   :  { %vm62_vm0 = vcmask 64512   ;;  %v2997_v0 = vmov 0.0   ;;  %vm2998_vm1 = vmmov 0   ;;  %s3531_s1 = inlined_call_operand.vmem [shape: f32[16,8,8], index: 1, kind: input, shape index: {}]   ;;  %s3532_s0 = inlined_call_operand.vmem [shape: f32[16,8,8], index: 0, kind: input, shape index: {}]   ;;  %s3533_s2 = inlined_call_operand.vmem [shape: f32[16,8,8], index: 2, kind: input, shape index: {}]   ;;  %s3534_s3 = inlined_call_operand.vmem [shape: f32[16,8,8], index: 3, kind: output, shape index: {}]  }
   0x1   :  { %2771 = vmatprep.subr.mxu0 %v2997_v0  ;;  %v30_v1 = vld [vmem:[%s3531_s1] sm:$0xff]  ;;  %2773 = vmatprep.mubr.msk.f32.mxu0 %vm2998_vm1, %v2997_v0  ;;  %v31_v2 = vld [vmem:[%s3531_s1 + $0x8] sm:$0xff]  ;;  %v32_v4 = vld [vmem:[%s3531_s1 + $0x10] sm:$0xff] }
   0x2   :  { %2772 = vmatpush3.xpose.msk.msra.mxu0 %vm62_vm0, %v30_v1  ;;  %v14_v3 = vld [vmem:[%s3532_s0] sm:$0xff]  ;;  %2776 = vmatprep.subr.mxu1 %v2997_v0  ;;  %v15_v5 = vld [vmem:[%s3532_s0 + $0x8] sm:$0xff]  ;;  %v33_v6 = vld [vmem:[%s3531_s1 + $0x18] sm:$0xff] }
   0x3   :  { %2781 = vmatprep.subr.mxu0 %v2997_v0  ;;  %2777 = vmatpush3.xpose.msk.msra.mxu1 %vm62_vm0, %v31_v2  ;;  %v16_v7 = vld [vmem:[%s3532_s0 + $0x10] sm:$0xff]  ;;  %v34_v8 = vld [vmem:[%s3531_s1 + $0x20] sm:$0xff]  ;;  %v17_v9 = vld [vmem:[%s3532_s0 + $0x18] sm:$0xff] }
   0x4   :  { %2778 = vmatprep.mubr.msk.f32.mxu1 %vm2998_vm1, %v2997_v0  ;;  %2786 = vmatprep.subr.mxu1 %v2997_v0  ;;  %v35_v10 = vld [vmem:[%s3531_s1 + $0x28] sm:$0xff]  ;;  %v18_v11 = vld [vmem:[%s3532_s0 + $0x20] sm:$0xff]  ;;  %v36_v12 = vld [vmem:[%s3531_s1 + $0x30] sm:$0xff] }
   0x5   :  { %2774 = vmatmul.mubr.msk.f32.vlgmr.msra.gmra.mrb[0].mxu0 %vm62_vm0, %v14_v3  ;;  %v19_v13 = vld [vmem:[%s3532_s0 + $0x28] sm:$0xff]  ;;  %v37_v14 = vld [vmem:[%s3531_s1 + $0x38] sm:$0xff]  ;;  %v20_v15 = vld [vmem:[%s3532_s0 + $0x30] sm:$0xff] }
   0x6   :  { %2782 = vmatpush3.xpose.msk.msra.mxu0 %vm62_vm0, %v32_v4  ;;  %2783 = vmatprep.mubr.msk.f32.mxu0 %vm2998_vm1, %v2997_v0  ;;  %v38_v16 = vld [vmem:[%s3531_s1 + $0x40] sm:$0xff]  ;;  %v21_v17 = vld [vmem:[%s3532_s0 + $0x38] sm:$0xff]  ;;  %v39_v18 = vld [vmem:[%s3531_s1 + $0x48] sm:$0xff] }
   0x7   :  { %2779 = vmatmul.mubr.msk.f32.vlgmr.msra.gmra.mrb[0].mxu1 %vm62_vm0, %v15_v5  ;;  %2791 = vmatprep.subr.mxu0 %v2997_v0  ;;  %v22_v19 = vld [vmem:[%s3532_s0 + $0x40] sm:$0xff]  ;;  %v40_v20 = vld [vmem:[%s3531_s1 + $0x50] sm:$0xff]  ;;  %v23_v21 = vld [vmem:[%s3532_s0 + $0x48] sm:$0xff] }
   0x8   :  { %2787 = vmatpush3.xpose.msk.msra.mxu1 %vm62_vm0, %v33_v6  ;;  %2788 = vmatprep.mubr.msk.f32.mxu1 %vm2998_vm1, %v2997_v0  ;;  %v41_v22 = vld [vmem:[%s3531_s1 + $0x58] sm:$0xff]  ;;  %v24_v23 = vld [vmem:[%s3532_s0 + $0x50] sm:$0xff]  ;;  %v42_v24 = vld [vmem:[%s3531_s1 + $0x60] sm:$0xff] }
   0x9   :  { %2784 = vmatmul.mubr.msk.f32.vlgmr.msra.gmra.mrb[2].mxu0 %vm62_vm0, %v16_v7  ;;  %2796 = vmatprep.subr.mxu1 %v2997_v0  ;;  %v25_v25 = vld [vmem:[%s3532_s0 + $0x58] sm:$0xff]  ;;  %v43_v26 = vld [vmem:[%s3531_s1 + $0x68] sm:$0xff]  ;;  %v26_v27 = vld [vmem:[%s3532_s0 + $0x60] sm:$0xff] }
   0xa   :  { %2792 = vmatpush3.xpose.msk.msra.mxu0 %vm62_vm0, %v34_v8  ;;  %2793 = vmatprep.mubr.msk.f32.mxu0 %vm2998_vm1, %v2997_v0  ;;  %v44_v28 = vld [vmem:[%s3531_s1 + $0x70] sm:$0xff]  ;;  %v27_v29 = vld [vmem:[%s3532_s0 + $0x68] sm:$0xff]  ;;  %v45_v30 = vld [vmem:[%s3531_s1 + $0x78] sm:$0xff] }
   0xb   :  { %2789 = vmatmul.mubr.msk.f32.vlgmr.msra.gmra.mrb[2].mxu1 %vm62_vm0, %v17_v9  ;;  %2801 = vmatprep.subr.mxu0 %v2997_v0  ;;  %v28_v31 = vld [vmem:[%s3532_s0 + $0x70] sm:$0xff]  ;;  %v29_v32 = vld [vmem:[%s3532_s0 + $0x78] sm:$0xff] }
   0xc   :  { %2797 = vmatpush3.xpose.msk.msra.mxu1 %vm62_vm0, %v35_v10  ;;  %2798 = vmatprep.mubr.msk.f32.mxu1 %vm2998_vm1, %v2997_v0 }
   0xd   :  { %2794 = vmatmul.mubr.msk.f32.vlgmr.msra.gmra.mrb[4].mxu0 %vm62_vm0, %v18_v11  ;;  %2806 = vmatprep.subr.mxu1 %v2997_v0 }
   0xe   :  { %2802 = vmatpush3.xpose.msk.msra.mxu0 %vm62_vm0, %v36_v12  ;;  %2803 = vmatprep.mubr.msk.f32.mxu0 %vm2998_vm1, %v2997_v0 }
   0xf   :  { %2799 = vmatmul.mubr.msk.f32.vlgmr.msra.gmra.mrb[4].mxu1 %vm62_vm0, %v19_v13  ;;  %2811 = vmatprep.subr.mxu0 %v2997_v0 }
  0x10   :  { %2807 = vmatpush3.xpose.msk.msra.mxu1 %vm62_vm0, %v37_v14  ;;  %2808 = vmatprep.mubr.msk.f32.mxu1 %vm2998_vm1, %v2997_v0 }
  0x11   :  { %2804 = vmatmul.mubr.msk.f32.vlgmr.msra.gmra.mrb[6].mxu0 %vm62_vm0, %v20_v15  ;;  %2816 = vmatprep.subr.mxu1 %v2997_v0 }
  0x12   :  { %2812 = vmatpush3.xpose.msk.msra.mxu0 %vm62_vm0, %v38_v16  ;;  %2813 = vmatprep.mubr.msk.f32.mxu0 %vm2998_vm1, %v2997_v0 }
  0x13   :  { %2809 = vmatmul.mubr.msk.f32.vlgmr.msra.gmra.mrb[6].mxu1 %vm62_vm0, %v21_v17  ;;  %2821 = vmatprep.subr.mxu0 %v2997_v0 }
  0x14   :  { %2817 = vmatpush3.xpose.msk.msra.mxu1 %vm62_vm0, %v39_v18  ;;  %2818 = vmatprep.mubr.msk.f32.mxu1 %vm2998_vm1, %v2997_v0 }
  0x15   :  { %2814 = vmatmul.mubr.msk.f32.vlgmr.msra.gmra.mrb[8].mxu0 %vm62_vm0, %v22_v19  ;;  %2826 = vmatprep.subr.mxu1 %v2997_v0 }
  0x16   :  { %2822 = vmatpush3.xpose.msk.msra.mxu0 %vm62_vm0, %v40_v20  ;;  %2823 = vmatprep.mubr.msk.f32.mxu0 %vm2998_vm1, %v2997_v0 }
  0x17   :  { %2819 = vmatmul.mubr.msk.f32.vlgmr.msra.gmra.mrb[8].mxu1 %vm62_vm0, %v23_v21  ;;  %2831 = vmatprep.subr.mxu0 %v2997_v0 }
  0x18   :  { %2827 = vmatpush3.xpose.msk.msra.mxu1 %vm62_vm0, %v41_v22  ;;  %2828 = vmatprep.mubr.msk.f32.mxu1 %vm2998_vm1, %v2997_v0 }
  0x19   :  { %2824 = vmatmul.mubr.msk.f32.vlgmr.msra.gmra.mrb[10].mxu0 %vm62_vm0, %v24_v23  ;;  %2836 = vmatprep.subr.mxu1 %v2997_v0 }
  0x1a   :  { %2832 = vmatpush3.xpose.msk.msra.mxu0 %vm62_vm0, %v42_v24  ;;  %2833 = vmatprep.mubr.msk.f32.mxu0 %vm2998_vm1, %v2997_v0 }
  0x1b   :  { %2829 = vmatmul.mubr.msk.f32.vlgmr.msra.gmra.mrb[10].mxu1 %vm62_vm0, %v25_v25  ;;  %2841 = vmatprep.subr.mxu0 %v2997_v0 }
  0x1c   :  { %2837 = vmatpush3.xpose.msk.msra.mxu1 %vm62_vm0, %v43_v26  ;;  %2838 = vmatprep.mubr.msk.f32.mxu1 %vm2998_vm1, %v2997_v0 }
  0x1d   :  { %2834 = vmatmul.mubr.msk.f32.vlgmr.msra.gmra.mrb[12].mxu0 %vm62_vm0, %v26_v27  ;;  %2846 = vmatprep.subr.mxu1 %v2997_v0 }
  0x1e   :  { %2842 = vmatpush3.xpose.msk.msra.mxu0 %vm62_vm0, %v44_v28  ;;  %2843 = vmatprep.mubr.msk.f32.mxu0 %vm2998_vm1, %v2997_v0 }
  0x1f   :  { %2839 = vmatmul.mubr.msk.f32.vlgmr.msra.gmra.mrb[12].mxu1 %vm62_vm0, %v27_v29  ;;  %2851 = vmatprep.subr.mxu0 %v2997_v0 }
  0x20   :  { %2847 = vmatpush3.xpose.msk.msra.mxu1 %vm62_vm0, %v45_v30  ;;  %2848 = vmatprep.mubr.msk.f32.mxu1 %vm2998_vm1, %v2997_v0 }
  0x21   :  { %2844 = vmatmul.mubr.msk.f32.vlgmr.msra.gmra.mrb[14].mxu0 %vm62_vm0, %v28_v31  ;;  %2856 = vmatprep.subr.mxu1 %v2997_v0 }
  0x22   :  { %2853 = vmatprep.mubr.msk.f32.mxu0 %vm2998_vm1, %v2997_v0 }
  0x23   :  { %2849 = vmatmul.mubr.msk.f32.vlgmr.msra.gmra.mrb[14].mxu1 %vm62_vm0, %v29_v32 }
  0x24   :  { %2858 = vmatprep.mubr.msk.f32.mxu1 %vm2998_vm1, %v2997_v0 }
  0xd8   :  { %v135_v33 = vpop.f32.mrb[0].mxu0 }
  0xd9   :  { %v3201_v34 = vmul.f32 0.35355338, %v135_v33  ;;  %v2775_v35 = vpop.f32.mrb[1].mxu0 }
  0xda   :  { %v211_v36 = vpop.f32.mrb[0].mxu1 }
  0xdb   :  { %v3203_v37 = vmul.f32 0.35355338, %v211_v36  ;;  %v1295_v38 = vsel %vm62_vm0, %v3201_v34, -inf  ;;  %v2780_v39 = vpop.f32.mrb[1].mxu1 }
  0xdc   :  { %1296 = vmax.xlane.f32.xlu0 %v1295_v38  ;;  %v287_v40 = vpop.f32.mrb[2].mxu0 }
  0xdd   :  { %v3207_v41 = vmul.f32 0.35355338, %v287_v40  ;;  %v2785_v42 = vpop.f32.mrb[3].mxu0  ;;  %v1298_v43 = vsel %vm62_vm0, %v3203_v37, -inf }
  0xde   :  { %v363_v44 = vpop.f32.mrb[2].mxu1 }
  0xdf   :  { %v3211_v45 = vmul.f32 0.35355338, %v363_v44  ;;  %v1301_v46 = vsel %vm62_vm0, %v3207_v41, -inf  ;;  %v2790_v47 = vpop.f32.mrb[3].mxu1 }
  0xe0   :  { %1299 = vmax.xlane.f32.xlu0 %v1298_v43  ;;  %1302 = vmax.xlane.f32.xlu1 %v1301_v46  ;;  %v439_v48 = vpop.f32.mrb[4].mxu0 }
  0xe1   :  { %v3215_v49 = vmul.f32 0.35355338, %v439_v48  ;;  %v2795_v50 = vpop.f32.mrb[5].mxu0  ;;  %v1304_v51 = vsel %vm62_vm0, %v3211_v45, -inf }
  0xe2   :  { %v515_v52 = vpop.f32.mrb[4].mxu1 }
  0xe3   :  { %v3219_v53 = vmul.f32 0.35355338, %v515_v52  ;;  %v1307_v54 = vsel %vm62_vm0, %v3215_v49, -inf  ;;  %v2800_v55 = vpop.f32.mrb[5].mxu1 }
  0xe4   :  { %1305 = vmax.xlane.f32.xlu1 %v1304_v51  ;;  %1308 = vmax.xlane.f32.xlu0 %v1307_v54  ;;  %v591_v56 = vpop.f32.mrb[6].mxu0 }
  0xe5   :  { %v3223_v57 = vmul.f32 0.35355338, %v591_v56  ;;  %v2805_v58 = vpop.f32.mrb[7].mxu0  ;;  %v1310_v59 = vsel %vm62_vm0, %v3219_v53, -inf }
  0xe6   :  { %v667_v60 = vpop.f32.mrb[6].mxu1 }
  0xe7   :  { %v3227_v61 = vmul.f32 0.35355338, %v667_v60  ;;  %v1313_v62 = vsel %vm62_vm0, %v3223_v57, -inf  ;;  %v2810_v63 = vpop.f32.mrb[7].mxu1 }
  0xe8   :  { %1311 = vmax.xlane.f32.xlu1 %v1310_v59  ;;  %1314 = vmax.xlane.f32.xlu0 %v1313_v62  ;;  %v743_v1 = vpop.f32.mrb[8].mxu0 }
  0xe9   :  { %v3231_v2 = vmul.f32 0.35355338, %v743_v1  ;;  %v2815_v3 = vpop.f32.mrb[9].mxu0  ;;  %v1316_v4 = vsel %vm62_vm0, %v3227_v61, -inf }
  0xea   :  { %v819_v5 = vpop.f32.mrb[8].mxu1 }
  0xeb   :  { %v3235_v6 = vmul.f32 0.35355338, %v819_v5  ;;  %v1319_v7 = vsel %vm62_vm0, %v3231_v2, -inf  ;;  %v2820_v8 = vpop.f32.mrb[9].mxu1 }
  0xec   :  { %1317 = vmax.xlane.f32.xlu1 %v1316_v4  ;;  %1320 = vmax.xlane.f32.xlu0 %v1319_v7  ;;  %v895_v9 = vpop.f32.mrb[10].mxu0 }
  0xed   :  { %v3239_v10 = vmul.f32 0.35355338, %v895_v9  ;;  %v2825_v11 = vpop.f32.mrb[11].mxu0  ;;  %v1322_v12 = vsel %vm62_vm0, %v3235_v6, -inf }
  0xee   :  { %v971_v13 = vpop.f32.mrb[10].mxu1 }
  0xef   :  { %v3243_v14 = vmul.f32 0.35355338, %v971_v13  ;;  %v1325_v15 = vsel %vm62_vm0, %v3239_v10, -inf  ;;  %v2830_v16 = vpop.f32.mrb[11].mxu1 }
  0xf0   :  { %1323 = vmax.xlane.f32.xlu1 %v1322_v12  ;;  %1326 = vmax.xlane.f32.xlu0 %v1325_v15  ;;  %v1047_v17 = vpop.f32.mrb[12].mxu0 }
  0xf1   :  { %v3247_v18 = vmul.f32 0.35355338, %v1047_v17  ;;  %v2835_v19 = vpop.f32.mrb[13].mxu0  ;;  %v1328_v20 = vsel %vm62_vm0, %v3243_v14, -inf }
  0xf2   :  { %v1123_v21 = vpop.f32.mrb[12].mxu1 }
  0xf3   :  { %v3251_v22 = vmul.f32 0.35355338, %v1123_v21  ;;  %v1331_v23 = vsel %vm62_vm0, %v3247_v18, -inf  ;;  %v2840_v24 = vpop.f32.mrb[13].mxu1 }
  0xf4   :  { %1329 = vmax.xlane.f32.xlu1 %v1328_v20  ;;  %1332 = vmax.xlane.f32.xlu0 %v1331_v23  ;;  %v1199_v25 = vpop.f32.mrb[14].mxu0 }
  0xf5   :  { %v3255_v26 = vmul.f32 0.35355338, %v1199_v25  ;;  %v1334_v27 = vsel %vm62_vm0, %v3251_v22, -inf  ;;  %v2845_v28 = vpop.f32.mrb[15].mxu0 }
  0xf6   :  { %v1275_v29 = vpop.f32.mrb[14].mxu1 }
  0xf7   :  { %v3259_v30 = vmul.f32 0.35355338, %v1275_v29  ;;  %v1337_v31 = vsel %vm62_vm0, %v3255_v26, -inf  ;;  %v2850_v32 = vpop.f32.mrb[15].mxu1 }
  0xf8   :  { %1335 = vmax.xlane.f32.xlu1 %v1334_v27  ;;  %1338 = vmax.xlane.f32.xlu0 %v1337_v31 }
  0xf9   :  { %v1340_v33 = vsel %vm62_vm0, %v3259_v30, -inf }
  0xfc   :  { %1341 = vmax.xlane.f32.xlu1 %v1340_v33 }
 0x169   :  { %v1297_v35 = vpop.xlane.xlu0 %1296 }
 0x16a   :  { %v1343_v36 = vsub.f32 %v3201_v34, %v1297_v35 }
 0x16c   :  { %v1359_v38 = vmul.f32 1.442695, %v1343_v36 }
 0x16d   :  { %v1300_v39 = vpop.xlane.xlu0 %1299  ;;  %v1303_v40 = vpop.xlane.xlu1 %1302 }
 0x16e   :  { %2933 = vpow2.f32 %v1359_v38  ;;  %v1344_v42 = vsub.f32 %v3203_v37, %v1300_v39  ;;  %v1345_v43 = vsub.f32 %v3207_v41, %v1303_v40 }
 0x170   :  { %v1361_v44 = vmul.f32 1.442695, %v1344_v42  ;;  %v1363_v46 = vmul.f32 1.442695, %v1345_v43 }
 0x171   :  { %v1306_v47 = vpop.xlane.xlu1 %1305  ;;  %v1309_v48 = vpop.xlane.xlu0 %1308 }
 0x172   :  { %2935 = vpow2.f32 %v1361_v44  ;;  %v1346_v50 = vsub.f32 %v3211_v45, %v1306_v47  ;;  %v1347_v51 = vsub.f32 %v3215_v49, %v1309_v48 }
 0x173   :  { %2937 = vpow2.f32 %v1363_v46 }
 0x174   :  { %v1365_v52 = vmul.f32 1.442695, %v1346_v50  ;;  %v1367_v34 = vmul.f32 1.442695, %v1347_v51  ;;  %v46_v51 = vld [vmem:[%s3533_s2] sm:$0xff] }
 0x175   :  { %v1312_v54 = vpop.xlane.xlu1 %1311  ;;  %v1315_v55 = vpop.xlane.xlu0 %1314  ;;  %2852 = vmatpush3.msra.mxu0 %v46_v51 }
 0x176   :  { %2939 = vpow2.f32 %v1365_v52  ;;  %v1348_v56 = vsub.f32 %v3219_v53, %v1312_v54  ;;  %v1349_v37 = vsub.f32 %v3223_v57, %v1315_v55  ;;  %2861 = vmatprep.subr.mxu0 %v2997_v0 }
 0x177   :  { %2941 = vpow2.f32 %v1367_v34 }
 0x178   :  { %v3272_v41 = vpop.eup %2933  ;;  %v1369_v58 = vmul.f32 1.442695, %v1348_v56  ;;  %v1371_v59 = vmul.f32 1.442695, %v1349_v37  ;;  %v47_v56 = vld [vmem:[%s3533_s2 + $0x8] sm:$0xff] }
 0x179   :  { %v1318_v60 = vpop.xlane.xlu1 %1317  ;;  %v1321_v62 = vpop.xlane.xlu0 %1320  ;;  %v1391_v45 = vsel %vm62_vm0, %v3272_v41, 0.0  ;;  %2857 = vmatpush3.msra.mxu1 %v47_v56  ;;  %v61_v56 = vld [vmem:[%s3533_s2 + $0x78] sm:$0xff] }
 0x17a   :  { %2943 = vpow2.f32 %v1369_v58  ;;  %v1350_v49 = vsub.f32 %v3227_v61, %v1318_v60  ;;  %v1351_v63 = vsub.f32 %v3231_v2, %v1321_v62  ;;  %1392 = vadd.xlane.f32.xlu0 %v1391_v45  ;;  %2866 = vmatprep.subr.mxu1 %v2997_v0 }
 0x17b   :  { %2945 = vpow2.f32 %v1371_v59 }
 0x17c   :  { %v3278_v53 = vpop.eup %2935  ;;  %v1373_v57 = vmul.f32 1.442695, %v1350_v49  ;;  %v1375_v1 = vmul.f32 1.442695, %v1351_v63 }
 0x17d   :  { %v3280_v3 = vpop.eup %2937  ;;  %v1324_v4 = vpop.xlane.xlu1 %1323  ;;  %v1394_v7 = vsel %vm62_vm0, %v3278_v53, 0.0 }
 0x17e   :  { %v1327_v5 = vpop.xlane.xlu0 %1326  ;;  %2947 = vpow2.f32 %v1373_v57  ;;  %v1352_v8 = vsub.f32 %v3235_v6, %v1324_v4  ;;  %1395 = vadd.xlane.f32.xlu1 %v1394_v7  ;;  %v1397_v2 = vsel %vm62_vm0, %v3280_v3, 0.0 }
 0x17f   :  { %v1353_v61 = vsub.f32 %v3239_v10, %v1327_v5  ;;  %2949 = vpow2.f32 %v1375_v1  ;;  %1398 = vadd.xlane.f32.xlu0 %v1397_v2  ;;  %v48_v1 = vld [vmem:[%s3533_s2 + $0x10] sm:$0xff] }
 0x180   :  { %v3288_v9 = vpop.eup %2939  ;;  %v1377_v11 = vmul.f32 1.442695, %v1352_v8 }
 0x181   :  { %v1379_v12 = vmul.f32 1.442695, %v1353_v61  ;;  %v3290_v13 = vpop.eup %2941  ;;  %v1330_v15 = vpop.xlane.xlu1 %1329  ;;  %v1400_v17 = vsel %vm62_vm0, %v3288_v9, 0.0 }
 0x182   :  { %v1333_v16 = vpop.xlane.xlu0 %1332  ;;  %2951 = vpow2.f32 %v1377_v11  ;;  %v1354_v6 = vsub.f32 %v3243_v14, %v1330_v15  ;;  %1401 = vadd.xlane.f32.xlu1 %v1400_v17  ;;  %v1403_v19 = vsel %vm62_vm0, %v3290_v13, 0.0 }
 0x183   :  { %v1355_v10 = vsub.f32 %v3247_v18, %v1333_v16  ;;  %2953 = vpow2.f32 %v1379_v12  ;;  %1404 = vadd.xlane.f32.xlu0 %v1403_v19  ;;  %v50_v12 = vld [vmem:[%s3533_s2 + $0x20] sm:$0xff] }
 0x184   :  { %v3298_v20 = vpop.eup %2943  ;;  %v1381_v21 = vmul.f32 1.442695, %v1354_v6 }
 0x185   :  { %v1383_v23 = vmul.f32 1.442695, %v1355_v10  ;;  %v3300_v24 = vpop.eup %2945  ;;  %v1336_v25 = vpop.xlane.xlu1 %1335  ;;  %v1406_v28 = vsel %vm62_vm0, %v3298_v20, 0.0 }
 0x186   :  { %v1339_v27 = vpop.xlane.xlu0 %1338  ;;  %2955 = vpow2.f32 %v1381_v21  ;;  %v1356_v14 = vsub.f32 %v3251_v22, %v1336_v25  ;;  %1407 = vadd.xlane.f32.xlu1 %v1406_v28  ;;  %v1409_v29 = vsel %vm62_vm0, %v3300_v24, 0.0  ;;  %v53_v25 = vld [vmem:[%s3533_s2 + $0x38] sm:$0xff] }
 0x187   :  { %v1357_v18 = vsub.f32 %v3255_v26, %v1339_v27  ;;  %2957 = vpow2.f32 %v1383_v23  ;;  %1410 = vadd.xlane.f32.xlu0 %v1409_v29 }
 0x188   :  { %v3308_v31 = vpop.eup %2947  ;;  %v1385_v32 = vmul.f32 1.442695, %v1356_v14 }
 0x189   :  { %v1387_v33 = vmul.f32 1.442695, %v1357_v18  ;;  %v3310_v35 = vpop.eup %2949  ;;  %v1342_v36 = vpop.xlane.xlu1 %1341  ;;  %v1412_v38 = vsel %vm62_vm0, %v3308_v31, 0.0 }
 0x18a   :  { %2959 = vpow2.f32 %v1385_v32  ;;  %v1358_v22 = vsub.f32 %v3259_v30, %v1342_v36  ;;  %1413 = vadd.xlane.f32.xlu1 %v1412_v38  ;;  %v1415_v26 = vsel %vm62_vm0, %v3310_v35, 0.0  ;;  %v55_v32 = vld [vmem:[%s3533_s2 + $0x48] sm:$0xff] }
 0x18b   :  { %2961 = vpow2.f32 %v1387_v33  ;;  %1416 = vadd.xlane.f32.xlu0 %v1415_v26 }
 0x18c   :  { %v3317_v39 = vpop.eup %2951  ;;  %v1389_v40 = vmul.f32 1.442695, %v1358_v22 }
 0x18d   :  { %v3319_v42 = vpop.eup %2953  ;;  %v1418_v43 = vsel %vm62_vm0, %v3317_v39, 0.0 }
 0x18e   :  { %2963 = vpow2.f32 %v1389_v40  ;;  %1419 = vadd.xlane.f32.xlu1 %v1418_v43  ;;  %v1421_v44 = vsel %vm62_vm0, %v3319_v42, 0.0  ;;  %v57_v40 = vld [vmem:[%s3533_s2 + $0x58] sm:$0xff] }
 0x18f   :  { %1422 = vadd.xlane.f32.xlu0 %v1421_v44 }
 0x190   :  { %v3325_v30 = vpop.eup %2955 }
 0x191   :  { %v3327_v46 = vpop.eup %2957  ;;  %v1424_v47 = vsel %vm62_vm0, %v3325_v30, 0.0 }
 0x192   :  { %1425 = vadd.xlane.f32.xlu1 %v1424_v47  ;;  %v1427_v48 = vsel %vm62_vm0, %v3327_v46, 0.0 }
 0x193   :  { %1428 = vadd.xlane.f32.xlu0 %v1427_v48  ;;  %v59_v48 = vld [vmem:[%s3533_s2 + $0x68] sm:$0xff] }
 0x194   :  { %v3333_v50 = vpop.eup %2959 }
 0x195   :  { %v3338_v52 = vpop.eup %2961  ;;  %v1430_v34 = vsel %vm62_vm0, %v3333_v50, 0.0 }
 0x196   :  { %1431 = vadd.xlane.f32.xlu1 %v1430_v34  ;;  %v1433_v54 = vsel %vm62_vm0, %v3338_v52, 0.0  ;;  %v60_v34 = vld [vmem:[%s3533_s2 + $0x70] sm:$0xff] }
 0x197   :  { %1434 = vadd.xlane.f32.xlu0 %v1433_v54 }
 0x198   :  { %v3345_v55 = vpop.eup %2963 }
 0x199   :  { %v1436_v37 = vsel %vm62_vm0, %v3345_v55, 0.0 }
 0x19a   :  { %1437 = vadd.xlane.f32.xlu1 %v1436_v37 }
 0x207   :  { %v1393_v58 = vpop.xlane.xlu0 %1392 }
 0x208   :  { %2965 = vrcp.f32 %v1393_v58 }
 0x20b   :  { %v1396_v59 = vpop.xlane.xlu1 %1395 }
 0x20c   :  { %2967 = vrcp.f32 %v1396_v59  ;;  %v1399_v60 = vpop.xlane.xlu0 %1398 }
 0x20d   :  { %2969 = vrcp.f32 %v1399_v60 }
 0x20f   :  { %v1402_v62 = vpop.xlane.xlu1 %1401 }
 0x210   :  { %2971 = vrcp.f32 %v1402_v62  ;;  %v1405_v45 = vpop.xlane.xlu0 %1404 }
 0x211   :  { %2973 = vrcp.f32 %v1405_v45 }
 0x212   :  { %v2966_v49 = vpop.eup %2965 }
 0x213   :  { %v1440_v63 = vmul.f32 %v2966_v49, %v3272_v41  ;;  %v1408_v57 = vpop.xlane.xlu1 %1407  ;;  %v49_v41 = vld [vmem:[%s3533_s2 + $0x18] sm:$0xff] }
 0x214   :  { %2975 = vrcp.f32 %v1408_v57  ;;  %v1411_v4 = vpop.xlane.xlu0 %1410 }
 0x215   :  { %2977 = vrcp.f32 %v1411_v4  ;;  %2854 = vmatmul.mubr.msk.f32.vlgmr.msra.gmra.mrb[16].mxu0 %vm62_vm0, %v1440_v63 }
 0x216   :  { %v2968_v5 = vpop.eup %2967  ;;  %2862 = vmatpush3.msra.mxu0 %v48_v1  ;;  %2863 = vmatprep.mubr.msk.f32.mxu0 %vm2998_vm1, %v2997_v0 }
 0x217   :  { %v2970_v7 = vpop.eup %2969  ;;  %v1442_v8 = vmul.f32 %v2968_v5, %v3278_v53  ;;  %v1414_v61 = vpop.xlane.xlu1 %1413  ;;  %2871 = vmatprep.subr.mxu0 %v2997_v0 }
 0x218   :  { %v1444_v2 = vmul.f32 %v2970_v7, %v3280_v3  ;;  %2979 = vrcp.f32 %v1414_v61  ;;  %v1417_v11 = vpop.xlane.xlu0 %1416  ;;  %v51_v3 = vld [vmem:[%s3533_s2 + $0x28] sm:$0xff] }
 0x219   :  { %2981 = vrcp.f32 %v1417_v11  ;;  %2859 = vmatmul.mubr.msk.f32.vlgmr.msra.gmra.mrb[16].mxu1 %vm62_vm0, %v1442_v8 }
 0x21a   :  { %v2972_v15 = vpop.eup %2971  ;;  %2864 = vmatmul.mubr.msk.f32.vlgmr.msra.gmra.mrb[18].mxu0 %vm62_vm0, %v1444_v2  ;;  %2867 = vmatpush3.msra.mxu1 %v49_v41 }
 0x21b   :  { %v2974_v53 = vpop.eup %2973  ;;  %v1446_v16 = vmul.f32 %v2972_v15, %v3288_v9  ;;  %v1420_v17 = vpop.xlane.xlu1 %1419  ;;  %2868 = vmatprep.mubr.msk.f32.mxu1 %vm2998_vm1, %v2997_v0  ;;  %2872 = vmatpush3.msra.mxu0 %v50_v12  ;;  %v52_v9 = vld [vmem:[%s3533_s2 + $0x30] sm:$0xff] }
 0x21c   :  { %v1448_v6 = vmul.f32 %v2974_v53, %v3290_v13  ;;  %2983 = vrcp.f32 %v1420_v17  ;;  %v1423_v10 = vpop.xlane.xlu0 %1422  ;;  %2873 = vmatprep.mubr.msk.f32.mxu0 %vm2998_vm1, %v2997_v0  ;;  %2876 = vmatprep.subr.mxu1 %v2997_v0 }
 0x21d   :  { %2985 = vrcp.f32 %v1423_v10  ;;  %2869 = vmatmul.mubr.msk.f32.vlgmr.msra.gmra.mrb[18].mxu1 %vm62_vm0, %v1446_v16  ;;  %2881 = vmatprep.subr.mxu0 %v2997_v0 }
 0x21e   :  { %v2976_v19 = vpop.eup %2975  ;;  %2874 = vmatmul.mubr.msk.f32.vlgmr.msra.gmra.mrb[20].mxu0 %vm62_vm0, %v1448_v6  ;;  %2877 = vmatpush3.msra.mxu1 %v51_v3 }
 0x21f   :  { %v2978_v13 = vpop.eup %2977  ;;  %v1450_v21 = vmul.f32 %v2976_v19, %v3298_v20  ;;  %v1426_v23 = vpop.xlane.xlu1 %1425  ;;  %2878 = vmatprep.mubr.msk.f32.mxu1 %vm2998_vm1, %v2997_v0  ;;  %2882 = vmatpush3.msra.mxu0 %v52_v9  ;;  %v54_v20 = vld [vmem:[%s3533_s2 + $0x40] sm:$0xff] }
 0x220   :  { %v1452_v27 = vmul.f32 %v2978_v13, %v3300_v24  ;;  %2987 = vrcp.f32 %v1426_v23  ;;  %v1429_v28 = vpop.xlane.xlu0 %1428  ;;  %2883 = vmatprep.mubr.msk.f32.mxu0 %vm2998_vm1, %v2997_v0  ;;  %2886 = vmatprep.subr.mxu1 %v2997_v0 }
 0x221   :  { %2989 = vrcp.f32 %v1429_v28  ;;  %2879 = vmatmul.mubr.msk.f32.vlgmr.msra.gmra.mrb[20].mxu1 %vm62_vm0, %v1450_v21  ;;  %2891 = vmatprep.subr.mxu0 %v2997_v0 }
 0x222   :  { %v2980_v14 = vpop.eup %2979  ;;  %2884 = vmatmul.mubr.msk.f32.vlgmr.msra.gmra.mrb[22].mxu0 %vm62_vm0, %v1452_v27  ;;  %2887 = vmatpush3.msra.mxu1 %v53_v25 }
 0x223   :  { %v2982_v24 = vpop.eup %2981  ;;  %v1454_v18 = vmul.f32 %v2980_v14, %v3308_v31  ;;  %v1432_v29 = vpop.xlane.xlu1 %1431  ;;  %2888 = vmatprep.mubr.msk.f32.mxu1 %vm2998_vm1, %v2997_v0  ;;  %2892 = vmatpush3.msra.mxu0 %v54_v20  ;;  %v56_v31 = vld [vmem:[%s3533_s2 + $0x50] sm:$0xff] }
 0x224   :  { %v1456_v33 = vmul.f32 %v2982_v24, %v3310_v35  ;;  %2991 = vrcp.f32 %v1432_v29  ;;  %v1435_v36 = vpop.xlane.xlu0 %1434  ;;  %2893 = vmatprep.mubr.msk.f32.mxu0 %vm2998_vm1, %v2997_v0  ;;  %2896 = vmatprep.subr.mxu1 %v2997_v0 }
 0x225   :  { %2993 = vrcp.f32 %v1435_v36  ;;  %2889 = vmatmul.mubr.msk.f32.vlgmr.msra.gmra.mrb[22].mxu1 %vm62_vm0, %v1454_v18  ;;  %2901 = vmatprep.subr.mxu0 %v2997_v0 }
 0x226   :  { %v2984_v38 = vpop.eup %2983  ;;  %2894 = vmatmul.mubr.msk.f32.vlgmr.msra.gmra.mrb[24].mxu0 %vm62_vm0, %v1456_v33  ;;  %2897 = vmatpush3.msra.mxu1 %v55_v32 }
 0x227   :  { %v2986_v35 = vpop.eup %2985  ;;  %v1458_v22 = vmul.f32 %v2984_v38, %v3317_v39  ;;  %v1438_v26 = vpop.xlane.xlu1 %1437  ;;  %2898 = vmatprep.mubr.msk.f32.mxu1 %vm2998_vm1, %v2997_v0  ;;  %2902 = vmatpush3.msra.mxu0 %v56_v31  ;;  %v58_v39 = vld [vmem:[%s3533_s2 + $0x60] sm:$0xff] }
 0x228   :  { %v1460_v43 = vmul.f32 %v2986_v35, %v3319_v42  ;;  %2995 = vrcp.f32 %v1438_v26  ;;  %2903 = vmatprep.mubr.msk.f32.mxu0 %vm2998_vm1, %v2997_v0  ;;  %2906 = vmatprep.subr.mxu1 %v2997_v0 }
 0x229   :  { %2899 = vmatmul.mubr.msk.f32.vlgmr.msra.gmra.mrb[24].mxu1 %vm62_vm0, %v1458_v22  ;;  %2911 = vmatprep.subr.mxu0 %v2997_v0 }
 0x22a   :  { %v2988_v44 = vpop.eup %2987  ;;  %2904 = vmatmul.mubr.msk.f32.vlgmr.msra.gmra.mrb[26].mxu0 %vm62_vm0, %v1460_v43  ;;  %2907 = vmatpush3.msra.mxu1 %v57_v40 }
 0x22b   :  { %v2990_v47 = vpop.eup %2989  ;;  %v1462_v42 = vmul.f32 %v2988_v44, %v3325_v30  ;;  %2908 = vmatprep.mubr.msk.f32.mxu1 %vm2998_vm1, %v2997_v0  ;;  %2912 = vmatpush3.msra.mxu0 %v58_v39 }
 0x22c   :  { %v1464_v51 = vmul.f32 %v2990_v47, %v3327_v46  ;;  %2913 = vmatprep.mubr.msk.f32.mxu0 %vm2998_vm1, %v2997_v0  ;;  %2916 = vmatprep.subr.mxu1 %v2997_v0 }
 0x22d   :  { %2909 = vmatmul.mubr.msk.f32.vlgmr.msra.gmra.mrb[26].mxu1 %vm62_vm0, %v1462_v42  ;;  %2921 = vmatprep.subr.mxu0 %v2997_v0 }
 0x22e   :  { %v2992_v30 = vpop.eup %2991  ;;  %2914 = vmatmul.mubr.msk.f32.vlgmr.msra.gmra.mrb[28].mxu0 %vm62_vm0, %v1464_v51  ;;  %2917 = vmatpush3.msra.mxu1 %v59_v48 }
 0x22f   :  { %v2994_v54 = vpop.eup %2993  ;;  %v1466_v46 = vmul.f32 %v2992_v30, %v3333_v50  ;;  %2918 = vmatprep.mubr.msk.f32.mxu1 %vm2998_vm1, %v2997_v0  ;;  %2922 = vmatpush3.msra.mxu0 %v60_v34 }
 0x230   :  { %v1468_v37 = vmul.f32 %v2994_v54, %v3338_v52  ;;  %2923 = vmatprep.mubr.msk.f32.mxu0 %vm2998_vm1, %v2997_v0  ;;  %2926 = vmatprep.subr.mxu1 %v2997_v0 }
 0x231   :  { %2919 = vmatmul.mubr.msk.f32.vlgmr.msra.gmra.mrb[28].mxu1 %vm62_vm0, %v1466_v46 }
 0x232   :  { %v2996_v58 = vpop.eup %2995  ;;  %2924 = vmatmul.mubr.msk.f32.vlgmr.msra.gmra.mrb[30].mxu0 %vm62_vm0, %v1468_v37  ;;  %2927 = vmatpush3.msra.mxu1 %v61_v56 }
 0x233   :  { %v1470_v50 = vmul.f32 %v2996_v58, %v3345_v55  ;;  %2928 = vmatprep.mubr.msk.f32.mxu1 %vm2998_vm1, %v2997_v0 }
 0x235   :  { %2929 = vmatmul.mubr.msk.f32.vlgmr.msra.gmra.mrb[30].mxu1 %vm62_vm0, %v1470_v50 }
 0x2e8   :  { %v1540_v59 = vpop.f32.mrb[16].mxu0 }
 0x2e9   :  { %2639 = vst.msk [vmem:[%s3534_s3] sm:$0xff] %vm62_vm0, %v1540_v59  ;;  %v2855_v52 = vpop.f32.mrb[17].mxu0 }
 0x2ec   :  { %v1613_v60 = vpop.f32.mrb[16].mxu1 }
 0x2ed   :  { %2640 = vst.msk [vmem:[%s3534_s3 + $0x8] sm:$0xff] %vm62_vm0, %v1613_v60  ;;  %v1686_v62 = vpop.f32.mrb[18].mxu0  ;;  %v2860_v55 = vpop.f32.mrb[17].mxu1 }
 0x2ee   :  { %2641 = vst.msk [vmem:[%s3534_s3 + $0x10] sm:$0xff] %vm62_vm0, %v1686_v62  ;;  %v2865_v0 = vpop.f32.mrb[19].mxu0 }
 0x2f0   :  { %v1759_v45 = vpop.f32.mrb[18].mxu1 }
 0x2f1   :  { %2642 = vst.msk [vmem:[%s3534_s3 + $0x18] sm:$0xff] %vm62_vm0, %v1759_v45  ;;  %v1832_v49 = vpop.f32.mrb[20].mxu0  ;;  %v2870_v63 = vpop.f32.mrb[19].mxu1 }
 0x2f2   :  { %2643 = vst.msk [vmem:[%s3534_s3 + $0x20] sm:$0xff] %vm62_vm0, %v1832_v49  ;;  %v2875_v57 = vpop.f32.mrb[21].mxu0 }
 0x2f4   :  { %v1905_v1 = vpop.f32.mrb[20].mxu1 }
 0x2f5   :  { %2644 = vst.msk [vmem:[%s3534_s3 + $0x28] sm:$0xff] %vm62_vm0, %v1905_v1  ;;  %v1978_v4 = vpop.f32.mrb[22].mxu0  ;;  %v2880_v5 = vpop.f32.mrb[21].mxu1 }
 0x2f6   :  { %2645 = vst.msk [vmem:[%s3534_s3 + $0x30] sm:$0xff] %vm62_vm0, %v1978_v4  ;;  %v2885_v7 = vpop.f32.mrb[23].mxu0 }
 0x2f8   :  { %v2051_v8 = vpop.f32.mrb[22].mxu1 }
 0x2f9   :  { %2646 = vst.msk [vmem:[%s3534_s3 + $0x38] sm:$0xff] %vm62_vm0, %v2051_v8  ;;  %v2124_v61 = vpop.f32.mrb[24].mxu0  ;;  %v2890_v41 = vpop.f32.mrb[23].mxu1 }
 0x2fa   :  { %2647 = vst.msk [vmem:[%s3534_s3 + $0x40] sm:$0xff] %vm62_vm0, %v2124_v61  ;;  %v2895_v2 = vpop.f32.mrb[25].mxu0 }
 0x2fc   :  { %v2197_v11 = vpop.f32.mrb[24].mxu1 }
 0x2fd   :  { %2648 = vst.msk [vmem:[%s3534_s3 + $0x48] sm:$0xff] %vm62_vm0, %v2197_v11  ;;  %v2270_v12 = vpop.f32.mrb[26].mxu0  ;;  %v2900_v15 = vpop.f32.mrb[25].mxu1 }
 0x2fe   :  { %2649 = vst.msk [vmem:[%s3534_s3 + $0x50] sm:$0xff] %vm62_vm0, %v2270_v12  ;;  %v2905_v53 = vpop.f32.mrb[27].mxu0 }
 0x300   :  { %v2343_v16 = vpop.f32.mrb[26].mxu1 }
 0x301   :  { %2650 = vst.msk [vmem:[%s3534_s3 + $0x58] sm:$0xff] %vm62_vm0, %v2343_v16  ;;  %v2416_v17 = vpop.f32.mrb[28].mxu0  ;;  %v2910_v3 = vpop.f32.mrb[27].mxu1 }
 0x302   :  { %2651 = vst.msk [vmem:[%s3534_s3 + $0x60] sm:$0xff] %vm62_vm0, %v2416_v17  ;;  %v2915_v6 = vpop.f32.mrb[29].mxu0 }
 0x304   :  { %v2489_v10 = vpop.f32.mrb[28].mxu1 }
 0x305   :  { %2652 = vst.msk [vmem:[%s3534_s3 + $0x68] sm:$0xff] %vm62_vm0, %v2489_v10  ;;  %v2562_v9 = vpop.f32.mrb[30].mxu0  ;;  %v2920_v19 = vpop.f32.mrb[29].mxu1 }
 0x306   :  { %2653 = vst.msk [vmem:[%s3534_s3 + $0x70] sm:$0xff] %vm62_vm0, %v2562_v9  ;;  %v2925_v13 = vpop.f32.mrb[31].mxu0 }
 0x308   :  { %v2635_v21 = vpop.f32.mrb[30].mxu1 }
 0x309   :  { %2654 = vst.msk [vmem:[%s3534_s3 + $0x78] sm:$0xff] %vm62_vm0, %v2635_v21  ;;  %v2930_v23 = vpop.f32.mrb[31].mxu1 }

// kernel: _lambda_.33
= control target key start
LH: loop header
LB: loop body
LE: loop exit
PB: predicated region body
PF: predicated region fallthrough
CT: control target
= control target key end

     0   :  { %vm149_vm0 = vcmask 588800   ;;  %vm174_vm1 = vcmask 1043456   ;;  %s742_s1 = inlined_call_operand.vmem [shape: bf16[72,128], index: 1, kind: input, shape index: {}]   ;;  %s743_s0 = inlined_call_operand.vmem [shape: bf16[128,72], index: 0, kind: input, shape index: {}]   ;;  %s744_s2 = inlined_call_operand.vmem [shape: f32[1,128], index: 2, kind: input, shape index: {}]   ;;  %s745_s3 = inlined_call_operand.vmem [shape: f32[1,128], index: 3, kind: input, shape index: {}]   ;;  %s746_s4 = inlined_call_operand.vmem [shape: f32[128,128], index: 4, kind: input, shape index: {}]   ;;  %s747_s5 = inlined_call_operand.vmem [shape: f32[128,128], index: 5, kind: output, shape index: {}]  }
   0x1   :  { %v514_v0 = vld [vmem:[%s742_s1] sm:$0xff]   ;;  %v515_v1 = vld [vmem:[%s742_s1 + $0x8] sm:$0xff]   ;;  %v516_v2 = vld [vmem:[%s742_s1 + $0x10] sm:$0xff]  }
   0x2   :  { %476 = vmatprep.subr.bf16.mxu0 %v514_v0  ;;  %502 = vmatprep.subr.bf16.mxu1 %v514_v0  ;;  %v519_v3 = vld [vmem:[%s743_s0] sm:$0xff]   ;;  %v517_v5 = vld [vmem:[%s742_s1 + $0x18] sm:$0xff]   ;;  %v521_v8 = vld [vmem:[%s743_s0 + $0x8] sm:$0xff]  }
   0x3   :  { %477 = vmatpush3.bf16.msra.mxu0 %v514_v0  ;;  %507 = vmatpush3.bf16.msra.mxu1 %v514_v0  ;;  %v520_v4 = vld [vmem:[%s743_s0 + $0x20] sm:$0xff]   ;;  %v522_v9 = vld [vmem:[%s743_s0 + $0x28] sm:$0xff]   ;;  %v523_v10 = vld [vmem:[%s743_s0 + $0x10] sm:$0xff]  }
   0x4   :  { %478 = vmatprep.subr.bf16.mxu0 %v515_v1  ;;  %503 = vmatprep.subr.bf16.mxu1 %v515_v1  ;;  %v518_v6 = vld [vmem:[%s742_s1 + $0x20] ss:$0 sps:$4 sm:$0xff]   ;;  %v524_v11 = vld [vmem:[%s743_s0 + $0x30] sm:$0xff]   ;;  %v525_v12 = vld [vmem:[%s743_s0 + $0x18] sm:$0xff]  }
   0x5   :  { %486 = vmatprep.mubr.msk.bf16.mxu0 %vm149_vm0, %v519_v3  ;;  %494 = vmatprep.mubr.msk.bf16.mxu1 %vm149_vm0, %v520_v4  ;;  %v176_v7 = vsel %vm174_vm1, %v518_v6, 0  ;;  %v526_v13 = vld [vmem:[%s743_s0 + $0x38] sm:$0xff]   ;;  %v607_v14 = vld [vmem:[%s744_s2] ss:$0 sm:$0xff]  ;;  %v374_v22 = vld [vmem:[%s746_s4 + $0x10] sm:$0xff] }
   0x6   :  { %v612_v16 = vld [vmem:[%s745_s3] ss:$0 sm:$0xff]  ;;  %v382_v23 = vld [vmem:[%s746_s4 + $0x50] sm:$0xff]  ;;  %v375_v38 = vld [vmem:[%s746_s4 + $0x18] sm:$0xff] }
   0x7   :  { %479 = vmatpush3.bf16.msra.mxu0 %v515_v1  ;;  %508 = vmatpush3.bf16.msra.mxu1 %v515_v1  ;;  %v372_v30 = vld [vmem:[%s746_s4] sm:$0xff]  ;;  %v383_v39 = vld [vmem:[%s746_s4 + $0x58] sm:$0xff]  ;;  %v373_v46 = vld [vmem:[%s746_s4 + $0x8] sm:$0xff] }
   0x8   :  { %480 = vmatprep.subr.bf16.mxu0 %v516_v2  ;;  %504 = vmatprep.subr.bf16.mxu1 %v516_v2  ;;  %v380_v31 = vld [vmem:[%s746_s4 + $0x40] sm:$0xff]  ;;  %v381_v47 = vld [vmem:[%s746_s4 + $0x48] sm:$0xff] }
   0xb   :  { %481 = vmatpush3.bf16.msra.mxu0 %v516_v2  ;;  %509 = vmatpush3.bf16.msra.mxu1 %v516_v2 }
   0xc   :  { %482 = vmatprep.subr.bf16.mxu0 %v517_v5  ;;  %505 = vmatprep.subr.bf16.mxu1 %v517_v5 }
   0xf   :  { %483 = vmatpush3.bf16.msra.mxu0 %v517_v5  ;;  %510 = vmatpush3.bf16.msra.mxu1 %v517_v5 }
  0x10   :  { %512 = vmatprep.subr.msk.bf16.mxu0 %vm174_vm1, %v518_v6  ;;  %513 = vmatprep.subr.msk.bf16.mxu1 %vm174_vm1, %v518_v6  ;;  %v378_v6 = vld [vmem:[%s746_s4 + $0x30] sm:$0xff] }
  0x13   :  { %485 = vmatpush3.bf16.msra.mxu0 %v176_v7  ;;  %511 = vmatpush3.bf16.msra.mxu1 %v176_v7  ;;  %v386_v7 = vld [vmem:[%s746_s4 + $0x70] sm:$0xff] }
  0x16   :  { %487 = vmatmul.mubr.msk.bf16.vlgmr.msra.gmra.mrb[0].mxu0 %vm149_vm0, %v521_v8  ;;  %495 = vmatmul.mubr.msk.bf16.vlgmr.msra.gmra.mrb[0].mxu1 %vm149_vm0, %v522_v9 }
  0x17   :  { %490 = vmatprep.mubr.msk.bf16.mxu0 %vm149_vm0, %v523_v10  ;;  %498 = vmatprep.mubr.msk.bf16.mxu1 %vm149_vm0, %v524_v11 }
  0x1e   :  { %491 = vmatmul.mubr.msk.bf16.gmra.mrb[4].mxu0 %vm149_vm0, %v525_v12  ;;  %499 = vmatmul.mubr.msk.bf16.gmra.mrb[4].mxu1 %vm149_vm0, %v526_v13 }
  0xe9   :  { %v488_v15 = vpop.f32.mrb[0].mxu0  ;;  %v496_v17 = vpop.f32.mrb[0].mxu1 }
  0xea   :  { %v335_v18 = vmul.f32 %v488_v15, %v607_v14  ;;  %v343_v19 = vmul.f32 %v496_v17, %v607_v14  ;;  %v212_v20 = vpop.f32.mrb[1].mxu0  ;;  %v244_v21 = vpop.f32.mrb[1].mxu1  ;;  %v376_v15 = vld [vmem:[%s746_s4 + $0x20] sm:$0xff] }
  0xeb   :  { %v333_v24 = vmul.f32 %v607_v14, %v212_v20  ;;  %v341_v25 = vmul.f32 %v607_v14, %v244_v21  ;;  %v489_v26 = vpop.f32.mrb[2].mxu0  ;;  %v497_v27 = vpop.f32.mrb[2].mxu1  ;;  %v384_v17 = vld [vmem:[%s746_s4 + $0x60] sm:$0xff] }
  0xec   :  { %v358_v28 = vadd.f32 %v612_v16, %v335_v18  ;;  %v366_v29 = vadd.f32 %v612_v16, %v343_v19  ;;  %v336_v32 = vmul.f32 %v489_v26, %v607_v14  ;;  %v344_v33 = vmul.f32 %v497_v27, %v607_v14  ;;  %v215_v34 = vpop.f32.mrb[3].mxu0  ;;  %v247_v35 = vpop.f32.mrb[3].mxu1 }
  0xed   :  { %v356_v36 = vadd.f32 %v612_v16, %v333_v24  ;;  %v364_v37 = vadd.f32 %v612_v16, %v341_v25  ;;  %v334_v40 = vmul.f32 %v607_v14, %v215_v34  ;;  %v342_v41 = vmul.f32 %v607_v14, %v247_v35  ;;  %v379_v24 = vld [vmem:[%s746_s4 + $0x38] sm:$0xff] }
  0xee   :  { %v390_v42 = vadd.f32 %v374_v22, %v358_v28  ;;  %v398_v43 = vadd.f32 %v382_v23, %v366_v29  ;;  %v359_v44 = vadd.f32 %v612_v16, %v336_v32  ;;  %v367_v45 = vadd.f32 %v612_v16, %v344_v33  ;;  %v387_v25 = vld [vmem:[%s746_s4 + $0x78] sm:$0xff]  ;;  %v377_v32 = vld [vmem:[%s746_s4 + $0x28] sm:$0xff] }
  0xef   :  { %v388_v48 = vadd.f32 %v372_v30, %v356_v36  ;;  %v396_v49 = vadd.f32 %v380_v31, %v364_v37  ;;  %v357_v50 = vadd.f32 %v612_v16, %v334_v40  ;;  %v365_v51 = vadd.f32 %v612_v16, %v342_v41  ;;  %v385_v33 = vld [vmem:[%s746_s4 + $0x68] sm:$0xff] }
  0xf0   :  { %v406_v52 = vmax.f32 %v390_v42, 0.0  ;;  %v414_v53 = vmax.f32 %v398_v43, 0.0  ;;  %v391_v54 = vadd.f32 %v375_v38, %v359_v44  ;;  %v399_v55 = vadd.f32 %v383_v39, %v367_v45 }
  0xf1   :  { %v404_v56 = vmax.f32 %v388_v48, 0.0  ;;  %v412_v57 = vmax.f32 %v396_v49, 0.0  ;;  %v389_v58 = vadd.f32 %v373_v46, %v357_v50  ;;  %v397_v59 = vadd.f32 %v381_v47, %v365_v51  ;;  %v492_v60 = vpop.f32.mrb[4].mxu0  ;;  %v500_v61 = vpop.f32.mrb[4].mxu1 }
  0xf2   :  { %422 = vst [vmem:[%s747_s5 + $0x10] sm:$0xff] %v406_v52  ;;  %430 = vst [vmem:[%s747_s5 + $0x50] sm:$0xff] %v414_v53  ;;  %v407_v62 = vmax.f32 %v391_v54, 0.0  ;;  %v415_v63 = vmax.f32 %v399_v55, 0.0  ;;  %v339_v0 = vmul.f32 %v492_v60, %v607_v14  ;;  %v347_v1 = vmul.f32 %v500_v61, %v607_v14  ;;  %v228_v2 = vpop.f32.mrb[5].mxu0  ;;  %v260_v3 = vpop.f32.mrb[5].mxu1 }
  0xf3   :  { %420 = vst [vmem:[%s747_s5] sm:$0xff] %v404_v56  ;;  %428 = vst [vmem:[%s747_s5 + $0x40] sm:$0xff] %v412_v57  ;;  %v405_v4 = vmax.f32 %v389_v58, 0.0  ;;  %v413_v5 = vmax.f32 %v397_v59, 0.0  ;;  %v337_v8 = vmul.f32 %v607_v14, %v228_v2  ;;  %v345_v9 = vmul.f32 %v607_v14, %v260_v3  ;;  %v493_v10 = vpop.f32.mrb[6].mxu0  ;;  %v501_v11 = vpop.f32.mrb[6].mxu1 }
  0xf4   :  { %423 = vst [vmem:[%s747_s5 + $0x18] sm:$0xff] %v407_v62  ;;  %431 = vst [vmem:[%s747_s5 + $0x58] sm:$0xff] %v415_v63  ;;  %v362_v12 = vadd.f32 %v612_v16, %v339_v0  ;;  %v370_v13 = vadd.f32 %v612_v16, %v347_v1  ;;  %v340_v18 = vmul.f32 %v493_v10, %v607_v14  ;;  %v231_v20 = vpop.f32.mrb[7].mxu0  ;;  %v263_v21 = vpop.f32.mrb[7].mxu1 }
  0xf5   :  { %v348_v19 = vmul.f32 %v501_v11, %v607_v14  ;;  %421 = vst [vmem:[%s747_s5 + $0x8] sm:$0xff] %v405_v4  ;;  %429 = vst [vmem:[%s747_s5 + $0x48] sm:$0xff] %v413_v5  ;;  %v360_v22 = vadd.f32 %v612_v16, %v337_v8  ;;  %v368_v23 = vadd.f32 %v612_v16, %v345_v9 }
  0xf6   :  { %v338_v26 = vmul.f32 %v607_v14, %v231_v20  ;;  %v346_v27 = vmul.f32 %v607_v14, %v263_v21  ;;  %v394_v28 = vadd.f32 %v378_v6, %v362_v12  ;;  %v402_v29 = vadd.f32 %v386_v7, %v370_v13 }
  0xf7   :  { %v363_v30 = vadd.f32 %v612_v16, %v340_v18  ;;  %v371_v31 = vadd.f32 %v612_v16, %v348_v19  ;;  %v392_v34 = vadd.f32 %v376_v15, %v360_v22  ;;  %v400_v35 = vadd.f32 %v384_v17, %v368_v23 }
  0xf8   :  { %v361_v36 = vadd.f32 %v612_v16, %v338_v26  ;;  %v369_v14 = vadd.f32 %v612_v16, %v346_v27  ;;  %v410_v37 = vmax.f32 %v394_v28, 0.0  ;;  %v418_v38 = vmax.f32 %v402_v29, 0.0 }
  0xf9   :  { %v395_v39 = vadd.f32 %v379_v24, %v363_v30  ;;  %v403_v40 = vadd.f32 %v387_v25, %v371_v31  ;;  %v408_v41 = vmax.f32 %v392_v34, 0.0  ;;  %v416_v42 = vmax.f32 %v400_v35, 0.0 }
  0xfa   :  { %v393_v43 = vadd.f32 %v377_v32, %v361_v36  ;;  %v401_v44 = vadd.f32 %v385_v33, %v369_v14  ;;  %426 = vst [vmem:[%s747_s5 + $0x30] sm:$0xff] %v410_v37  ;;  %434 = vst [vmem:[%s747_s5 + $0x70] sm:$0xff] %v418_v38 }
  0xfb   :  { %v411_v45 = vmax.f32 %v395_v39, 0.0  ;;  %v419_v46 = vmax.f32 %v403_v40, 0.0  ;;  %424 = vst [vmem:[%s747_s5 + $0x20] sm:$0xff] %v408_v41  ;;  %432 = vst [vmem:[%s747_s5 + $0x60] sm:$0xff] %v416_v42 }
  0xfc   :  { %v409_v16 = vmax.f32 %v393_v43, 0.0  ;;  %v417_v47 = vmax.f32 %v401_v44, 0.0 }
  0xfd   :  { %427 = vst [vmem:[%s747_s5 + $0x38] sm:$0xff] %v411_v45  ;;  %435 = vst [vmem:[%s747_s5 + $0x78] sm:$0xff] %v419_v46 }
  0xfe   :  { %425 = vst [vmem:[%s747_s5 + $0x28] sm:$0xff] %v409_v16  ;;  %433 = vst [vmem:[%s747_s5 + $0x68] sm:$0xff] %v417_v47 }

// kernel: div.5
= control target key start
LH: loop header
LB: loop body
LE: loop exit
PB: predicated region body
PF: predicated region fallthrough
CT: control target
= control target key end

     0   :  { %s20_s0 = inlined_call_operand.<no memory space> [shape: f32[], index: 0, kind: input, shape index: {}]   ;;  %s21_s1 = inlined_call_operand.vmem [shape: f32[48], index: 1, kind: output, shape index: {}]  }
   0x1   :  { %v2_v0 = vstv %s20_s0 }
   0x2   :  { %3 = vst [vmem:[%s21_s1] sm:$0x1] %v2_v0 }

// kernel: _lambda_.39
= control target key start
LH: loop header
LB: loop body
LE: loop exit
PB: predicated region body
PF: predicated region fallthrough
CT: control target
= control target key end

     0   :  { %vm83_vm0 = vcmask 588800   ;;  %vm90_vm1 = vcmask 1043456   ;;  %s321_s1 = inlined_call_operand.vmem [shape: bf16[72,128], index: 1, kind: input, shape index: {}]   ;;  %s322_s0 = inlined_call_operand.vmem [shape: bf16[32,72], index: 0, kind: input, shape index: {}]   ;;  %s323_s2 = inlined_call_operand.vmem [shape: f32[1,128], index: 2, kind: input, shape index: {}]   ;;  %s324_s3 = inlined_call_operand.vmem [shape: f32[1,128], index: 3, kind: input, shape index: {}]   ;;  %s325_s4 = inlined_call_operand.vmem [shape: f32[32,128], index: 4, kind: input, shape index: {}]   ;;  %s326_s5 = inlined_call_operand.vmem [shape: f32[32,128], index: 5, kind: output, shape index: {}]  }
   0x1   :  { %v233_v0 = vld [vmem:[%s321_s1] sm:$0xff]   ;;  %v234_v1 = vld [vmem:[%s321_s1 + $0x8] sm:$0xff]   ;;  %v235_v2 = vld [vmem:[%s321_s1 + $0x10] sm:$0xff]  }
   0x2   :  { %218 = vmatprep.subr.bf16.mxu0 %v233_v0  ;;  %v238_v3 = vld [vmem:[%s322_s0] sm:$0xff]   ;;  %v236_v4 = vld [vmem:[%s321_s1 + $0x18] sm:$0xff]   ;;  %v239_v7 = vld [vmem:[%s322_s0 + $0x8] sm:$0xff]  }
   0x3   :  { %219 = vmatpush3.bf16.msra.mxu0 %v233_v0  ;;  %228 = vmatprep.mubr.msk.bf16.mxu0 %vm83_vm0, %v238_v3  ;;  %v237_v5 = vld [vmem:[%s321_s1 + $0x20] ss:$0 sps:$4 sm:$0xff]   ;;  %v182_v13 = vld [vmem:[%s325_s4 + $0x10] sm:$0xff]  ;;  %v183_v21 = vld [vmem:[%s325_s4 + $0x18] sm:$0xff] }
   0x4   :  { %220 = vmatprep.subr.bf16.mxu0 %v234_v1  ;;  %v92_v6 = vsel %vm90_vm1, %v237_v5, 0  ;;  %v209_v8 = vld [vmem:[%s323_s2] ss:$0 sm:$0xff]  ;;  %v181_v25 = vld [vmem:[%s325_s4 + $0x8] sm:$0xff] }
   0x5   :  { %v210_v10 = vld [vmem:[%s324_s3] ss:$0 sm:$0xff] }
   0x6   :  { %v180_v17 = vld [vmem:[%s325_s4] sm:$0xff] }
   0x7   :  { %221 = vmatpush3.bf16.msra.mxu0 %v234_v1 }
   0x8   :  { %222 = vmatprep.subr.bf16.mxu0 %v235_v2 }
   0xb   :  { %223 = vmatpush3.bf16.msra.mxu0 %v235_v2 }
   0xc   :  { %224 = vmatprep.subr.bf16.mxu0 %v236_v4 }
   0xf   :  { %225 = vmatpush3.bf16.msra.mxu0 %v236_v4 }
  0x10   :  { %232 = vmatprep.subr.msk.bf16.mxu0 %vm90_vm1, %v237_v5 }
  0x13   :  { %227 = vmatpush3.bf16.msra.mxu0 %v92_v6 }
  0x16   :  { %229 = vmatmul.mubr.msk.bf16.vlgmr.msra.gmra.mrb[0].mxu0 %vm83_vm0, %v239_v7 }
  0xe9   :  { %v230_v9 = vpop.f32.mrb[0].mxu0 }
  0xea   :  { %v167_v11 = vmul.f32 %v230_v9, %v209_v8  ;;  %v128_v12 = vpop.f32.mrb[1].mxu0 }
  0xeb   :  { %v165_v14 = vmul.f32 %v209_v8, %v128_v12  ;;  %v231_v15 = vpop.f32.mrb[2].mxu0 }
  0xec   :  { %v178_v16 = vadd.f32 %v210_v10, %v167_v11  ;;  %v168_v18 = vmul.f32 %v231_v15, %v209_v8  ;;  %v131_v19 = vpop.f32.mrb[3].mxu0 }
  0xed   :  { %v176_v20 = vadd.f32 %v210_v10, %v165_v14  ;;  %v166_v22 = vmul.f32 %v209_v8, %v131_v19 }
  0xee   :  { %v186_v23 = vadd.f32 %v182_v13, %v178_v16  ;;  %v179_v24 = vadd.f32 %v210_v10, %v168_v18 }
  0xef   :  { %v184_v26 = vadd.f32 %v180_v17, %v176_v20  ;;  %v177_v27 = vadd.f32 %v210_v10, %v166_v22 }
  0xf0   :  { %v190_v28 = vmax.f32 %v186_v23, 0.0  ;;  %v187_v29 = vadd.f32 %v183_v21, %v179_v24 }
  0xf1   :  { %v188_v30 = vmax.f32 %v184_v26, 0.0  ;;  %v185_v31 = vadd.f32 %v181_v25, %v177_v27 }
  0xf2   :  { %194 = vst [vmem:[%s326_s5 + $0x10] sm:$0xff] %v190_v28  ;;  %v191_v32 = vmax.f32 %v187_v29, 0.0 }
  0xf3   :  { %192 = vst [vmem:[%s326_s5] sm:$0xff] %v188_v30  ;;  %v189_v33 = vmax.f32 %v185_v31, 0.0 }
  0xf4   :  { %195 = vst [vmem:[%s326_s5 + $0x18] sm:$0xff] %v191_v32 }
  0xf5   :  { %193 = vst [vmem:[%s326_s5 + $0x8] sm:$0xff] %v189_v33 }

// kernel: _lambda_.34
= control target key start
LH: loop header
LB: loop body
LE: loop exit
PB: predicated region body
PF: predicated region fallthrough
CT: control target
= control target key end

     0   :  { %vm52_vm0 = vcmask 1043456   ;;  %vm45_vm1 = vcmask 64512   ;;  %s220_s1 = inlined_call_operand.vmem [shape: bf16[8,128], index: 1, kind: input, shape index: {}]   ;;  %s221_s0 = inlined_call_operand.vmem [shape: bf16[32,8], index: 0, kind: input, shape index: {}]   ;;  %s222_s2 = inlined_call_operand.vmem [shape: f32[1,128], index: 2, kind: input, shape index: {}]   ;;  %s223_s3 = inlined_call_operand.vmem [shape: f32[1,128], index: 3, kind: input, shape index: {}]   ;;  %s224_s4 = inlined_call_operand.vmem [shape: f32[32,128], index: 4, kind: output, shape index: {}]  }
   0x1   :  { %v34_v0 = vld [vmem:[%s220_s1] sm:$0xf]  ;;  %v167_v3 = vld [vmem:[%s221_s0 + $0x8] sm:$0xff]  }
   0x2   :  { %165 = vmatprep.subr.msk.bf16.mxu0 %vm52_vm0, %v34_v0  ;;  %v54_v1 = vsel %vm52_vm0, %v34_v0, 0  ;;  %v166_v2 = vld [vmem:[%s221_s0] sm:$0xff]  }
   0x3   :  { %160 = vmatpush3.bf16.msra.mxu0 %v54_v1  ;;  %161 = vmatprep.mubr.msk.bf16.mxu0 %vm45_vm1, %v166_v2  ;;  %v154_v4 = vld [vmem:[%s222_s2] ss:$0 sm:$0xff] }
   0x4   :  { %v155_v6 = vld [vmem:[%s223_s3] ss:$0 sm:$0xff] }
   0x6   :  { %162 = vmatmul.mubr.msk.bf16.vlgmr.msra.gmra.mrb[0].mxu0 %vm45_vm1, %v167_v3 }
  0xd9   :  { %v163_v5 = vpop.f32.mrb[0].mxu0 }
  0xda   :  { %v129_v7 = vmul.f32 %v163_v5, %v154_v4  ;;  %v90_v8 = vpop.f32.mrb[1].mxu0 }
  0xdb   :  { %v127_v9 = vmul.f32 %v154_v4, %v90_v8  ;;  %v164_v10 = vpop.f32.mrb[2].mxu0 }
  0xdc   :  { %v140_v11 = vadd.f32 %v155_v6, %v129_v7  ;;  %v130_v12 = vmul.f32 %v164_v10, %v154_v4  ;;  %v93_v13 = vpop.f32.mrb[3].mxu0 }
  0xdd   :  { %v138_v14 = vadd.f32 %v155_v6, %v127_v9  ;;  %v128_v15 = vmul.f32 %v154_v4, %v93_v13 }
  0xde   :  { %144 = vst [vmem:[%s224_s4 + $0x10] sm:$0xff] %v140_v11  ;;  %v141_v16 = vadd.f32 %v155_v6, %v130_v12 }
  0xdf   :  { %142 = vst [vmem:[%s224_s4] sm:$0xff] %v138_v14  ;;  %v139_v17 = vadd.f32 %v155_v6, %v128_v15 }
  0xe0   :  { %145 = vst [vmem:[%s224_s4 + $0x18] sm:$0xff] %v141_v16 }
  0xe1   :  { %143 = vst [vmem:[%s224_s4 + $0x8] sm:$0xff] %v139_v17 }

// kernel: _lambda_.41
= control target key start
LH: loop header
LB: loop body
LE: loop exit
PB: predicated region body
PF: predicated region fallthrough
CT: control target
= control target key end

     0   :  { %vm52_vm0 = vcmask 130048   ;;  %s224_s1 = inlined_call_operand.vmem [shape: bf16[16,128], index: 1, kind: input, shape index: {}]   ;;  %s225_s0 = inlined_call_operand.vmem [shape: bf16[32,16], index: 0, kind: input, shape index: {}]   ;;  %s226_s2 = inlined_call_operand.vmem [shape: f32[1,128], index: 2, kind: input, shape index: {}]   ;;  %s227_s3 = inlined_call_operand.vmem [shape: f32[1,128], index: 3, kind: input, shape index: {}]   ;;  %s228_s4 = inlined_call_operand.vmem [shape: f32[32,128], index: 4, kind: output, shape index: {}]  }
   0x1   :  { %v169_v0 = vld [vmem:[%s224_s1] sm:$0xff]   ;;  %v171_v2 = vld [vmem:[%s225_s0 + $0x8] sm:$0xff]  }
   0x2   :  { %v170_v1 = vld [vmem:[%s225_s0] sm:$0xff]   ;;  %163 = vmatprep.subr.bf16.mxu0 %v169_v0 }
   0x3   :  { %164 = vmatpush3.bf16.msra.mxu0 %v169_v0  ;;  %165 = vmatprep.mubr.msk.bf16.mxu0 %vm52_vm0, %v170_v1  ;;  %v158_v3 = vld [vmem:[%s226_s2] ss:$0 sm:$0xff] }
   0x4   :  { %v159_v5 = vld [vmem:[%s227_s3] ss:$0 sm:$0xff] }
   0x6   :  { %166 = vmatmul.mubr.msk.bf16.vlgmr.msra.gmra.mrb[0].mxu0 %vm52_vm0, %v171_v2 }
  0xd9   :  { %v167_v4 = vpop.f32.mrb[0].mxu0 }
  0xda   :  { %v132_v6 = vmul.f32 %v167_v4, %v158_v3  ;;  %v93_v7 = vpop.f32.mrb[1].mxu0 }
  0xdb   :  { %v130_v8 = vmul.f32 %v158_v3, %v93_v7  ;;  %v168_v9 = vpop.f32.mrb[2].mxu0 }
  0xdc   :  { %v143_v10 = vadd.f32 %v159_v5, %v132_v6  ;;  %v133_v11 = vmul.f32 %v168_v9, %v158_v3  ;;  %v96_v12 = vpop.f32.mrb[3].mxu0 }
  0xdd   :  { %v141_v13 = vadd.f32 %v159_v5, %v130_v8  ;;  %v131_v14 = vmul.f32 %v158_v3, %v96_v12 }
  0xde   :  { %147 = vst [vmem:[%s228_s4 + $0x10] sm:$0xff] %v143_v10  ;;  %v144_v15 = vadd.f32 %v159_v5, %v133_v11 }
  0xdf   :  { %145 = vst [vmem:[%s228_s4] sm:$0xff] %v141_v13  ;;  %v142_v16 = vadd.f32 %v159_v5, %v131_v14 }
  0xe0   :  { %148 = vst [vmem:[%s228_s4 + $0x18] sm:$0xff] %v144_v15 }
  0xe1   :  { %146 = vst [vmem:[%s228_s4 + $0x8] sm:$0xff] %v142_v16 }

// kernel: _lambda_.44
= control target key start
LH: loop header
LB: loop body
LE: loop exit
PB: predicated region body
PF: predicated region fallthrough
CT: control target
= control target key end

     0   :  { %vm60_vm0 = vcmask 261120   ;;  %s244_s1 = inlined_call_operand.vmem [shape: bf16[32,128], index: 1, kind: input, shape index: {}]   ;;  %s245_s0 = inlined_call_operand.vmem [shape: bf16[32,32], index: 0, kind: input, shape index: {}]   ;;  %s246_s2 = inlined_call_operand.vmem [shape: f32[1,128], index: 2, kind: input, shape index: {}]   ;;  %s247_s3 = inlined_call_operand.vmem [shape: f32[1,128], index: 3, kind: input, shape index: {}]   ;;  %s248_s4 = inlined_call_operand.vmem [shape: f32[32,128], index: 4, kind: output, shape index: {}]  }
   0x1   :  { %v185_v0 = vld [vmem:[%s244_s1] sm:$0xff]   ;;  %v186_v1 = vld [vmem:[%s244_s1 + $0x8] sm:$0xff]  }
   0x2   :  { %177 = vmatprep.subr.bf16.mxu0 %v185_v0  ;;  %v187_v2 = vld [vmem:[%s245_s0] sm:$0xff]   ;;  %v188_v3 = vld [vmem:[%s245_s0 + $0x8] sm:$0xff]  }
   0x3   :  { %178 = vmatpush3.bf16.msra.mxu0 %v185_v0  ;;  %181 = vmatprep.mubr.msk.bf16.mxu0 %vm60_vm0, %v187_v2  ;;  %v171_v4 = vld [vmem:[%s246_s2] ss:$0 sm:$0xff] }
   0x4   :  { %179 = vmatprep.subr.bf16.mxu0 %v186_v1  ;;  %v172_v6 = vld [vmem:[%s247_s3] ss:$0 sm:$0xff] }
   0x7   :  { %180 = vmatpush3.bf16.msra.mxu0 %v186_v1 }
   0xa   :  { %182 = vmatmul.mubr.msk.bf16.vlgmr.msra.gmra.mrb[0].mxu0 %vm60_vm0, %v188_v3 }
  0xdd   :  { %v183_v5 = vpop.f32.mrb[0].mxu0 }
  0xde   :  { %v140_v7 = vmul.f32 %v183_v5, %v171_v4  ;;  %v101_v8 = vpop.f32.mrb[1].mxu0 }
  0xdf   :  { %v138_v9 = vmul.f32 %v171_v4, %v101_v8  ;;  %v184_v10 = vpop.f32.mrb[2].mxu0 }
  0xe0   :  { %v151_v11 = vadd.f32 %v172_v6, %v140_v7  ;;  %v141_v12 = vmul.f32 %v184_v10, %v171_v4  ;;  %v104_v13 = vpop.f32.mrb[3].mxu0 }
  0xe1   :  { %v149_v14 = vadd.f32 %v172_v6, %v138_v9  ;;  %v139_v15 = vmul.f32 %v171_v4, %v104_v13 }
  0xe2   :  { %v155_v16 = vmax.f32 %v151_v11, 0.0  ;;  %v152_v17 = vadd.f32 %v172_v6, %v141_v12 }
  0xe3   :  { %v153_v18 = vmax.f32 %v149_v14, 0.0  ;;  %v150_v19 = vadd.f32 %v172_v6, %v139_v15 }
  0xe4   :  { %159 = vst [vmem:[%s248_s4 + $0x10] sm:$0xff] %v155_v16  ;;  %v156_v20 = vmax.f32 %v152_v17, 0.0 }
  0xe5   :  { %157 = vst [vmem:[%s248_s4] sm:$0xff] %v153_v18  ;;  %v154_v21 = vmax.f32 %v150_v19, 0.0 }
  0xe6   :  { %160 = vst [vmem:[%s248_s4 + $0x18] sm:$0xff] %v156_v20 }
  0xe7   :  { %158 = vst [vmem:[%s248_s4 + $0x8] sm:$0xff] %v154_v21 }

// kernel: _lambda_.42
= control target key start
LH: loop header
LB: loop body
LE: loop exit
PB: predicated region body
PF: predicated region fallthrough
CT: control target
= control target key end

     0   :  { %vm38_vm0 = vcmask 130048   ;;  %v1545_v0 = vmov 0.0   ;;  %vm1546_vm1 = vmmov 0   ;;  %vm655_vm2 = vcmask 27648   ;;  %s1779_s1 = inlined_call_operand.vmem [shape: f32[8,4,16], index: 1, kind: input, shape index: {}]   ;;  %s1780_s0 = inlined_call_operand.vmem [shape: f32[8,4,16], index: 0, kind: input, shape index: {}]   ;;  %s1781_s2 = inlined_call_operand.vmem [shape: f32[8,4,16], index: 2, kind: input, shape index: {}]   ;;  %s1782_s3 = inlined_call_operand.vmem [shape: f32[8,4,16], index: 3, kind: output, shape index: {}]  }
   0x1   :  { %1431 = vmatprep.subr.mxu0 %v1545_v0  ;;  %v22_v1 = vld [vmem:[%s1779_s1] sm:$0xf]  ;;  %1433 = vmatprep.mubr.msk.f32.mxu0 %vm1546_vm1, %v1545_v0  ;;  %v23_v2 = vld [vmem:[%s1779_s1 + $0x4] sm:$0xf]  ;;  %v24_v4 = vld [vmem:[%s1779_s1 + $0x8] sm:$0xf] }
   0x2   :  { %1432 = vmatpush3.xpose.msk.msra.mxu0 %vm38_vm0, %v22_v1  ;;  %v14_v3 = vld [vmem:[%s1780_s0] sm:$0xf]  ;;  %1436 = vmatprep.subr.mxu1 %v1545_v0  ;;  %v15_v5 = vld [vmem:[%s1780_s0 + $0x4] sm:$0xf]  ;;  %v25_v6 = vld [vmem:[%s1779_s1 + $0xc] sm:$0xf] }
   0x3   :  { %1441 = vmatprep.subr.mxu0 %v1545_v0  ;;  %1437 = vmatpush3.xpose.msk.msra.mxu1 %vm38_vm0, %v23_v2  ;;  %v16_v7 = vld [vmem:[%s1780_s0 + $0x8] sm:$0xf]  ;;  %v26_v8 = vld [vmem:[%s1779_s1 + $0x10] sm:$0xf]  ;;  %v17_v9 = vld [vmem:[%s1780_s0 + $0xc] sm:$0xf] }
   0x4   :  { %1438 = vmatprep.mubr.msk.f32.mxu1 %vm1546_vm1, %v1545_v0  ;;  %1446 = vmatprep.subr.mxu1 %v1545_v0  ;;  %v27_v10 = vld [vmem:[%s1779_s1 + $0x14] sm:$0xf]  ;;  %v18_v11 = vld [vmem:[%s1780_s0 + $0x10] sm:$0xf]  ;;  %v28_v12 = vld [vmem:[%s1779_s1 + $0x18] sm:$0xf] }
   0x5   :  { %1434 = vmatmul.mubr.msk.f32.vlgmr.msra.gmra.mrb[0].mxu0 %vm38_vm0, %v14_v3  ;;  %v19_v13 = vld [vmem:[%s1780_s0 + $0x14] sm:$0xf]  ;;  %v29_v14 = vld [vmem:[%s1779_s1 + $0x1c] sm:$0xf]  ;;  %v20_v15 = vld [vmem:[%s1780_s0 + $0x18] sm:$0xf] }
   0x6   :  { %1442 = vmatpush3.xpose.msk.msra.mxu0 %vm38_vm0, %v24_v4  ;;  %1443 = vmatprep.mubr.msk.f32.mxu0 %vm1546_vm1, %v1545_v0  ;;  %v21_v16 = vld [vmem:[%s1780_s0 + $0x1c] sm:$0xf]  ;;  %vm748_vm3 = vcmask 1043456   ;;  %vm744_vm4 = vcmask 31744   ;;  %vm1354_vm5 = vcmask 125952  }
   0x7   :  { %1439 = vmatmul.mubr.msk.f32.vlgmr.msra.gmra.mrb[0].mxu1 %vm38_vm0, %v15_v5  ;;  %1451 = vmatprep.subr.mxu0 %v1545_v0 }
   0x8   :  { %1447 = vmatpush3.xpose.msk.msra.mxu1 %vm38_vm0, %v25_v6  ;;  %1448 = vmatprep.mubr.msk.f32.mxu1 %vm1546_vm1, %v1545_v0 }
   0x9   :  { %1444 = vmatmul.mubr.msk.f32.vlgmr.msra.gmra.mrb[2].mxu0 %vm38_vm0, %v16_v7  ;;  %1456 = vmatprep.subr.mxu1 %v1545_v0 }
   0xa   :  { %1452 = vmatpush3.xpose.msk.msra.mxu0 %vm38_vm0, %v26_v8  ;;  %1453 = vmatprep.mubr.msk.f32.mxu0 %vm1546_vm1, %v1545_v0 }
   0xb   :  { %1449 = vmatmul.mubr.msk.f32.vlgmr.msra.gmra.mrb[2].mxu1 %vm38_vm0, %v17_v9  ;;  %1461 = vmatprep.subr.mxu0 %v1545_v0 }
   0xc   :  { %1457 = vmatpush3.xpose.msk.msra.mxu1 %vm38_vm0, %v27_v10  ;;  %1458 = vmatprep.mubr.msk.f32.mxu1 %vm1546_vm1, %v1545_v0 }
   0xd   :  { %1454 = vmatmul.mubr.msk.f32.vlgmr.msra.gmra.mrb[4].mxu0 %vm38_vm0, %v18_v11  ;;  %1466 = vmatprep.subr.mxu1 %v1545_v0 }
   0xe   :  { %1462 = vmatpush3.xpose.msk.msra.mxu0 %vm38_vm0, %v28_v12  ;;  %1463 = vmatprep.mubr.msk.f32.mxu0 %vm1546_vm1, %v1545_v0 }
   0xf   :  { %1459 = vmatmul.mubr.msk.f32.vlgmr.msra.gmra.mrb[4].mxu1 %vm38_vm0, %v19_v13  ;;  %1471 = vmatprep.subr.mxu0 %v1545_v0 }
  0x10   :  { %1467 = vmatpush3.xpose.msk.msra.mxu1 %vm38_vm0, %v29_v14  ;;  %1468 = vmatprep.mubr.msk.f32.mxu1 %vm1546_vm1, %v1545_v0 }
  0x11   :  { %1464 = vmatmul.mubr.msk.f32.vlgmr.msra.gmra.mrb[6].mxu0 %vm38_vm0, %v20_v15  ;;  %1476 = vmatprep.subr.mxu1 %v1545_v0 }
  0x12   :  { %1473 = vmatprep.mubr.msk.f32.mxu0 %vm1546_vm1, %v1545_v0 }
  0x13   :  { %1469 = vmatmul.mubr.msk.f32.vlgmr.msra.gmra.mrb[6].mxu1 %vm38_vm0, %v21_v16 }
  0x14   :  { %1478 = vmatprep.mubr.msk.f32.mxu1 %vm1546_vm1, %v1545_v0 }
  0xd8   :  { %v111_v17 = vpop.f32.mrb[0].mxu0 }
  0xd9   :  { %v647_v18 = vmul.f32 0.25, %v111_v17  ;;  %v1435_v19 = vpop.f32.mrb[1].mxu0 }
  0xda   :  { %v187_v20 = vpop.f32.mrb[0].mxu1 }
  0xdb   :  { %v648_v21 = vmul.f32 0.25, %v187_v20  ;;  %v656_v22 = vsel %vm655_vm2, %v647_v18, -inf  ;;  %v1440_v23 = vpop.f32.mrb[1].mxu1 }
  0xdc   :  { %657 = vmax.xlane.f32.xlu0 %v656_v22  ;;  %v263_v24 = vpop.f32.mrb[2].mxu0 }
  0xdd   :  { %v649_v25 = vmul.f32 0.25, %v263_v24  ;;  %v1445_v26 = vpop.f32.mrb[3].mxu0  ;;  %v659_v27 = vsel %vm655_vm2, %v648_v21, -inf }
  0xde   :  { %v339_v28 = vpop.f32.mrb[2].mxu1  ;;  %v30_v26 = vld [vmem:[%s1781_s2] sm:$0xf] }
  0xdf   :  { %v650_v29 = vmul.f32 0.25, %v339_v28  ;;  %v662_v30 = vsel %vm655_vm2, %v649_v25, -inf  ;;  %v1450_v31 = vpop.f32.mrb[3].mxu1  ;;  %1472 = vmatpush3.msk.msra.mxu0 %vm748_vm3, %v30_v26 }
  0xe0   :  { %660 = vmax.xlane.f32.xlu0 %v659_v27  ;;  %663 = vmax.xlane.f32.xlu1 %v662_v30  ;;  %v415_v32 = vpop.f32.mrb[4].mxu0  ;;  %v31_v27 = vld [vmem:[%s1781_s2 + $0x4] sm:$0xf] }
  0xe1   :  { %v651_v33 = vmul.f32 0.25, %v415_v32  ;;  %v1455_v34 = vpop.f32.mrb[5].mxu0  ;;  %v665_v35 = vsel %vm655_vm2, %v650_v29, -inf  ;;  %1481 = vmatprep.subr.mxu0 %v1545_v0  ;;  %1477 = vmatpush3.msk.msra.mxu1 %vm748_vm3, %v31_v27 }
  0xe2   :  { %v491_v36 = vpop.f32.mrb[4].mxu1  ;;  %1486 = vmatprep.subr.mxu1 %v1545_v0 }
  0xe3   :  { %v652_v37 = vmul.f32 0.25, %v491_v36  ;;  %v668_v38 = vsel %vm655_vm2, %v651_v33, -inf  ;;  %v1460_v39 = vpop.f32.mrb[5].mxu1  ;;  %v32_v36 = vld [vmem:[%s1781_s2 + $0x8] sm:$0xf] }
  0xe4   :  { %666 = vmax.xlane.f32.xlu1 %v665_v35  ;;  %669 = vmax.xlane.f32.xlu0 %v668_v38  ;;  %v567_v40 = vpop.f32.mrb[6].mxu0 }
  0xe5   :  { %v653_v41 = vmul.f32 0.25, %v567_v40  ;;  %v671_v42 = vsel %vm655_vm2, %v652_v37, -inf  ;;  %v1465_v43 = vpop.f32.mrb[7].mxu0 }
  0xe6   :  { %v643_v44 = vpop.f32.mrb[6].mxu1 }
  0xe7   :  { %v654_v45 = vmul.f32 0.25, %v643_v44  ;;  %v674_v46 = vsel %vm655_vm2, %v653_v41, -inf  ;;  %v1470_v47 = vpop.f32.mrb[7].mxu1  ;;  %v34_v44 = vld [vmem:[%s1781_s2 + $0x10] sm:$0xf] }
  0xe8   :  { %672 = vmax.xlane.f32.xlu1 %v671_v42  ;;  %675 = vmax.xlane.f32.xlu0 %v674_v46  ;;  %v33_v42 = vld [vmem:[%s1781_s2 + $0xc] sm:$0xf] }
  0xe9   :  { %v677_v48 = vsel %vm655_vm2, %v654_v45, -inf }
  0xec   :  { %678 = vmax.xlane.f32.xlu1 %v677_v48  ;;  %v35_v48 = vld [vmem:[%s1781_s2 + $0x14] sm:$0xf] }
 0x169   :  { %v658_v49 = vpop.xlane.xlu0 %657 }
 0x16a   :  { %v680_v50 = vsub.f32 %v647_v18, %v658_v49 }
 0x16c   :  { %v688_v51 = vmul.f32 1.442695, %v680_v50  ;;  %v36_v50 = vld [vmem:[%s1781_s2 + $0x18] sm:$0xf] }
 0x16d   :  { %v661_v52 = vpop.xlane.xlu0 %660  ;;  %v664_v53 = vpop.xlane.xlu1 %663 }
 0x16e   :  { %1513 = vpow2.f32 %v688_v51  ;;  %v681_v54 = vsub.f32 %v648_v21, %v661_v52  ;;  %v682_v55 = vsub.f32 %v649_v25, %v664_v53 }
 0x170   :  { %v690_v56 = vmul.f32 1.442695, %v681_v54  ;;  %v692_v57 = vmul.f32 1.442695, %v682_v55  ;;  %v37_v54 = vld [vmem:[%s1781_s2 + $0x1c] sm:$0xf] }
 0x171   :  { %v667_v58 = vpop.xlane.xlu1 %666  ;;  %v670_v59 = vpop.xlane.xlu0 %669 }
 0x172   :  { %1515 = vpow2.f32 %v690_v56  ;;  %v683_v60 = vsub.f32 %v650_v29, %v667_v58  ;;  %v684_v61 = vsub.f32 %v651_v33, %v670_v59 }
 0x173   :  { %1517 = vpow2.f32 %v692_v57 }
 0x174   :  { %v694_v62 = vmul.f32 1.442695, %v683_v60  ;;  %v696_v63 = vmul.f32 1.442695, %v684_v61 }
 0x175   :  { %v673_v1 = vpop.xlane.xlu1 %672  ;;  %v676_v2 = vpop.xlane.xlu0 %675 }
 0x176   :  { %1519 = vpow2.f32 %v694_v62  ;;  %v685_v3 = vsub.f32 %v652_v37, %v673_v1  ;;  %v686_v4 = vsub.f32 %v653_v41, %v676_v2 }
 0x177   :  { %1521 = vpow2.f32 %v696_v63 }
 0x178   :  { %v1514_v5 = vpop.eup %1513  ;;  %v698_v6 = vmul.f32 1.442695, %v685_v3  ;;  %v700_v7 = vmul.f32 1.442695, %v686_v4 }
 0x179   :  { %v679_v8 = vpop.xlane.xlu1 %678  ;;  %v704_v9 = vsel %vm655_vm2, %v1514_v5, 0.0 }
 0x17a   :  { %1523 = vpow2.f32 %v698_v6  ;;  %v687_v10 = vsub.f32 %v654_v45, %v679_v8  ;;  %705 = vadd.xlane.f32.xlu0 %v704_v9 }
 0x17b   :  { %1525 = vpow2.f32 %v700_v7 }
 0x17c   :  { %v1516_v11 = vpop.eup %1515  ;;  %v702_v12 = vmul.f32 1.442695, %v687_v10 }
 0x17d   :  { %v1518_v13 = vpop.eup %1517  ;;  %v707_v14 = vsel %vm655_vm2, %v1516_v11, 0.0 }
 0x17e   :  { %1527 = vpow2.f32 %v702_v12  ;;  %708 = vadd.xlane.f32.xlu1 %v707_v14  ;;  %v710_v15 = vsel %vm655_vm2, %v1518_v13, 0.0 }
 0x17f   :  { %711 = vadd.xlane.f32.xlu0 %v710_v15 }
 0x180   :  { %v1520_v16 = vpop.eup %1519 }
 0x181   :  { %v1522_v17 = vpop.eup %1521  ;;  %v713_v18 = vsel %vm655_vm2, %v1520_v16, 0.0 }
 0x182   :  { %714 = vadd.xlane.f32.xlu1 %v713_v18  ;;  %v716_v19 = vsel %vm655_vm2, %v1522_v17, 0.0 }
 0x183   :  { %717 = vadd.xlane.f32.xlu0 %v716_v19 }
 0x184   :  { %v1674_v20 = vpop.eup %1523 }
 0x185   :  { %v1676_v21 = vpop.eup %1525  ;;  %v719_v22 = vsel %vm655_vm2, %v1674_v20, 0.0 }
 0x186   :  { %720 = vadd.xlane.f32.xlu1 %v719_v22  ;;  %v722_v23 = vsel %vm655_vm2, %v1676_v21, 0.0 }
 0x187   :  { %723 = vadd.xlane.f32.xlu0 %v722_v23 }
 0x188   :  { %v1682_v24 = vpop.eup %1527 }
 0x189   :  { %v725_v25 = vsel %vm655_vm2, %v1682_v24, 0.0 }
 0x18a   :  { %726 = vadd.xlane.f32.xlu1 %v725_v25 }
 0x207   :  { %v706_v28 = vpop.xlane.xlu0 %705 }
 0x208   :  { %1529 = vrcp.f32 %v706_v28 }
 0x20b   :  { %v709_v29 = vpop.xlane.xlu1 %708 }
 0x20c   :  { %1531 = vrcp.f32 %v709_v29  ;;  %v712_v30 = vpop.xlane.xlu0 %711 }
 0x20d   :  { %1533 = vrcp.f32 %v712_v30 }
 0x20f   :  { %v715_v31 = vpop.xlane.xlu1 %714 }
 0x210   :  { %1535 = vrcp.f32 %v715_v31  ;;  %v718_v32 = vpop.xlane.xlu0 %717 }
 0x211   :  { %1537 = vrcp.f32 %v718_v32 }
 0x212   :  { %v1530_v33 = vpop.eup %1529 }
 0x213   :  { %v729_v34 = vmul.f32 %v1530_v33, %v1514_v5  ;;  %v721_v35 = vpop.xlane.xlu1 %720 }
 0x214   :  { %1539 = vrcp.f32 %v721_v35  ;;  %v724_v37 = vpop.xlane.xlu0 %723 }
 0x215   :  { %1541 = vrcp.f32 %v724_v37  ;;  %1474 = vmatmul.mubr.msk.f32.vlgmr.msra.gmra.mrb[8].mxu0 %vm744_vm4, %v729_v34 }
 0x216   :  { %v1532_v38 = vpop.eup %1531  ;;  %1482 = vmatpush3.msk.msra.mxu0 %vm748_vm3, %v32_v36  ;;  %1483 = vmatprep.mubr.msk.f32.mxu0 %vm1546_vm1, %v1545_v0 }
 0x217   :  { %v1534_v39 = vpop.eup %1533  ;;  %v731_v40 = vmul.f32 %v1532_v38, %v1516_v11  ;;  %v727_v41 = vpop.xlane.xlu1 %726  ;;  %1491 = vmatprep.subr.mxu0 %v1545_v0 }
 0x218   :  { %v733_v43 = vmul.f32 %v1534_v39, %v1518_v13  ;;  %1543 = vrcp.f32 %v727_v41 }
 0x219   :  { %1479 = vmatmul.mubr.msk.f32.vlgmr.msra.gmra.mrb[8].mxu1 %vm744_vm4, %v731_v40 }
 0x21a   :  { %v1536_v45 = vpop.eup %1535  ;;  %1484 = vmatmul.mubr.msk.f32.vlgmr.msra.gmra.mrb[10].mxu0 %vm744_vm4, %v733_v43  ;;  %1487 = vmatpush3.msk.msra.mxu1 %vm748_vm3, %v33_v42 }
 0x21b   :  { %v1538_v46 = vpop.eup %1537  ;;  %v735_v47 = vmul.f32 %v1536_v45, %v1520_v16  ;;  %1488 = vmatprep.mubr.msk.f32.mxu1 %vm1546_vm1, %v1545_v0  ;;  %1492 = vmatpush3.msk.msra.mxu0 %vm748_vm3, %v34_v44 }
 0x21c   :  { %v737_v49 = vmul.f32 %v1538_v46, %v1522_v17  ;;  %1493 = vmatprep.mubr.msk.f32.mxu0 %vm1546_vm1, %v1545_v0  ;;  %1496 = vmatprep.subr.mxu1 %v1545_v0 }
 0x21d   :  { %1489 = vmatmul.mubr.msk.f32.vlgmr.msra.gmra.mrb[10].mxu1 %vm744_vm4, %v735_v47  ;;  %1501 = vmatprep.subr.mxu0 %v1545_v0 }
 0x21e   :  { %v1540_v51 = vpop.eup %1539  ;;  %1494 = vmatmul.mubr.msk.f32.vlgmr.msra.gmra.mrb[12].mxu0 %vm744_vm4, %v737_v49  ;;  %1497 = vmatpush3.msk.msra.mxu1 %vm748_vm3, %v35_v48 }
 0x21f   :  { %v1542_v52 = vpop.eup %1541  ;;  %v739_v53 = vmul.f32 %v1540_v51, %v1674_v20  ;;  %1498 = vmatprep.mubr.msk.f32.mxu1 %vm1546_vm1, %v1545_v0  ;;  %1502 = vmatpush3.msk.msra.mxu0 %vm748_vm3, %v36_v50 }
 0x220   :  { %v741_v55 = vmul.f32 %v1542_v52, %v1676_v21  ;;  %1503 = vmatprep.mubr.msk.f32.mxu0 %vm1546_vm1, %v1545_v0  ;;  %1506 = vmatprep.subr.mxu1 %v1545_v0 }
 0x221   :  { %1499 = vmatmul.mubr.msk.f32.vlgmr.msra.gmra.mrb[12].mxu1 %vm744_vm4, %v739_v53 }
 0x222   :  { %v1544_v56 = vpop.eup %1543  ;;  %1504 = vmatmul.mubr.msk.f32.vlgmr.msra.gmra.mrb[14].mxu0 %vm744_vm4, %v741_v55  ;;  %1507 = vmatpush3.msk.msra.mxu1 %vm748_vm3, %v37_v54 }
 0x223   :  { %v743_v57 = vmul.f32 %v1544_v56, %v1682_v24  ;;  %1508 = vmatprep.mubr.msk.f32.mxu1 %vm1546_vm1, %v1545_v0 }
 0x225   :  { %1509 = vmatmul.mubr.msk.f32.vlgmr.msra.gmra.mrb[14].mxu1 %vm744_vm4, %v743_v57 }
 0x2e8   :  { %v818_v58 = vpop.f32.mrb[8].mxu0 }
 0x2e9   :  { %1355 = vst.msk [vmem:[%s1782_s3] sm:$0xf] %vm1354_vm5, %v818_v58  ;;  %v1475_v59 = vpop.f32.mrb[9].mxu0 }
 0x2ec   :  { %v894_v60 = vpop.f32.mrb[8].mxu1 }
 0x2ed   :  { %1356 = vst.msk [vmem:[%s1782_s3 + $0x4] sm:$0xf] %vm1354_vm5, %v894_v60  ;;  %v970_v61 = vpop.f32.mrb[10].mxu0  ;;  %v1480_v62 = vpop.f32.mrb[9].mxu1 }
 0x2ee   :  { %1357 = vst.msk [vmem:[%s1782_s3 + $0x8] sm:$0xf] %vm1354_vm5, %v970_v61  ;;  %v1485_v0 = vpop.f32.mrb[11].mxu0 }
 0x2f0   :  { %v1046_v63 = vpop.f32.mrb[10].mxu1 }
 0x2f1   :  { %1358 = vst.msk [vmem:[%s1782_s3 + $0xc] sm:$0xf] %vm1354_vm5, %v1046_v63  ;;  %v1122_v1 = vpop.f32.mrb[12].mxu0  ;;  %v1490_v2 = vpop.f32.mrb[11].mxu1 }
 0x2f2   :  { %1359 = vst.msk [vmem:[%s1782_s3 + $0x10] sm:$0xf] %vm1354_vm5, %v1122_v1  ;;  %v1495_v3 = vpop.f32.mrb[13].mxu0 }
 0x2f4   :  { %v1198_v4 = vpop.f32.mrb[12].mxu1 }
 0x2f5   :  { %1360 = vst.msk [vmem:[%s1782_s3 + $0x14] sm:$0xf] %vm1354_vm5, %v1198_v4  ;;  %v1274_v5 = vpop.f32.mrb[14].mxu0  ;;  %v1500_v6 = vpop.f32.mrb[13].mxu1 }
 0x2f6   :  { %1361 = vst.msk [vmem:[%s1782_s3 + $0x18] sm:$0xf] %vm1354_vm5, %v1274_v5  ;;  %v1505_v7 = vpop.f32.mrb[15].mxu0 }
 0x2f8   :  { %v1350_v8 = vpop.f32.mrb[14].mxu1 }
 0x2f9   :  { %1362 = vst.msk [vmem:[%s1782_s3 + $0x1c] sm:$0xf] %vm1354_vm5, %v1350_v8  ;;  %v1510_v9 = vpop.f32.mrb[15].mxu1 }

// kernel: div.4
= control target key start
LH: loop header
LB: loop body
LE: loop exit
PB: predicated region body
PF: predicated region fallthrough
CT: control target
= control target key end

     0   :  { %s20_s0 = inlined_call_operand.<no memory space> [shape: f32[], index: 0, kind: input, shape index: {}]   ;;  %s21_s1 = inlined_call_operand.vmem [shape: f32[96], index: 1, kind: output, shape index: {}]  }
   0x1   :  { %v2_v0 = vstv %s20_s0 }
   0x2   :  { %3 = vst [vmem:[%s21_s1] sm:$0x1] %v2_v0 }

// kernel: _lambda_.45
= control target key start
LH: loop header
LB: loop body
LE: loop exit
PB: predicated region body
PF: predicated region fallthrough
CT: control target
= control target key end

     0   :  { %v206_v0 = vmov 0   ;;  %vm106_vm0 = vcmask 130048   ;;  %s279_s1 = inlined_call_operand.vmem [shape: bf16[144,128], index: 1, kind: input, shape index: {}]   ;;  %s280_s0 = inlined_call_operand.vmem [shape: bf16[8,144], index: 0, kind: input, shape index: {}]   ;;  %s281_s2 = inlined_call_operand.vmem [shape: f32[1,128], index: 2, kind: input, shape index: {}]   ;;  %s282_s3 = inlined_call_operand.vmem [shape: f32[1,128], index: 3, kind: input, shape index: {}]   ;;  %s283_s4 = inlined_call_operand.vmem [shape: f32[8,128], index: 4, kind: input, shape index: {}]   ;;  %s284_s5 = inlined_call_operand.vmem [shape: f32[8,128], index: 5, kind: output, shape index: {}]  }
   0x1   :  { %110 = vmatprep.subr.bf16.mxu0 %v206_v0  ;;  %v195_v1 = vld [vmem:[%s279_s1] sm:$0xff]   ;;  %v196_v2 = vld [vmem:[%s279_s1 + $0x8] sm:$0xff]   ;;  %v197_v3 = vld [vmem:[%s279_s1 + $0x10] sm:$0xff]  }
   0x2   :  { %111 = vmatpush1.bf16.msra.mxu0 %v195_v1  ;;  %v27_v4 = vld [vmem:[%s280_s0] sm:$0xff]  ;;  %v198_v5 = vld [vmem:[%s279_s1 + $0x18] sm:$0xff]   ;;  %v200_v8 = vld [vmem:[%s279_s1 + $0x28] sm:$0xff]  }
   0x3   :  { %112 = vmatprep.subr.bf16.mxu0 %v206_v0  ;;  %v181_v6 = vcombine.high %v27_v4, %v27_v4  ;;  %v199_v7 = vld [vmem:[%s279_s1 + $0x20] sm:$0xff]   ;;  %v201_v9 = vld [vmem:[%s279_s1 + $0x30] sm:$0xff]   ;;  %v202_v10 = vld [vmem:[%s279_s1 + $0x38] sm:$0xff]   ;;  %v180_v12 = vcombine.low %v27_v4, %v27_v4 }
   0x4   :  { %v203_v11 = vld [vmem:[%s279_s1 + $0x40] sm:$0xff]  }
   0x5   :  { %191 = vmatprep.mubr.msk.bf16.mxu0 %vm106_vm0, %v181_v6  ;;  %v192_v13 = vld [vmem:[%s281_s2] ss:$0 sm:$0xff] }
   0x6   :  { %113 = vmatpush1.bf16.msra.mxu0 %v196_v2  ;;  %v193_v15 = vld [vmem:[%s282_s3] ss:$0 sm:$0xff] }
   0x7   :  { %114 = vmatprep.subr.bf16.mxu0 %v206_v0  ;;  %v172_v18 = vld [vmem:[%s283_s4] sm:$0xff] }
   0xa   :  { %115 = vmatpush1.bf16.msra.mxu0 %v197_v3 }
   0xb   :  { %116 = vmatprep.subr.bf16.mxu0 %v206_v0 }
   0xe   :  { %117 = vmatpush1.bf16.msra.mxu0 %v198_v5 }
   0xf   :  { %118 = vmatprep.subr.bf16.mxu0 %v206_v0 }
  0x12   :  { %119 = vmatpush1.bf16.msra.mxu0 %v199_v7 }
  0x13   :  { %120 = vmatprep.subr.bf16.mxu0 %v206_v0 }
  0x16   :  { %121 = vmatpush1.bf16.msra.mxu0 %v200_v8 }
  0x17   :  { %122 = vmatprep.subr.bf16.mxu0 %v206_v0 }
  0x1a   :  { %123 = vmatpush1.bf16.msra.mxu0 %v201_v9 }
  0x1b   :  { %124 = vmatprep.subr.bf16.mxu0 %v206_v0 }
  0x1e   :  { %125 = vmatpush1.bf16.msra.mxu0 %v202_v10 }
  0x1f   :  { %126 = vmatprep.subr.bf16.mxu0 %v206_v0 }
  0x22   :  { %127 = vmatpush1.bf16.msra.mxu0 %v203_v11 }
  0x25   :  { %143 = vmatmul.mubr.bf16.vlgmr.msra.gmra.mrb[0].mxu0 %v180_v12 }
  0xf8   :  { %v144_v14 = vpop.f32.mrb[0].mxu0 }
  0xf9   :  { %v163_v16 = vmul.f32 %v192_v13, %v144_v14  ;;  %v146_v17 = vpop.f32.mrb[1].mxu0 }
  0xfa   :  { %v147_v19 = vpop.f32.mrb[2].mxu0 }
  0xfb   :  { %v171_v20 = vadd.f32 %v193_v15, %v163_v16  ;;  %v148_v21 = vpop.f32.mrb[3].mxu0 }
  0xfd   :  { %v173_v22 = vadd.f32 %v172_v18, %v171_v20 }
  0xff   :  { %v174_v23 = vmax.f32 %v173_v22, 0.0 }
 0x101   :  { %175 = vst [vmem:[%s284_s5] sm:$0xff] %v174_v23 }

// kernel: _lambda_.40
= control target key start
LH: loop header
LB: loop body
LE: loop exit
PB: predicated region body
PF: predicated region fallthrough
CT: control target
= control target key end

     0   :  { %v119_v0 = vmov 0.0   ;;  %vm120_vm0 = vmmov 0   ;;  %vm33_vm1 = vcmask 130048   ;;  %s161_s1 = inlined_call_operand.vmem [shape: bf16[16,128], index: 1, kind: input, shape index: {}]   ;;  %s162_s0 = inlined_call_operand.vmem [shape: bf16[8,16], index: 0, kind: input, shape index: {}]   ;;  %s163_s2 = inlined_call_operand.vmem [shape: f32[1,128], index: 2, kind: input, shape index: {}]   ;;  %s164_s3 = inlined_call_operand.vmem [shape: f32[1,128], index: 3, kind: input, shape index: {}]   ;;  %s165_s4 = inlined_call_operand.vmem [shape: f32[8,128], index: 4, kind: output, shape index: {}]  }
   0x1   :  { %110 = vmatprep.subr.bf16.mxu0 %v119_v0  ;;  %v118_v1 = vld [vmem:[%s161_s1] sm:$0xff]   ;;  %112 = vmatprep.mubr.msk.bf16.mxu0 %vm120_vm0, %v119_v0 }
   0x2   :  { %111 = vmatpush3.bf16.msra.mxu0 %v118_v1  ;;  %v24_v2 = vld [vmem:[%s162_s0] sm:$0xf] }
   0x3   :  { %v106_v3 = vld [vmem:[%s163_s2] ss:$0 sm:$0xff] }
   0x4   :  { %v107_v5 = vld [vmem:[%s164_s3] ss:$0 sm:$0xff] }
   0x5   :  { %113 = vmatmul.mubr.msk.bf16.vlgmr.msra.gmra.mrb[0].mxu0 %vm33_vm1, %v24_v2 }
  0xd8   :  { %v71_v4 = vpop.f32.mrb[0].mxu0 }
  0xd9   :  { %v90_v6 = vmul.f32 %v106_v3, %v71_v4  ;;  %v114_v7 = vpop.f32.mrb[1].mxu0 }
  0xda   :  { %v74_v8 = vpop.f32.mrb[2].mxu0 }
  0xdb   :  { %v98_v9 = vadd.f32 %v107_v5, %v90_v6  ;;  %v115_v10 = vpop.f32.mrb[3].mxu0 }
  0xdd   :  { %99 = vst [vmem:[%s165_s4] sm:$0xff] %v98_v9 }

// kernel: _lambda_.47
= control target key start
LH: loop header
LB: loop body
LE: loop exit
PB: predicated region body
PF: predicated region fallthrough
CT: control target
= control target key end

     0   :  { %v132_v0 = vmov 0.0   ;;  %vm133_vm0 = vmmov 0   ;;  %vm41_vm1 = vcmask 261120   ;;  %s177_s1 = inlined_call_operand.vmem [shape: bf16[32,128], index: 1, kind: input, shape index: {}]   ;;  %s178_s0 = inlined_call_operand.vmem [shape: bf16[8,32], index: 0, kind: input, shape index: {}]   ;;  %s179_s2 = inlined_call_operand.vmem [shape: f32[1,128], index: 2, kind: input, shape index: {}]   ;;  %s180_s3 = inlined_call_operand.vmem [shape: f32[1,128], index: 3, kind: input, shape index: {}]   ;;  %s181_s4 = inlined_call_operand.vmem [shape: f32[8,128], index: 4, kind: output, shape index: {}]  }
   0x1   :  { %120 = vmatprep.subr.bf16.mxu0 %v132_v0  ;;  %v130_v1 = vld [vmem:[%s177_s1] sm:$0xff]   ;;  %124 = vmatprep.mubr.msk.bf16.mxu0 %vm133_vm0, %v132_v0  ;;  %v131_v2 = vld [vmem:[%s177_s1 + $0x8] sm:$0xff]  }
   0x2   :  { %121 = vmatpush3.bf16.msra.mxu0 %v130_v1  ;;  %v24_v3 = vld [vmem:[%s178_s0] sm:$0xf] }
   0x3   :  { %122 = vmatprep.subr.bf16.mxu0 %v132_v0  ;;  %v115_v4 = vld [vmem:[%s179_s2] ss:$0 sm:$0xff] }
   0x4   :  { %v116_v6 = vld [vmem:[%s180_s3] ss:$0 sm:$0xff] }
   0x6   :  { %123 = vmatpush3.bf16.msra.mxu0 %v131_v2 }
   0x9   :  { %125 = vmatmul.mubr.msk.bf16.vlgmr.msra.gmra.mrb[0].mxu0 %vm41_vm1, %v24_v3 }
  0xdc   :  { %v79_v5 = vpop.f32.mrb[0].mxu0 }
  0xdd   :  { %v98_v7 = vmul.f32 %v115_v4, %v79_v5  ;;  %v126_v8 = vpop.f32.mrb[1].mxu0 }
  0xde   :  { %v82_v9 = vpop.f32.mrb[2].mxu0 }
  0xdf   :  { %v106_v10 = vadd.f32 %v116_v6, %v98_v7  ;;  %v127_v11 = vpop.f32.mrb[3].mxu0 }
  0xe1   :  { %107 = vst [vmem:[%s181_s4] sm:$0xff] %v106_v10 }

// kernel: _lambda_.48
= control target key start
LH: loop header
LB: loop body
LE: loop exit
PB: predicated region body
PF: predicated region fallthrough
CT: control target
= control target key end

     0   :  { %vm26_vm0 = vcmask 261120   ;;  %v785_v0 = vmov 0.0   ;;  %vm786_vm1 = vmmov 0   ;;  %vm335_vm2 = vcmask 9216   ;;  %s903_s1 = inlined_call_operand.vmem [shape: f32[4,2,32], index: 1, kind: input, shape index: {}]   ;;  %s904_s0 = inlined_call_operand.vmem [shape: f32[4,2,32], index: 0, kind: input, shape index: {}]   ;;  %s905_s2 = inlined_call_operand.vmem [shape: f32[4,2,32], index: 2, kind: input, shape index: {}]   ;;  %s906_s3 = inlined_call_operand.vmem [shape: f32[4,2,32], index: 3, kind: output, shape index: {}]  }
   0x1   :  { %727 = vmatprep.subr.mxu0 %v785_v0  ;;  %v18_v1 = vld [vmem:[%s903_s1] sm:$0x3]  ;;  %729 = vmatprep.mubr.msk.f32.mxu0 %vm786_vm1, %v785_v0  ;;  %v19_v2 = vld [vmem:[%s903_s1 + $0x2] sm:$0x3]  ;;  %v20_v4 = vld [vmem:[%s903_s1 + $0x4] sm:$0x3] }
   0x2   :  { %728 = vmatpush3.xpose.msk.msra.mxu0 %vm26_vm0, %v18_v1  ;;  %v14_v3 = vld [vmem:[%s904_s0] sm:$0x3]  ;;  %732 = vmatprep.subr.mxu1 %v785_v0  ;;  %v15_v5 = vld [vmem:[%s904_s0 + $0x2] sm:$0x3]  ;;  %v21_v6 = vld [vmem:[%s903_s1 + $0x6] sm:$0x3] }
   0x3   :  { %737 = vmatprep.subr.mxu0 %v785_v0  ;;  %733 = vmatpush3.xpose.msk.msra.mxu1 %vm26_vm0, %v19_v2  ;;  %v16_v7 = vld [vmem:[%s904_s0 + $0x4] sm:$0x3]  ;;  %v17_v8 = vld [vmem:[%s904_s0 + $0x6] sm:$0x3]  ;;  %v22_v45 = vld [vmem:[%s905_s2] sm:$0x3] }
   0x4   :  { %734 = vmatprep.mubr.msk.f32.mxu1 %vm786_vm1, %v785_v0  ;;  %742 = vmatprep.subr.mxu1 %v785_v0  ;;  %vm384_vm3 = vcmask 1041408   ;;  %v23_v46 = vld [vmem:[%s905_s2 + $0x2] sm:$0x3]  ;;  %vm380_vm4 = vcmask 15360   ;;  %v24_v53 = vld [vmem:[%s905_s2 + $0x4] sm:$0x3] }
   0x5   :  { %730 = vmatmul.mubr.msk.f32.vlgmr.msra.gmra.mrb[0].mxu0 %vm26_vm0, %v14_v3  ;;  %v25_v57 = vld [vmem:[%s905_s2 + $0x6] sm:$0x3]  ;;  %vm686_vm5 = vcmask 254976  }
   0x6   :  { %738 = vmatpush3.xpose.msk.msra.mxu0 %vm26_vm0, %v20_v4  ;;  %739 = vmatprep.mubr.msk.f32.mxu0 %vm786_vm1, %v785_v0 }
   0x7   :  { %735 = vmatmul.mubr.msk.f32.vlgmr.msra.gmra.mrb[0].mxu1 %vm26_vm0, %v15_v5  ;;  %747 = vmatprep.subr.mxu0 %v785_v0 }
   0x8   :  { %743 = vmatpush3.xpose.msk.msra.mxu1 %vm26_vm0, %v21_v6  ;;  %744 = vmatprep.mubr.msk.f32.mxu1 %vm786_vm1, %v785_v0 }
   0x9   :  { %740 = vmatmul.mubr.msk.f32.vlgmr.msra.gmra.mrb[2].mxu0 %vm26_vm0, %v16_v7  ;;  %752 = vmatprep.subr.mxu1 %v785_v0 }
   0xa   :  { %749 = vmatprep.mubr.msk.f32.mxu0 %vm786_vm1, %v785_v0  ;;  %748 = vmatpush3.msk.msra.mxu0 %vm384_vm3, %v22_v45 }
   0xb   :  { %745 = vmatmul.mubr.msk.f32.vlgmr.msra.gmra.mrb[2].mxu1 %vm26_vm0, %v17_v8  ;;  %757 = vmatprep.subr.mxu0 %v785_v0 }
   0xc   :  { %754 = vmatprep.mubr.msk.f32.mxu1 %vm786_vm1, %v785_v0  ;;  %753 = vmatpush3.msk.msra.mxu1 %vm384_vm3, %v23_v46 }
   0xd   :  { %762 = vmatprep.subr.mxu1 %v785_v0 }
  0xd8   :  { %v99_v9 = vpop.f32.mrb[0].mxu0 }
  0xd9   :  { %v331_v10 = vmul.f32 0.17677669, %v99_v9  ;;  %v731_v11 = vpop.f32.mrb[1].mxu0 }
  0xda   :  { %v175_v12 = vpop.f32.mrb[0].mxu1 }
  0xdb   :  { %v332_v13 = vmul.f32 0.17677669, %v175_v12  ;;  %v336_v14 = vsel %vm335_vm2, %v331_v10, -inf  ;;  %v736_v15 = vpop.f32.mrb[1].mxu1 }
  0xdc   :  { %337 = vmax.xlane.f32.xlu0 %v336_v14  ;;  %v251_v16 = vpop.f32.mrb[2].mxu0 }
  0xdd   :  { %v333_v17 = vmul.f32 0.17677669, %v251_v16  ;;  %v741_v18 = vpop.f32.mrb[3].mxu0  ;;  %v339_v19 = vsel %vm335_vm2, %v332_v13, -inf }
  0xde   :  { %v327_v20 = vpop.f32.mrb[2].mxu1 }
  0xdf   :  { %v334_v21 = vmul.f32 0.17677669, %v327_v20  ;;  %v342_v22 = vsel %vm335_vm2, %v333_v17, -inf  ;;  %v746_v23 = vpop.f32.mrb[3].mxu1 }
  0xe0   :  { %340 = vmax.xlane.f32.xlu0 %v339_v19  ;;  %343 = vmax.xlane.f32.xlu1 %v342_v22 }
  0xe1   :  { %v345_v24 = vsel %vm335_vm2, %v334_v21, -inf }
  0xe4   :  { %346 = vmax.xlane.f32.xlu1 %v345_v24 }
 0x169   :  { %v338_v25 = vpop.xlane.xlu0 %337 }
 0x16a   :  { %v348_v26 = vsub.f32 %v331_v10, %v338_v25 }
 0x16c   :  { %v352_v27 = vmul.f32 1.442695, %v348_v26 }
 0x16d   :  { %v341_v28 = vpop.xlane.xlu0 %340  ;;  %v344_v29 = vpop.xlane.xlu1 %343 }
 0x16e   :  { %769 = vpow2.f32 %v352_v27  ;;  %v349_v30 = vsub.f32 %v332_v13, %v341_v28  ;;  %v350_v31 = vsub.f32 %v333_v17, %v344_v29 }
 0x170   :  { %v354_v32 = vmul.f32 1.442695, %v349_v30  ;;  %v356_v33 = vmul.f32 1.442695, %v350_v31 }
 0x171   :  { %v347_v34 = vpop.xlane.xlu1 %346 }
 0x172   :  { %771 = vpow2.f32 %v354_v32  ;;  %v351_v35 = vsub.f32 %v334_v21, %v347_v34 }
 0x173   :  { %773 = vpow2.f32 %v356_v33 }
 0x174   :  { %v358_v36 = vmul.f32 1.442695, %v351_v35 }
 0x176   :  { %775 = vpow2.f32 %v358_v36 }
 0x178   :  { %v770_v37 = vpop.eup %769 }
 0x179   :  { %v360_v38 = vsel %vm335_vm2, %v770_v37, 0.0 }
 0x17a   :  { %361 = vadd.xlane.f32.xlu0 %v360_v38 }
 0x17c   :  { %v772_v39 = vpop.eup %771 }
 0x17d   :  { %v774_v40 = vpop.eup %773  ;;  %v363_v41 = vsel %vm335_vm2, %v772_v39, 0.0 }
 0x17e   :  { %364 = vadd.xlane.f32.xlu1 %v363_v41  ;;  %v366_v42 = vsel %vm335_vm2, %v774_v40, 0.0 }
 0x17f   :  { %367 = vadd.xlane.f32.xlu0 %v366_v42 }
 0x180   :  { %v776_v43 = vpop.eup %775 }
 0x181   :  { %v369_v44 = vsel %vm335_vm2, %v776_v43, 0.0 }
 0x182   :  { %370 = vadd.xlane.f32.xlu1 %v369_v44 }
 0x207   :  { %v362_v47 = vpop.xlane.xlu0 %361 }
 0x208   :  { %777 = vrcp.f32 %v362_v47 }
 0x20b   :  { %v365_v48 = vpop.xlane.xlu1 %364 }
 0x20c   :  { %v368_v49 = vpop.xlane.xlu0 %367  ;;  %779 = vrcp.f32 %v365_v48 }
 0x20d   :  { %781 = vrcp.f32 %v368_v49 }
 0x20f   :  { %v371_v50 = vpop.xlane.xlu1 %370 }
 0x210   :  { %783 = vrcp.f32 %v371_v50 }
 0x212   :  { %v778_v51 = vpop.eup %777 }
 0x213   :  { %v373_v52 = vmul.f32 %v778_v51, %v770_v37 }
 0x215   :  { %750 = vmatmul.mubr.msk.f32.vlgmr.msra.gmra.mrb[4].mxu0 %vm380_vm4, %v373_v52 }
 0x216   :  { %v780_v54 = vpop.eup %779  ;;  %758 = vmatpush3.msk.msra.mxu0 %vm384_vm3, %v24_v53  ;;  %759 = vmatprep.mubr.msk.f32.mxu0 %vm786_vm1, %v785_v0 }
 0x217   :  { %v782_v55 = vpop.eup %781  ;;  %v375_v56 = vmul.f32 %v780_v54, %v772_v39 }
 0x218   :  { %v377_v58 = vmul.f32 %v782_v55, %v774_v40 }
 0x219   :  { %755 = vmatmul.mubr.msk.f32.vlgmr.msra.gmra.mrb[4].mxu1 %vm380_vm4, %v375_v56 }
 0x21a   :  { %v784_v59 = vpop.eup %783  ;;  %760 = vmatmul.mubr.msk.f32.vlgmr.msra.gmra.mrb[6].mxu0 %vm380_vm4, %v377_v58  ;;  %763 = vmatpush3.msk.msra.mxu1 %vm384_vm3, %v25_v57 }
 0x21b   :  { %v379_v60 = vmul.f32 %v784_v59, %v776_v43  ;;  %764 = vmatprep.mubr.msk.f32.mxu1 %vm786_vm1, %v785_v0 }
 0x21d   :  { %765 = vmatmul.mubr.msk.f32.vlgmr.msra.gmra.mrb[6].mxu1 %vm380_vm4, %v379_v60 }
 0x2e8   :  { %v454_v61 = vpop.f32.mrb[4].mxu0 }
 0x2e9   :  { %687 = vst.msk [vmem:[%s906_s3] sm:$0x3] %vm686_vm5, %v454_v61  ;;  %v751_v62 = vpop.f32.mrb[5].mxu0 }
 0x2ec   :  { %v530_v63 = vpop.f32.mrb[4].mxu1 }
 0x2ed   :  { %688 = vst.msk [vmem:[%s906_s3 + $0x2] sm:$0x3] %vm686_vm5, %v530_v63  ;;  %v606_v1 = vpop.f32.mrb[6].mxu0  ;;  %v756_v2 = vpop.f32.mrb[5].mxu1 }
 0x2ee   :  { %689 = vst.msk [vmem:[%s906_s3 + $0x4] sm:$0x3] %vm686_vm5, %v606_v1  ;;  %v761_v0 = vpop.f32.mrb[7].mxu0 }
 0x2f0   :  { %v682_v3 = vpop.f32.mrb[6].mxu1 }
 0x2f1   :  { %690 = vst.msk [vmem:[%s906_s3 + $0x6] sm:$0x3] %vm686_vm5, %v682_v3  ;;  %v766_v4 = vpop.f32.mrb[7].mxu1 }

// kernel: _lambda_.52
= control target key start
LH: loop header
LB: loop body
LE: loop exit
PB: predicated region body
PF: predicated region fallthrough
CT: control target
= control target key end

     0   :  { %s174_s6 = smov 0   ;;  %s194_s0 = inlined_call_operand.vmem [shape: f32[2,1,64], index: 0, kind: input, shape index: {}]   ;;  %s195_s1 = inlined_call_operand.vmem [shape: f32[2,1,64], index: 1, kind: output, shape index: {}]  }
   0x1 LB: > { %s155_s7 = sadd.s32 4294967295, %s176_s6   ;;  %p159_p0 = scmp.ge.s32.totalorder %s176_s6, 1  ;;  %s176_s6 = sphi %s174_s6, %s11_s6  }
   0x2   : > { %p85_p1 = scmp.lt.s32.totalorder %s176_s6, 3 }
   0x4   : > { %p86_p2 = pnand %p159_p0, %p85_p1 }
   0x5   : > { %p101_p3 = scmp.lt.s32.totalorder (!%p86_p2), %s155_s7, 1  ;;  %vm109_vm0 = vcmask (!%p86_p2), 516096  }
   0x6   : > { %89 = sbr.rel (%p86_p2) target bundleno = 17 (0x11), region = 24 }
   0xd   : > { %s197_s7 = smov (!%p101_p3, %s155_s7), 1 }
   0xe   : > { %s103_s10 = scalar_lea.vmem %s194_s0, %s197_s7  ;;  %s106_s13 = scalar_lea.vmem %s195_s1, %s197_s7 }
   0xf   : > { %v107_v0 = vld [vmem:[%s103_s10] sm:$0x1] }
  0x10   : > { %110 = vst.msk [vmem:[%s106_s13] sm:$0x1] %vm109_vm0, %v107_v0 }
  0x11 PF: > { %s11_s6 = sadd.s32 1, %s176_s6  }
  0x12   : > { %p8_p4 = scmp.ge.s32.totalorder %s11_s6, 4  }
  0x14   :  { %10 = sbr.rel (!%p8_p4) target bundleno = 1 (0x1), region = 54 }

// kernel: _lambda_.50
= control target key start
LH: loop header
LB: loop body
LE: loop exit
PB: predicated region body
PF: predicated region fallthrough
CT: control target
= control target key end

     0   :  { %v159_v0 = vmov 0.0   ;;  %vm160_vm0 = vmmov 0   ;;  %vm57_vm1 = vcmask 523264   ;;  %s210_s1 = inlined_call_operand.vmem [shape: bf16[64,128], index: 1, kind: input, shape index: {}]   ;;  %s211_s0 = inlined_call_operand.vmem [shape: bf16[8,64], index: 0, kind: input, shape index: {}]   ;;  %s212_s2 = inlined_call_operand.vmem [shape: f32[1,128], index: 2, kind: input, shape index: {}]   ;;  %s213_s3 = inlined_call_operand.vmem [shape: f32[1,128], index: 3, kind: input, shape index: {}]   ;;  %s214_s4 = inlined_call_operand.vmem [shape: f32[8,128], index: 4, kind: output, shape index: {}]  }
   0x1   :  { %141 = vmatprep.subr.bf16.mxu0 %v159_v0  ;;  %v155_v1 = vld [vmem:[%s210_s1] sm:$0xff]   ;;  %149 = vmatprep.mubr.msk.bf16.mxu0 %vm160_vm0, %v159_v0  ;;  %v156_v2 = vld [vmem:[%s210_s1 + $0x8] sm:$0xff]   ;;  %v157_v3 = vld [vmem:[%s210_s1 + $0x10] sm:$0xff]  }
   0x2   :  { %142 = vmatpush3.bf16.msra.mxu0 %v155_v1  ;;  %v158_v4 = vld [vmem:[%s210_s1 + $0x18] sm:$0xff]   ;;  %v24_v5 = vld [vmem:[%s211_s0] sm:$0xf] }
   0x3   :  { %143 = vmatprep.subr.bf16.mxu0 %v159_v0  ;;  %v134_v6 = vld [vmem:[%s212_s2] ss:$0 sm:$0xff] }
   0x4   :  { %v135_v8 = vld [vmem:[%s213_s3] ss:$0 sm:$0xff] }
   0x6   :  { %144 = vmatpush3.bf16.msra.mxu0 %v156_v2 }
   0x7   :  { %145 = vmatprep.subr.bf16.mxu0 %v159_v0 }
   0xa   :  { %146 = vmatpush3.bf16.msra.mxu0 %v157_v3 }
   0xb   :  { %147 = vmatprep.subr.bf16.mxu0 %v159_v0 }
   0xe   :  { %148 = vmatpush3.bf16.msra.mxu0 %v158_v4 }
  0x11   :  { %150 = vmatmul.mubr.msk.bf16.vlgmr.msra.gmra.mrb[0].mxu0 %vm57_vm1, %v24_v5 }
  0xe4   :  { %v95_v7 = vpop.f32.mrb[0].mxu0 }
  0xe5   :  { %v114_v9 = vmul.f32 %v134_v6, %v95_v7  ;;  %v151_v10 = vpop.f32.mrb[1].mxu0 }
  0xe6   :  { %v98_v11 = vpop.f32.mrb[2].mxu0 }
  0xe7   :  { %v122_v12 = vadd.f32 %v135_v8, %v114_v9  ;;  %v152_v13 = vpop.f32.mrb[3].mxu0 }
  0xe9   :  { %v123_v14 = vmax.f32 %v122_v12, 0.0 }
  0xeb   :  { %124 = vst [vmem:[%s214_s4] sm:$0xff] %v123_v14 }

// kernel: _lambda_.53
= control target key start
LH: loop header
LB: loop body
LE: loop exit
PB: predicated region body
PF: predicated region fallthrough
CT: control target
= control target key end

     0   :  { %v158_v0 = vmov 0.0   ;;  %vm159_vm0 = vmmov 0   ;;  %vm57_vm1 = vcmask 523264   ;;  %s209_s1 = inlined_call_operand.vmem [shape: bf16[64,128], index: 1, kind: input, shape index: {}]   ;;  %s210_s0 = inlined_call_operand.vmem [shape: bf16[8,64], index: 0, kind: input, shape index: {}]   ;;  %s211_s2 = inlined_call_operand.vmem [shape: f32[1,128], index: 2, kind: input, shape index: {}]   ;;  %s212_s3 = inlined_call_operand.vmem [shape: f32[1,128], index: 3, kind: input, shape index: {}]   ;;  %s213_s4 = inlined_call_operand.vmem [shape: f32[8,128], index: 4, kind: output, shape index: {}]  }
   0x1   :  { %140 = vmatprep.subr.bf16.mxu0 %v158_v0  ;;  %v154_v1 = vld [vmem:[%s209_s1] sm:$0xff]   ;;  %148 = vmatprep.mubr.msk.bf16.mxu0 %vm159_vm0, %v158_v0  ;;  %v155_v2 = vld [vmem:[%s209_s1 + $0x8] sm:$0xff]   ;;  %v156_v3 = vld [vmem:[%s209_s1 + $0x10] sm:$0xff]  }
   0x2   :  { %141 = vmatpush3.bf16.msra.mxu0 %v154_v1  ;;  %v157_v4 = vld [vmem:[%s209_s1 + $0x18] sm:$0xff]   ;;  %v24_v5 = vld [vmem:[%s210_s0] sm:$0xf] }
   0x3   :  { %142 = vmatprep.subr.bf16.mxu0 %v158_v0  ;;  %v133_v6 = vld [vmem:[%s211_s2] ss:$0 sm:$0xff] }
   0x4   :  { %v134_v8 = vld [vmem:[%s212_s3] ss:$0 sm:$0xff] }
   0x6   :  { %143 = vmatpush3.bf16.msra.mxu0 %v155_v2 }
   0x7   :  { %144 = vmatprep.subr.bf16.mxu0 %v158_v0 }
   0xa   :  { %145 = vmatpush3.bf16.msra.mxu0 %v156_v3 }
   0xb   :  { %146 = vmatprep.subr.bf16.mxu0 %v158_v0 }
   0xe   :  { %147 = vmatpush3.bf16.msra.mxu0 %v157_v4 }
  0x11   :  { %149 = vmatmul.mubr.msk.bf16.vlgmr.msra.gmra.mrb[0].mxu0 %vm57_vm1, %v24_v5 }
  0xe4   :  { %v95_v7 = vpop.f32.mrb[0].mxu0 }
  0xe5   :  { %v114_v9 = vmul.f32 %v133_v6, %v95_v7  ;;  %v150_v10 = vpop.f32.mrb[1].mxu0 }
  0xe6   :  { %v98_v11 = vpop.f32.mrb[2].mxu0 }
  0xe7   :  { %v122_v12 = vadd.f32 %v134_v8, %v114_v9  ;;  %v151_v13 = vpop.f32.mrb[3].mxu0 }
  0xe9   :  { %123 = vst [vmem:[%s213_s4] sm:$0xff] %v122_v12 }

// kernel: _lambda_.51
= control target key start
LH: loop header
LB: loop body
LE: loop exit
PB: predicated region body
PF: predicated region fallthrough
CT: control target
= control target key end

     0   :  { %v377_v1 = vmov 0.0   ;;  %vm378_vm0 = vmmov 0   ;;  %vm183_vm1 = vcmask 261120   ;;  %s481_s1 = inlined_call_operand.vmem [shape: bf16[288,128], index: 1, kind: input, shape index: {}]   ;;  %s482_s0 = inlined_call_operand.vmem [shape: bf16[8,288], index: 0, kind: input, shape index: {}]   ;;  %s483_s2 = inlined_call_operand.vmem [shape: f32[1,128], index: 2, kind: input, shape index: {}]   ;;  %s484_s3 = inlined_call_operand.vmem [shape: f32[1,128], index: 3, kind: input, shape index: {}]   ;;  %s485_s4 = inlined_call_operand.vmem [shape: f32[8,128], index: 4, kind: input, shape index: {}]   ;;  %s486_s5 = inlined_call_operand.vmem [shape: f32[8,128], index: 5, kind: output, shape index: {}]  }
   0x1   :  { %v356_v0 = vld [vmem:[%s481_s1 + $0x40] sm:$0xff]   ;;  %346 = vmatprep.subr.bf16.mxu1 %v377_v1  ;;  %350 = vmatprep.mubr.msk.bf16.mxu1 %vm378_vm0, %v377_v1  ;;  %v358_v3 = vld [vmem:[%s481_s1 + $0x48] sm:$0xff]   ;;  %v360_v5 = vld [vmem:[%s481_s1 + $0x50] sm:$0xff]  }
   0x2   :  { %v357_v2 = vld [vmem:[%s481_s1] sm:$0xff]   ;;  %321 = vmatprep.subr.bf16.mxu0 %v356_v0  ;;  %v359_v4 = vld [vmem:[%s481_s1 + $0x8] sm:$0xff]   ;;  %v361_v6 = vld [vmem:[%s481_s1 + $0x10] sm:$0xff]  }
   0x3   :  { %322 = vmatpush3.bf16.msra.mxu0 %v357_v2  ;;  %v362_v7 = vld [vmem:[%s481_s1 + $0x58] sm:$0xff]   ;;  %v364_v9 = vld [vmem:[%s481_s1 + $0x60] sm:$0xff]   ;;  %v366_v12 = vld [vmem:[%s481_s1 + $0x68] sm:$0xff]  }
   0x4   :  { %323 = vmatprep.subr.bf16.mxu0 %v358_v3  ;;  %v363_v8 = vld [vmem:[%s481_s1 + $0x18] sm:$0xff]   ;;  %v370_v10 = vld [vmem:[%s481_s1 + $0x80] sm:$0xff]   ;;  %v373_v13 = vld [vmem:[%s481_s1 + $0x88] sm:$0xff]  }
   0x5   :  { %v365_v11 = vld [vmem:[%s481_s1 + $0x20] sm:$0xff]   ;;  %347 = vmatpush3.bf16.msra.mxu1 %v370_v10  ;;  %v367_v15 = vld [vmem:[%s481_s1 + $0x28] sm:$0xff]   ;;  %v368_v18 = vld [vmem:[%s481_s1 + $0x70] sm:$0xff]  }
   0x6   :  { %348 = vmatprep.subr.bf16.mxu1 %v377_v1  ;;  %v27_v14 = vld [vmem:[%s482_s0] sm:$0xff]  ;;  %v376_v17 = vld [vmem:[%s482_s0 + $0x8] ss:$0 sps:$4 sm:$0xff]   ;;  %v369_v19 = vld [vmem:[%s481_s1 + $0x30] sm:$0xff]  }
   0x7   :  { %324 = vmatpush3.bf16.msra.mxu0 %v359_v4  ;;  %v298_v16 = vcombine.high %v27_v14, %v27_v14  ;;  %v371_v20 = vld [vmem:[%s481_s1 + $0x78] sm:$0xff]   ;;  %v297_v22 = vcombine.low %v27_v14, %v27_v14  ;;  %v319_v31 = vld [vmem:[%s483_s2] ss:$0 sm:$0xff] }
   0x8   :  { %325 = vmatprep.subr.bf16.mxu0 %v360_v5  ;;  %v372_v21 = vld [vmem:[%s481_s1 + $0x38] sm:$0xff]   ;;  %v320_v34 = vld [vmem:[%s484_s3] ss:$0 sm:$0xff] }
   0x9   :  { %349 = vmatpush3.bf16.msra.mxu1 %v373_v13  ;;  %219 = vmatprep.mubr.bf16.mxu0 %v298_v16  ;;  %v289_v36 = vld [vmem:[%s485_s4] sm:$0xff] }
   0xb   :  { %326 = vmatpush3.bf16.msra.mxu0 %v361_v6 }
   0xc   :  { %327 = vmatprep.subr.bf16.mxu0 %v362_v7  ;;  %351 = vmatmul.mubr.msk.bf16.vlgmr.msra.gmra.mrb[0].mxu1 %vm183_vm1, %v376_v17 }
   0xf   :  { %328 = vmatpush3.bf16.msra.mxu0 %v363_v8 }
  0x10   :  { %329 = vmatprep.subr.bf16.mxu0 %v364_v9 }
  0x13   :  { %330 = vmatpush3.bf16.msra.mxu0 %v365_v11 }
  0x14   :  { %331 = vmatprep.subr.bf16.mxu0 %v366_v12 }
  0x17   :  { %332 = vmatpush3.bf16.msra.mxu0 %v367_v15 }
  0x18   :  { %333 = vmatprep.subr.bf16.mxu0 %v368_v18 }
  0x1b   :  { %334 = vmatpush3.bf16.msra.mxu0 %v369_v19 }
  0x1c   :  { %335 = vmatprep.subr.bf16.mxu0 %v371_v20 }
  0x1f   :  { %336 = vmatpush3.bf16.msra.mxu0 %v372_v21 }
  0x22   :  { %220 = vmatmul.mubr.bf16.vlgmr.msra.gmra.mrb[0].mxu0 %v297_v22 }
  0xdf   :  { %v261_v23 = vpop.f32.mrb[0].mxu1 }
  0xe0   :  { %v352_v24 = vpop.f32.mrb[1].mxu1 }
  0xe1   :  { %v264_v25 = vpop.f32.mrb[2].mxu1 }
  0xe2   :  { %v353_v26 = vpop.f32.mrb[3].mxu1 }
  0xf5   :  { %v337_v27 = vpop.f32.mrb[0].mxu0 }
  0xf6   :  { %v338_v28 = vpop.f32.mrb[1].mxu0 }
  0xf7   :  { %v339_v29 = vadd.f32 %v338_v28, %v337_v27  ;;  %v340_v30 = vpop.f32.mrb[2].mxu0 }
  0xf8   :  { %v341_v32 = vpop.f32.mrb[3].mxu0 }
  0xf9   :  { %v262_v33 = vadd.f32 %v339_v29, %v261_v23 }
  0xfb   :  { %v280_v35 = vmul.f32 %v319_v31, %v262_v33 }
  0xfd   :  { %v288_v37 = vadd.f32 %v320_v34, %v280_v35 }
  0xff   :  { %v290_v38 = vadd.f32 %v289_v36, %v288_v37 }
 0x101   :  { %v291_v39 = vmax.f32 %v290_v38, 0.0 }
 0x103   :  { %292 = vst [vmem:[%s486_s5] sm:$0xff] %v291_v39 }

</bundles_post_ra>
